<compile_context>
chip_gen: v7x
topology: tpu7x:2x2x1
jax: 0.10.0
libtpu: 0.0.40
codegen_flags: <defaults>
</compile_context>

<pallas_src>
import functools

import jax
import jax.numpy as jnp
from jax import lax
from jax.experimental import pallas as pl
from jax.experimental.pallas import tpu as pltpu

# ----------------------------- model config ---------------------------------
VOCAB = 64            # gpt2_config.vocab_size (small synthetic)
VOCAB_PAD = 128       # lane-dense logits (multiple of 128)
POS_SIZE = 16         # gpt2_config.position_size
HID = 32              # hidden size
N_HEADS = 4
HEAD_DIM = HID // N_HEADS
FFN = 4 * HID
N_LAYERS = 2
LN_EPS = 1e-5

TOP_K = 5
TEMPERATURE = 0.7
NEG_INF = -1e30


# ----------------------------- kernel ----------------------------------------
def _layernorm(x, g, b):
    mu = jnp.mean(x, axis=-1, keepdims=True)
    var = jnp.mean((x - mu) ** 2, axis=-1, keepdims=True)
    return (x - mu) * lax.rsqrt(var + LN_EPS) * g + b


def gpt2_fused_kernel(x_ref, wq_ref, wk_ref, wv_ref, bqkv_ref, wo_ref,
                      wfc1_ref, bfc1_ref, wfc2_ref, vec_ref, lnf_ref,
                      wte_t_ref, out_ref):
    """Full GPT-2 forward: N_LAYERS pre-LN decoder layers + final LN + logits.

    Single invocation (no grid): batch folded into the block, all weights
    resident in VMEM across layers.
    """
    B, S, H = x_ref.shape
    x = x_ref[...].reshape(B * S, H)                   # (BS, H) rows for matmuls

    # causal mask, built once and shared across layers/heads
    q_pos = lax.broadcasted_iota(jnp.int32, (B, S, S), 1)
    k_pos = lax.broadcasted_iota(jnp.int32, (B, S, S), 2)
    causal = k_pos <= q_pos
    scale = 1.0 / (HEAD_DIM ** 0.5)

    for l in range(N_LAYERS):
        vecs = vec_ref[l]          # (6, H): ln1_g, ln1_b, b_o, ln2_g, ln2_b, b_fc2

        # --- multi-head causal self-attention (per-head weights: no lane
        #     slicing of activations, no concatenate) ---
        h = _layernorm(x, vecs[0], vecs[1])
        attn = jnp.zeros((B * S, H), jnp.float32)
        for n in range(N_HEADS):
            hsel = l * N_HEADS + n
            qh = jnp.dot(h, wq_ref[hsel], preferred_element_type=jnp.float32) \
                + bqkv_ref[(l * 3 + 0) * N_HEADS + n]
            kh = jnp.dot(h, wk_ref[hsel], preferred_element_type=jnp.float32) \
                + bqkv_ref[(l * 3 + 1) * N_HEADS + n]
            vh = jnp.dot(h, wv_ref[hsel], preferred_element_type=jnp.float32) \
                + bqkv_ref[(l * 3 + 2) * N_HEADS + n]
            qb = qh.reshape(B, S, HEAD_DIM)
            kb = kh.reshape(B, S, HEAD_DIM)
            vb = vh.reshape(B, S, HEAD_DIM)
            scores = jnp.einsum('bqd,bkd->bqk', qb, kb,
                                preferred_element_type=jnp.float32) * scale
            scores = jnp.where(causal, scores, NEG_INF)
            probs = jax.nn.softmax(scores, axis=-1)
            ctx = jnp.einsum('bqk,bkd->bqd', probs, vb,
                             preferred_element_type=jnp.float32)
            attn = attn + jnp.dot(ctx.reshape(B * S, HEAD_DIM), wo_ref[hsel],
                                  preferred_element_type=jnp.float32)
        x = x + attn + vecs[2]                          # + b_o

        # --- position-wise feed-forward (tanh-approx GELU, as in GPT-2) ---
        h2 = _layernorm(x, vecs[3], vecs[4])
        ff = jnp.dot(h2, wfc1_ref[l], preferred_element_type=jnp.float32) + bfc1_ref[l]
        ff = jax.nn.gelu(ff, approximate=True)
        ff = jnp.dot(ff, wfc2_ref[l], preferred_element_type=jnp.float32) + vecs[5]
        x = x + ff

    # --- final LN + tied-embedding logits (pre-transposed, lane-padded) ---
    hf = _layernorm(x, lnf_ref[0], lnf_ref[1])
    logits = jnp.dot(hf, wte_t_ref[...], preferred_element_type=jnp.float32)
    out_ref[...] = logits.reshape(B, S, VOCAB_PAD)


def gpt2_fused_call(x, kp):
    B, S, H = x.shape
    return pl.pallas_call(
        gpt2_fused_kernel,
        out_shape=jax.ShapeDtypeStruct((B, S, VOCAB_PAD), jnp.float32),
        compiler_params=pltpu.CompilerParams(vmem_limit_bytes=32 * 1024 * 1024),
    )(x, kp["wq"], kp["wk"], kp["wv"], kp["bqkv"], kp["wo"],
      kp["wfc1"], kp["bfc1"], kp["wfc2"], kp["vec"], kp["lnf"], kp["wte_t"])


# ----------------------------- parameters ------------------------------------
def init_params(key):
    def nrm(k, shape):
        return 0.02 * jax.random.normal(k, shape, jnp.float32)

    keys = iter(jax.random.split(key, 2 + 6 * N_LAYERS))
    params = {
        "wte": nrm(next(keys), (VOCAB, HID)),       # WordEmbedder (tied output)
        "wpe": nrm(next(keys), (POS_SIZE, HID)),    # PositionEmbedder
        "lnf_g": jnp.ones((HID,), jnp.float32),
        "lnf_b": jnp.zeros((HID,), jnp.float32),
        "layers": [],
    }
    for _ in range(N_LAYERS):
        params["layers"].append({
            "ln1_g": jnp.ones((HID,), jnp.float32),
            "ln1_b": jnp.zeros((HID,), jnp.float32),
            "w_qkv": nrm(next(keys), (HID, 3 * HID)),
            "b_qkv": jnp.zeros((3 * HID,), jnp.float32),
            "w_o": nrm(next(keys), (HID, HID)),
            "b_o": jnp.zeros((HID,), jnp.float32),
            "ln2_g": jnp.ones((HID,), jnp.float32),
            "ln2_b": jnp.zeros((HID,), jnp.float32),
            "w_fc1": nrm(next(keys), (HID, FFN)),
            "b_fc1": jnp.zeros((FFN,), jnp.float32),
            "w_fc2": nrm(next(keys), (FFN, HID)),
            "b_fc2": jnp.zeros((HID,), jnp.float32),
        })
    return params


def pack_params(params):
    """Repack parameters (once, outside the decode loop) into stacked,
    head-split tensors consumed by the fused kernel."""
    wq, wk, wv, bqkv, wo, wfc1, bfc1, wfc2, vec = [], [], [], [], [], [], [], [], []
    for lp in params["layers"]:
        wqkv = lp["w_qkv"]                               # (H, 3H)
        split_heads = lambda w: w.reshape(HID, N_HEADS, HEAD_DIM).transpose(1, 0, 2)
        wq.append(split_heads(wqkv[:, 0 * HID:1 * HID]))  # (NH, H, HD)
        wk.append(split_heads(wqkv[:, 1 * HID:2 * HID]))
        wv.append(split_heads(wqkv[:, 2 * HID:3 * HID]))
        bqkv.append(lp["b_qkv"].reshape(3 * N_HEADS, HEAD_DIM))
        wo.append(lp["w_o"].reshape(N_HEADS, HEAD_DIM, HID))
        wfc1.append(lp["w_fc1"])
        bfc1.append(lp["b_fc1"])
        wfc2.append(lp["w_fc2"])
        vec.append(jnp.stack([lp["ln1_g"], lp["ln1_b"], lp["b_o"],
                              lp["ln2_g"], lp["ln2_b"], lp["b_fc2"]]))
    wte_pad = jnp.zeros((VOCAB_PAD, HID), jnp.float32).at[:VOCAB].set(params["wte"])
    return {
        "wte": params["wte"],
        "wpe": params["wpe"],
        "wq": jnp.concatenate(wq, axis=0),               # (L*NH, H, HD)
        "wk": jnp.concatenate(wk, axis=0),
        "wv": jnp.concatenate(wv, axis=0),
        "bqkv": jnp.concatenate(bqkv, axis=0),           # (L*3*NH, HD)
        "wo": jnp.concatenate(wo, axis=0),               # (L*NH, HD, H)
        "wfc1": jnp.stack(wfc1),                         # (L, H, FFN)
        "bfc1": jnp.stack(bfc1),                         # (L, FFN)
        "wfc2": jnp.stack(wfc2),                         # (L, FFN, H)
        "vec": jnp.stack(vec),                           # (L, 6, H)
        "lnf": jnp.stack([params["lnf_g"], params["lnf_b"]]),   # (2, H)
        "wte_t": wte_pad.T,                              # (H, VOCAB_PAD), pre-transposed
    }


# ----------------------------- model / decoding ------------------------------
def gpt2_logits(kp, tokens):
    """Embed tokens, run fused decoder+logits Pallas kernel: (B, S, VOCAB_PAD)."""
    B, S = tokens.shape
    x = kp["wte"][tokens] + kp["wpe"][:S][None, :, :]
    return gpt2_fused_call(x, kp)


def top_k_sample(logits, key, top_k, temperature):
    vals, idx = lax.top_k(logits / temperature, top_k)
    choice = jax.random.categorical(key, vals, axis=-1)            # (B,)
    return jnp.take_along_axis(idx, choice[:, None], axis=-1)[:, 0]


@functools.partial(jax.jit, static_argnames=("end_token", "ctx_len", "max_len"))
def gpt2_generate(kp, context, rng, *, end_token, ctx_len, max_len):
    """TopKSampleEmbeddingHelper-style decoding with a forced context prefix,
    run as a single jitted lax.fori_loop (one fused pallas_call per step)."""
    # TODO(synk): per-example context_sequence_length forcing and a KV-cache
    # for incremental (last-position-only) decoding; full-sequence recompute is
    # fine at these toy shapes.
    B = context.shape[0]
    tokens = jnp.full((B, max_len), end_token, dtype=jnp.int32)
    tokens = tokens.at[:, :ctx_len].set(context[:, :ctx_len])
    finished = jnp.zeros((B,), dtype=bool)
    vocab_mask = jnp.arange(VOCAB_PAD) < VOCAB        # mask the lane padding

    def step(t, carry):
        tokens, finished, rng = carry
        logits = gpt2_logits(kp, tokens)              # (B, T, VOCAB_PAD)
        step_logits = lax.dynamic_slice_in_dim(logits, t - 1, 1, axis=1)[:, 0, :]
        step_logits = jnp.where(vocab_mask, step_logits, NEG_INF)
        rng, sub = jax.random.split(rng)
        nxt = top_k_sample(step_logits, sub, TOP_K, TEMPERATURE)
        nxt = jnp.where(finished, end_token, nxt).astype(jnp.int32)
        tokens = lax.dynamic_update_slice(tokens, nxt[:, None], (0, t))
        finished = finished | (nxt == end_token)
        return tokens, finished, rng

    tokens, finished, rng = lax.fori_loop(ctx_len, max_len, step,
                                          (tokens, finished, rng))
    return tokens                                     # sample ids (B, T)


# ----------------------------- main -------------------------------------------
if __name__ == "__main__":
    root = jax.random.PRNGKey(0)
    k_param, k_ctx, k_samp = jax.random.split(root, 3)

    params = init_params(k_param)
    kp = pack_params(params)                          # one-time repack

    B = 2
    CTX_LEN = 4
    MAX_DECODING_LENGTH = 8
    END_TOKEN = 1

    # context tokens (avoid end_token inside the context)
    context = jax.random.randint(k_ctx, (B, CTX_LEN), 2, VOCAB, dtype=jnp.int32)
    start_tokens = context[:, 0]      # covered by the forced context prefix

    sample_ids = gpt2_generate(kp, context, k_samp, end_token=END_TOKEN,
                               ctx_len=CTX_LEN, max_len=MAX_DECODING_LENGTH)
    sample_ids = jax.block_until_ready(sample_ids)
    assert sample_ids.shape == (B, MAX_DECODING_LENGTH)
    print("KERNEL_OK")
</pallas_src>

<mosaic_0001>
module attributes {stable_mosaic.version = 11 : i64} {
  func.func @gpt2_fused_kernel(%arg0: memref<2x8x32xf32, #tpu.memory_space<vmem>>, %arg1: memref<8x32x8xf32, #tpu.memory_space<vmem>>, %arg2: memref<8x32x8xf32, #tpu.memory_space<vmem>>, %arg3: memref<8x32x8xf32, #tpu.memory_space<vmem>>, %arg4: memref<24x8xf32, #tpu.memory_space<vmem>>, %arg5: memref<8x8x32xf32, #tpu.memory_space<vmem>>, %arg6: memref<2x32x128xf32, #tpu.memory_space<vmem>>, %arg7: memref<2x128xf32, #tpu.memory_space<vmem>>, %arg8: memref<2x128x32xf32, #tpu.memory_space<vmem>>, %arg9: memref<2x6x32xf32, #tpu.memory_space<vmem>>, %arg10: memref<2x32xf32, #tpu.memory_space<vmem>>, %arg11: memref<32x128xf32, #tpu.memory_space<vmem>>, %arg12: memref<2x8x128xf32, #tpu.memory_space<vmem>>) attributes {dimension_semantics = [], scalar_prefetch = 0 : i64, scratch_operands = 0 : i64, tpu.core_type = #tpu.core_type<tc>} {
    %c0 = arith.constant 0 : index
    %c0_0 = arith.constant 0 : index
    %c0_1 = arith.constant 0 : index
    %0 = vector.load %arg0[%c0, %c0_0, %c0_1] : memref<2x8x32xf32, #tpu.memory_space<vmem>>, vector<2x8x32xf32>
    %1 = vector.shape_cast %0 : vector<2x8x32xf32> to vector<16x32xf32>
    %2 = tpu.iota {dimensions = array<i32: 1>} : vector<2x8x8xi32>
    %3 = tpu.iota {dimensions = array<i32: 2>} : vector<2x8x8xi32>
    %4 = arith.cmpi sle, %3, %2 : vector<2x8x8xi32>
    %c0_2 = arith.constant 0 : index
    %c0_3 = arith.constant 0 : index
    %c0_4 = arith.constant 0 : index
    %5 = vector.load %arg9[%c0_2, %c0_3, %c0_4] : memref<2x6x32xf32, #tpu.memory_space<vmem>>, vector<1x6x32xf32>
    %6 = vector.shape_cast %5 : vector<1x6x32xf32> to vector<6x32xf32>
    %7 = vector.extract_strided_slice %6 {offsets = [0, 0], sizes = [1, 32], strides = [1, 1]} : vector<6x32xf32> to vector<1x32xf32>
    %8 = vector.shape_cast %7 : vector<1x32xf32> to vector<32xf32>
    %9 = vector.extract_strided_slice %6 {offsets = [1, 0], sizes = [1, 32], strides = [1, 1]} : vector<6x32xf32> to vector<1x32xf32>
    %10 = vector.shape_cast %9 : vector<1x32xf32> to vector<32xf32>
    %cst = arith.constant dense<0.000000e+00> : vector<16xf32>
    %11 = vector.multi_reduction <add>, %1, %cst [1] : vector<16x32xf32> to vector<16xf32>
    %12 = vector.shape_cast %11 : vector<16xf32> to vector<16x1xf32>
    %cst_5 = arith.constant 3.200000e+01 : f32
    %13 = vector.broadcast %cst_5 : f32 to vector<16x1xf32>
    %14 = arith.divf %12, %13 : vector<16x1xf32>
    %15 = vector.broadcast %14 : vector<16x1xf32> to vector<16x32xf32>
    %16 = arith.subf %1, %15 : vector<16x32xf32>
    %17 = arith.mulf %16, %16 : vector<16x32xf32>
    %cst_6 = arith.constant dense<0.000000e+00> : vector<16xf32>
    %18 = vector.multi_reduction <add>, %17, %cst_6 [1] : vector<16x32xf32> to vector<16xf32>
    %19 = vector.shape_cast %18 : vector<16xf32> to vector<16x1xf32>
    %cst_7 = arith.constant 3.200000e+01 : f32
    %20 = vector.broadcast %cst_7 : f32 to vector<16x1xf32>
    %21 = arith.divf %19, %20 : vector<16x1xf32>
    %22 = vector.broadcast %14 : vector<16x1xf32> to vector<16x32xf32>
    %23 = arith.subf %1, %22 : vector<16x32xf32>
    %cst_8 = arith.constant 9.99999974E-6 : f32
    %24 = vector.broadcast %cst_8 : f32 to vector<16x1xf32>
    %25 = arith.addf %21, %24 : vector<16x1xf32>
    %26 = math.rsqrt %25 : vector<16x1xf32>
    %27 = vector.broadcast %26 : vector<16x1xf32> to vector<16x32xf32>
    %28 = arith.mulf %23, %27 : vector<16x32xf32>
    %29 = vector.shape_cast %8 : vector<32xf32> to vector<1x32xf32>
    %30 = vector.broadcast %29 : vector<1x32xf32> to vector<16x32xf32>
    %31 = arith.mulf %28, %30 : vector<16x32xf32>
    %32 = vector.shape_cast %10 : vector<32xf32> to vector<1x32xf32>
    %33 = vector.broadcast %32 : vector<1x32xf32> to vector<16x32xf32>
    %34 = arith.addf %31, %33 : vector<16x32xf32>
    %cst_9 = arith.constant 0.000000e+00 : f32
    %35 = vector.broadcast %cst_9 : f32 to vector<16x32xf32>
    %c0_10 = arith.constant 0 : index
    %c0_11 = arith.constant 0 : index
    %c0_12 = arith.constant 0 : index
    %36 = vector.load %arg1[%c0_10, %c0_11, %c0_12] : memref<8x32x8xf32, #tpu.memory_space<vmem>>, vector<1x32x8xf32>
    %37 = vector.shape_cast %36 : vector<1x32x8xf32> to vector<32x8xf32>
    %cst_13 = arith.constant dense<0.000000e+00> : vector<16x8xf32>
    %38 = tpu.matmul %34, %37, %cst_13 {dimension_numbers = #tpu.dot_dimension_numbers<[1], [0], [0], [1], [0, 0, 1, 1], [], []>} : vector<16x32xf32>, vector<32x8xf32>, vector<16x8xf32> -> vector<16x8xf32>
    %c0_14 = arith.constant 0 : index
    %c0_15 = arith.constant 0 : index
    %39 = vector.load %arg4[%c0_14, %c0_15] : memref<24x8xf32, #tpu.memory_space<vmem>>, vector<1x8xf32>
    %40 = vector.shape_cast %39 : vector<1x8xf32> to vector<8xf32>
    %41 = vector.shape_cast %40 : vector<8xf32> to vector<1x8xf32>
    %42 = vector.broadcast %41 : vector<1x8xf32> to vector<16x8xf32>
    %43 = arith.addf %38, %42 : vector<16x8xf32>
    %c0_16 = arith.constant 0 : index
    %c0_17 = arith.constant 0 : index
    %c0_18 = arith.constant 0 : index
    %44 = vector.load %arg2[%c0_16, %c0_17, %c0_18] : memref<8x32x8xf32, #tpu.memory_space<vmem>>, vector<1x32x8xf32>
    %45 = vector.shape_cast %44 : vector<1x32x8xf32> to vector<32x8xf32>
    %cst_19 = arith.constant dense<0.000000e+00> : vector<16x8xf32>
    %46 = tpu.matmul %34, %45, %cst_19 {dimension_numbers = #tpu.dot_dimension_numbers<[1], [0], [0], [1], [0, 0, 1, 1], [], []>} : vector<16x32xf32>, vector<32x8xf32>, vector<16x8xf32> -> vector<16x8xf32>
    %c4 = arith.constant 4 : index
    %c0_20 = arith.constant 0 : index
    %47 = vector.load %arg4[%c4, %c0_20] : memref<24x8xf32, #tpu.memory_space<vmem>>, vector<1x8xf32>
    %48 = vector.shape_cast %47 : vector<1x8xf32> to vector<8xf32>
    %49 = vector.shape_cast %48 : vector<8xf32> to vector<1x8xf32>
    %50 = vector.broadcast %49 : vector<1x8xf32> to vector<16x8xf32>
    %51 = arith.addf %46, %50 : vector<16x8xf32>
    %c0_21 = arith.constant 0 : index
    %c0_22 = arith.constant 0 : index
    %c0_23 = arith.constant 0 : index
    %52 = vector.load %arg3[%c0_21, %c0_22, %c0_23] : memref<8x32x8xf32, #tpu.memory_space<vmem>>, vector<1x32x8xf32>
    %53 = vector.shape_cast %52 : vector<1x32x8xf32> to vector<32x8xf32>
    %cst_24 = arith.constant dense<0.000000e+00> : vector<16x8xf32>
    %54 = tpu.matmul %34, %53, %cst_24 {dimension_numbers = #tpu.dot_dimension_numbers<[1], [0], [0], [1], [0, 0, 1, 1], [], []>} : vector<16x32xf32>, vector<32x8xf32>, vector<16x8xf32> -> vector<16x8xf32>
    %c8 = arith.constant 8 : index
    %c0_25 = arith.constant 0 : index
    %55 = vector.load %arg4[%c8, %c0_25] : memref<24x8xf32, #tpu.memory_space<vmem>>, vector<1x8xf32>
    %56 = vector.shape_cast %55 : vector<1x8xf32> to vector<8xf32>
    %57 = vector.shape_cast %56 : vector<8xf32> to vector<1x8xf32>
    %58 = vector.broadcast %57 : vector<1x8xf32> to vector<16x8xf32>
    %59 = arith.addf %54, %58 : vector<16x8xf32>
    %60 = vector.shape_cast %43 : vector<16x8xf32> to vector<2x8x8xf32>
    %61 = vector.shape_cast %51 : vector<16x8xf32> to vector<2x8x8xf32>
    %62 = vector.shape_cast %59 : vector<16x8xf32> to vector<2x8x8xf32>
    "tpu.trace_start"() <{level = 10 : i32, message = "bqd,bkd->bqk"}> : () -> ()
    %cst_26 = arith.constant dense<0.000000e+00> : vector<2x8x8xf32>
    %63 = tpu.matmul %60, %61, %cst_26 {dimension_numbers = #tpu.dot_dimension_numbers<[2], [2], [1], [1], [0, 0, 0, 1, 1, 1], [0], [0]>} : vector<2x8x8xf32>, vector<2x8x8xf32>, vector<2x8x8xf32> -> vector<2x8x8xf32>
    "tpu.trace_stop"() : () -> ()
    %cst_27 = arith.constant 0.353553385 : f32
    %64 = vector.broadcast %cst_27 : f32 to vector<2x8x8xf32>
    %65 = arith.mulf %63, %64 : vector<2x8x8xf32>
    %cst_28 = arith.constant -1.000000e+30 : f32
    %66 = vector.broadcast %cst_28 : f32 to vector<2x8x8xf32>
    %67 = arith.select %4, %65, %66 : vector<2x8x8xi1>, vector<2x8x8xf32>
    %cst_29 = arith.constant dense<0xFF800000> : vector<2x8xf32>
    %68 = vector.multi_reduction <maximumf>, %67, %cst_29 [2] : vector<2x8x8xf32> to vector<2x8xf32>
    %cst_30 = arith.constant 0xFF800000 : f32
    %69 = vector.broadcast %cst_30 : f32 to vector<2x8xf32>
    %70 = arith.maximumf %69, %68 : vector<2x8xf32>
    %71 = vector.shape_cast %70 : vector<2x8xf32> to vector<2x8x1xf32>
    %72 = vector.broadcast %71 : vector<2x8x1xf32> to vector<2x8x8xf32>
    %73 = arith.subf %67, %72 : vector<2x8x8xf32>
    %74 = math.exp %73 : vector<2x8x8xf32>
    %cst_31 = arith.constant dense<0.000000e+00> : vector<2x8xf32>
    %75 = vector.multi_reduction <add>, %74, %cst_31 [2] : vector<2x8x8xf32> to vector<2x8xf32>
    %76 = vector.shape_cast %75 : vector<2x8xf32> to vector<2x8x1xf32>
    %77 = vector.broadcast %76 : vector<2x8x1xf32> to vector<2x8x8xf32>
    %78 = arith.divf %74, %77 : vector<2x8x8xf32>
    "tpu.trace_start"() <{level = 10 : i32, message = "bqk,bkd->bqd"}> : () -> ()
    %cst_32 = arith.constant dense<0.000000e+00> : vector<2x8x8xf32>
    %79 = tpu.matmul %78, %62, %cst_32 {dimension_numbers = #tpu.dot_dimension_numbers<[2], [1], [1], [2], [0, 0, 0, 1, 1, 2], [0], [0]>} : vector<2x8x8xf32>, vector<2x8x8xf32>, vector<2x8x8xf32> -> vector<2x8x8xf32>
    "tpu.trace_stop"() : () -> ()
    %80 = vector.shape_cast %79 : vector<2x8x8xf32> to vector<16x8xf32>
    %c0_33 = arith.constant 0 : index
    %c0_34 = arith.constant 0 : index
    %c0_35 = arith.constant 0 : index
    %81 = vector.load %arg5[%c0_33, %c0_34, %c0_35] : memref<8x8x32xf32, #tpu.memory_space<vmem>>, vector<1x8x32xf32>
    %82 = vector.shape_cast %81 : vector<1x8x32xf32> to vector<8x32xf32>
    %cst_36 = arith.constant dense<0.000000e+00> : vector<16x32xf32>
    %83 = tpu.matmul %80, %82, %cst_36 {dimension_numbers = #tpu.dot_dimension_numbers<[1], [0], [0], [1], [0, 0, 1, 1], [], []>} : vector<16x8xf32>, vector<8x32xf32>, vector<16x32xf32> -> vector<16x32xf32>
    %84 = arith.addf %35, %83 : vector<16x32xf32>
    %c1 = arith.constant 1 : index
    %c0_37 = arith.constant 0 : index
    %c0_38 = arith.constant 0 : index
    %85 = vector.load %arg1[%c1, %c0_37, %c0_38] : memref<8x32x8xf32, #tpu.memory_space<vmem>>, vector<1x32x8xf32>
    %86 = vector.shape_cast %85 : vector<1x32x8xf32> to vector<32x8xf32>
    %cst_39 = arith.constant dense<0.000000e+00> : vector<16x8xf32>
    %87 = tpu.matmul %34, %86, %cst_39 {dimension_numbers = #tpu.dot_dimension_numbers<[1], [0], [0], [1], [0, 0, 1, 1], [], []>} : vector<16x32xf32>, vector<32x8xf32>, vector<16x8xf32> -> vector<16x8xf32>
    %c1_40 = arith.constant 1 : index
    %c0_41 = arith.constant 0 : index
    %88 = vector.load %arg4[%c1_40, %c0_41] : memref<24x8xf32, #tpu.memory_space<vmem>>, vector<1x8xf32>
    %89 = vector.shape_cast %88 : vector<1x8xf32> to vector<8xf32>
    %90 = vector.shape_cast %89 : vector<8xf32> to vector<1x8xf32>
    %91 = vector.broadcast %90 : vector<1x8xf32> to vector<16x8xf32>
    %92 = arith.addf %87, %91 : vector<16x8xf32>
    %c1_42 = arith.constant 1 : index
    %c0_43 = arith.constant 0 : index
    %c0_44 = arith.constant 0 : index
    %93 = vector.load %arg2[%c1_42, %c0_43, %c0_44] : memref<8x32x8xf32, #tpu.memory_space<vmem>>, vector<1x32x8xf32>
    %94 = vector.shape_cast %93 : vector<1x32x8xf32> to vector<32x8xf32>
    %cst_45 = arith.constant dense<0.000000e+00> : vector<16x8xf32>
    %95 = tpu.matmul %34, %94, %cst_45 {dimension_numbers = #tpu.dot_dimension_numbers<[1], [0], [0], [1], [0, 0, 1, 1], [], []>} : vector<16x32xf32>, vector<32x8xf32>, vector<16x8xf32> -> vector<16x8xf32>
    %c5 = arith.constant 5 : index
    %c0_46 = arith.constant 0 : index
    %96 = vector.load %arg4[%c5, %c0_46] : memref<24x8xf32, #tpu.memory_space<vmem>>, vector<1x8xf32>
    %97 = vector.shape_cast %96 : vector<1x8xf32> to vector<8xf32>
    %98 = vector.shape_cast %97 : vector<8xf32> to vector<1x8xf32>
    %99 = vector.broadcast %98 : vector<1x8xf32> to vector<16x8xf32>
    %100 = arith.addf %95, %99 : vector<16x8xf32>
    %c1_47 = arith.constant 1 : index
    %c0_48 = arith.constant 0 : index
    %c0_49 = arith.constant 0 : index
    %101 = vector.load %arg3[%c1_47, %c0_48, %c0_49] : memref<8x32x8xf32, #tpu.memory_space<vmem>>, vector<1x32x8xf32>
    %102 = vector.shape_cast %101 : vector<1x32x8xf32> to vector<32x8xf32>
    %cst_50 = arith.constant dense<0.000000e+00> : vector<16x8xf32>
    %103 = tpu.matmul %34, %102, %cst_50 {dimension_numbers = #tpu.dot_dimension_numbers<[1], [0], [0], [1], [0, 0, 1, 1], [], []>} : vector<16x32xf32>, vector<32x8xf32>, vector<16x8xf32> -> vector<16x8xf32>
    %c9 = arith.constant 9 : index
    %c0_51 = arith.constant 0 : index
    %104 = vector.load %arg4[%c9, %c0_51] : memref<24x8xf32, #tpu.memory_space<vmem>>, vector<1x8xf32>
    %105 = vector.shape_cast %104 : vector<1x8xf32> to vector<8xf32>
    %106 = vector.shape_cast %105 : vector<8xf32> to vector<1x8xf32>
    %107 = vector.broadcast %106 : vector<1x8xf32> to vector<16x8xf32>
    %108 = arith.addf %103, %107 : vector<16x8xf32>
    %109 = vector.shape_cast %92 : vector<16x8xf32> to vector<2x8x8xf32>
    %110 = vector.shape_cast %100 : vector<16x8xf32> to vector<2x8x8xf32>
    %111 = vector.shape_cast %108 : vector<16x8xf32> to vector<2x8x8xf32>
    "tpu.trace_start"() <{level = 10 : i32, message = "bqd,bkd->bqk"}> : () -> ()
    %cst_52 = arith.constant dense<0.000000e+00> : vector<2x8x8xf32>
    %112 = tpu.matmul %109, %110, %cst_52 {dimension_numbers = #tpu.dot_dimension_numbers<[2], [2], [1], [1], [0, 0, 0, 1, 1, 1], [0], [0]>} : vector<2x8x8xf32>, vector<2x8x8xf32>, vector<2x8x8xf32> -> vector<2x8x8xf32>
    "tpu.trace_stop"() : () -> ()
    %cst_53 = arith.constant 0.353553385 : f32
    %113 = vector.broadcast %cst_53 : f32 to vector<2x8x8xf32>
    %114 = arith.mulf %112, %113 : vector<2x8x8xf32>
    %cst_54 = arith.constant -1.000000e+30 : f32
    %115 = vector.broadcast %cst_54 : f32 to vector<2x8x8xf32>
    %116 = arith.select %4, %114, %115 : vector<2x8x8xi1>, vector<2x8x8xf32>
    %cst_55 = arith.constant dense<0xFF800000> : vector<2x8xf32>
    %117 = vector.multi_reduction <maximumf>, %116, %cst_55 [2] : vector<2x8x8xf32> to vector<2x8xf32>
    %cst_56 = arith.constant 0xFF800000 : f32
    %118 = vector.broadcast %cst_56 : f32 to vector<2x8xf32>
    %119 = arith.maximumf %118, %117 : vector<2x8xf32>
    %120 = vector.shape_cast %119 : vector<2x8xf32> to vector<2x8x1xf32>
    %121 = vector.broadcast %120 : vector<2x8x1xf32> to vector<2x8x8xf32>
    %122 = arith.subf %116, %121 : vector<2x8x8xf32>
    %123 = math.exp %122 : vector<2x8x8xf32>
    %cst_57 = arith.constant dense<0.000000e+00> : vector<2x8xf32>
    %124 = vector.multi_reduction <add>, %123, %cst_57 [2] : vector<2x8x8xf32> to vector<2x8xf32>
    %125 = vector.shape_cast %124 : vector<2x8xf32> to vector<2x8x1xf32>
    %126 = vector.broadcast %125 : vector<2x8x1xf32> to vector<2x8x8xf32>
    %127 = arith.divf %123, %126 : vector<2x8x8xf32>
    "tpu.trace_start"() <{level = 10 : i32, message = "bqk,bkd->bqd"}> : () -> ()
    %cst_58 = arith.constant dense<0.000000e+00> : vector<2x8x8xf32>
    %128 = tpu.matmul %127, %111, %cst_58 {dimension_numbers = #tpu.dot_dimension_numbers<[2], [1], [1], [2], [0, 0, 0, 1, 1, 2], [0], [0]>} : vector<2x8x8xf32>, vector<2x8x8xf32>, vector<2x8x8xf32> -> vector<2x8x8xf32>
    "tpu.trace_stop"() : () -> ()
    %129 = vector.shape_cast %128 : vector<2x8x8xf32> to vector<16x8xf32>
    %c1_59 = arith.constant 1 : index
    %c0_60 = arith.constant 0 : index
    %c0_61 = arith.constant 0 : index
    %130 = vector.load %arg5[%c1_59, %c0_60, %c0_61] : memref<8x8x32xf32, #tpu.memory_space<vmem>>, vector<1x8x32xf32>
    %131 = vector.shape_cast %130 : vector<1x8x32xf32> to vector<8x32xf32>
    %cst_62 = arith.constant dense<0.000000e+00> : vector<16x32xf32>
    %132 = tpu.matmul %129, %131, %cst_62 {dimension_numbers = #tpu.dot_dimension_numbers<[1], [0], [0], [1], [0, 0, 1, 1], [], []>} : vector<16x8xf32>, vector<8x32xf32>, vector<16x32xf32> -> vector<16x32xf32>
    %133 = arith.addf %84, %132 : vector<16x32xf32>
    %c2 = arith.constant 2 : index
    %c0_63 = arith.constant 0 : index
    %c0_64 = arith.constant 0 : index
    %134 = vector.load %arg1[%c2, %c0_63, %c0_64] : memref<8x32x8xf32, #tpu.memory_space<vmem>>, vector<1x32x8xf32>
    %135 = vector.shape_cast %134 : vector<1x32x8xf32> to vector<32x8xf32>
    %cst_65 = arith.constant dense<0.000000e+00> : vector<16x8xf32>
    %136 = tpu.matmul %34, %135, %cst_65 {dimension_numbers = #tpu.dot_dimension_numbers<[1], [0], [0], [1], [0, 0, 1, 1], [], []>} : vector<16x32xf32>, vector<32x8xf32>, vector<16x8xf32> -> vector<16x8xf32>
    %c2_66 = arith.constant 2 : index
    %c0_67 = arith.constant 0 : index
    %137 = vector.load %arg4[%c2_66, %c0_67] : memref<24x8xf32, #tpu.memory_space<vmem>>, vector<1x8xf32>
    %138 = vector.shape_cast %137 : vector<1x8xf32> to vector<8xf32>
    %139 = vector.shape_cast %138 : vector<8xf32> to vector<1x8xf32>
    %140 = vector.broadcast %139 : vector<1x8xf32> to vector<16x8xf32>
    %141 = arith.addf %136, %140 : vector<16x8xf32>
    %c2_68 = arith.constant 2 : index
    %c0_69 = arith.constant 0 : index
    %c0_70 = arith.constant 0 : index
    %142 = vector.load %arg2[%c2_68, %c0_69, %c0_70] : memref<8x32x8xf32, #tpu.memory_space<vmem>>, vector<1x32x8xf32>
    %143 = vector.shape_cast %142 : vector<1x32x8xf32> to vector<32x8xf32>
    %cst_71 = arith.constant dense<0.000000e+00> : vector<16x8xf32>
    %144 = tpu.matmul %34, %143, %cst_71 {dimension_numbers = #tpu.dot_dimension_numbers<[1], [0], [0], [1], [0, 0, 1, 1], [], []>} : vector<16x32xf32>, vector<32x8xf32>, vector<16x8xf32> -> vector<16x8xf32>
    %c6 = arith.constant 6 : index
    %c0_72 = arith.constant 0 : index
    %145 = vector.load %arg4[%c6, %c0_72] : memref<24x8xf32, #tpu.memory_space<vmem>>, vector<1x8xf32>
    %146 = vector.shape_cast %145 : vector<1x8xf32> to vector<8xf32>
    %147 = vector.shape_cast %146 : vector<8xf32> to vector<1x8xf32>
    %148 = vector.broadcast %147 : vector<1x8xf32> to vector<16x8xf32>
    %149 = arith.addf %144, %148 : vector<16x8xf32>
    %c2_73 = arith.constant 2 : index
    %c0_74 = arith.constant 0 : index
    %c0_75 = arith.constant 0 : index
    %150 = vector.load %arg3[%c2_73, %c0_74, %c0_75] : memref<8x32x8xf32, #tpu.memory_space<vmem>>, vector<1x32x8xf32>
    %151 = vector.shape_cast %150 : vector<1x32x8xf32> to vector<32x8xf32>
    %cst_76 = arith.constant dense<0.000000e+00> : vector<16x8xf32>
    %152 = tpu.matmul %34, %151, %cst_76 {dimension_numbers = #tpu.dot_dimension_numbers<[1], [0], [0], [1], [0, 0, 1, 1], [], []>} : vector<16x32xf32>, vector<32x8xf32>, vector<16x8xf32> -> vector<16x8xf32>
    %c10 = arith.constant 10 : index
    %c0_77 = arith.constant 0 : index
    %153 = vector.load %arg4[%c10, %c0_77] : memref<24x8xf32, #tpu.memory_space<vmem>>, vector<1x8xf32>
    %154 = vector.shape_cast %153 : vector<1x8xf32> to vector<8xf32>
    %155 = vector.shape_cast %154 : vector<8xf32> to vector<1x8xf32>
    %156 = vector.broadcast %155 : vector<1x8xf32> to vector<16x8xf32>
    %157 = arith.addf %152, %156 : vector<16x8xf32>
    %158 = vector.shape_cast %141 : vector<16x8xf32> to vector<2x8x8xf32>
    %159 = vector.shape_cast %149 : vector<16x8xf32> to vector<2x8x8xf32>
    %160 = vector.shape_cast %157 : vector<16x8xf32> to vector<2x8x8xf32>
    "tpu.trace_start"() <{level = 10 : i32, message = "bqd,bkd->bqk"}> : () -> ()
    %cst_78 = arith.constant dense<0.000000e+00> : vector<2x8x8xf32>
    %161 = tpu.matmul %158, %159, %cst_78 {dimension_numbers = #tpu.dot_dimension_numbers<[2], [2], [1], [1], [0, 0, 0, 1, 1, 1], [0], [0]>} : vector<2x8x8xf32>, vector<2x8x8xf32>, vector<2x8x8xf32> -> vector<2x8x8xf32>
    "tpu.trace_stop"() : () -> ()
    %cst_79 = arith.constant 0.353553385 : f32
    %162 = vector.broadcast %cst_79 : f32 to vector<2x8x8xf32>
    %163 = arith.mulf %161, %162 : vector<2x8x8xf32>
    %cst_80 = arith.constant -1.000000e+30 : f32
    %164 = vector.broadcast %cst_80 : f32 to vector<2x8x8xf32>
    %165 = arith.select %4, %163, %164 : vector<2x8x8xi1>, vector<2x8x8xf32>
    %cst_81 = arith.constant dense<0xFF800000> : vector<2x8xf32>
    %166 = vector.multi_reduction <maximumf>, %165, %cst_81 [2] : vector<2x8x8xf32> to vector<2x8xf32>
    %cst_82 = arith.constant 0xFF800000 : f32
    %167 = vector.broadcast %cst_82 : f32 to vector<2x8xf32>
    %168 = arith.maximumf %167, %166 : vector<2x8xf32>
    %169 = vector.shape_cast %168 : vector<2x8xf32> to vector<2x8x1xf32>
    %170 = vector.broadcast %169 : vector<2x8x1xf32> to vector<2x8x8xf32>
    %171 = arith.subf %165, %170 : vector<2x8x8xf32>
    %172 = math.exp %171 : vector<2x8x8xf32>
    %cst_83 = arith.constant dense<0.000000e+00> : vector<2x8xf32>
    %173 = vector.multi_reduction <add>, %172, %cst_83 [2] : vector<2x8x8xf32> to vector<2x8xf32>
    %174 = vector.shape_cast %173 : vector<2x8xf32> to vector<2x8x1xf32>
    %175 = vector.broadcast %174 : vector<2x8x1xf32> to vector<2x8x8xf32>
    %176 = arith.divf %172, %175 : vector<2x8x8xf32>
    "tpu.trace_start"() <{level = 10 : i32, message = "bqk,bkd->bqd"}> : () -> ()
    %cst_84 = arith.constant dense<0.000000e+00> : vector<2x8x8xf32>
    %177 = tpu.matmul %176, %160, %cst_84 {dimension_numbers = #tpu.dot_dimension_numbers<[2], [1], [1], [2], [0, 0, 0, 1, 1, 2], [0], [0]>} : vector<2x8x8xf32>, vector<2x8x8xf32>, vector<2x8x8xf32> -> vector<2x8x8xf32>
    "tpu.trace_stop"() : () -> ()
    %178 = vector.shape_cast %177 : vector<2x8x8xf32> to vector<16x8xf32>
    %c2_85 = arith.constant 2 : index
    %c0_86 = arith.constant 0 : index
    %c0_87 = arith.constant 0 : index
    %179 = vector.load %arg5[%c2_85, %c0_86, %c0_87] : memref<8x8x32xf32, #tpu.memory_space<vmem>>, vector<1x8x32xf32>
    %180 = vector.shape_cast %179 : vector<1x8x32xf32> to vector<8x32xf32>
    %cst_88 = arith.constant dense<0.000000e+00> : vector<16x32xf32>
    %181 = tpu.matmul %178, %180, %cst_88 {dimension_numbers = #tpu.dot_dimension_numbers<[1], [0], [0], [1], [0, 0, 1, 1], [], []>} : vector<16x8xf32>, vector<8x32xf32>, vector<16x32xf32> -> vector<16x32xf32>
    %182 = arith.addf %133, %181 : vector<16x32xf32>
    %c3 = arith.constant 3 : index
    %c0_89 = arith.constant 0 : index
    %c0_90 = arith.constant 0 : index
    %183 = vector.load %arg1[%c3, %c0_89, %c0_90] : memref<8x32x8xf32, #tpu.memory_space<vmem>>, vector<1x32x8xf32>
    %184 = vector.shape_cast %183 : vector<1x32x8xf32> to vector<32x8xf32>
    %cst_91 = arith.constant dense<0.000000e+00> : vector<16x8xf32>
    %185 = tpu.matmul %34, %184, %cst_91 {dimension_numbers = #tpu.dot_dimension_numbers<[1], [0], [0], [1], [0, 0, 1, 1], [], []>} : vector<16x32xf32>, vector<32x8xf32>, vector<16x8xf32> -> vector<16x8xf32>
    %c3_92 = arith.constant 3 : index
    %c0_93 = arith.constant 0 : index
    %186 = vector.load %arg4[%c3_92, %c0_93] : memref<24x8xf32, #tpu.memory_space<vmem>>, vector<1x8xf32>
    %187 = vector.shape_cast %186 : vector<1x8xf32> to vector<8xf32>
    %188 = vector.shape_cast %187 : vector<8xf32> to vector<1x8xf32>
    %189 = vector.broadcast %188 : vector<1x8xf32> to vector<16x8xf32>
    %190 = arith.addf %185, %189 : vector<16x8xf32>
    %c3_94 = arith.constant 3 : index
    %c0_95 = arith.constant 0 : index
    %c0_96 = arith.constant 0 : index
    %191 = vector.load %arg2[%c3_94, %c0_95, %c0_96] : memref<8x32x8xf32, #tpu.memory_space<vmem>>, vector<1x32x8xf32>
    %192 = vector.shape_cast %191 : vector<1x32x8xf32> to vector<32x8xf32>
    %cst_97 = arith.constant dense<0.000000e+00> : vector<16x8xf32>
    %193 = tpu.matmul %34, %192, %cst_97 {dimension_numbers = #tpu.dot_dimension_numbers<[1], [0], [0], [1], [0, 0, 1, 1], [], []>} : vector<16x32xf32>, vector<32x8xf32>, vector<16x8xf32> -> vector<16x8xf32>
    %c7 = arith.constant 7 : index
    %c0_98 = arith.constant 0 : index
    %194 = vector.load %arg4[%c7, %c0_98] : memref<24x8xf32, #tpu.memory_space<vmem>>, vector<1x8xf32>
    %195 = vector.shape_cast %194 : vector<1x8xf32> to vector<8xf32>
    %196 = vector.shape_cast %195 : vector<8xf32> to vector<1x8xf32>
    %197 = vector.broadcast %196 : vector<1x8xf32> to vector<16x8xf32>
    %198 = arith.addf %193, %197 : vector<16x8xf32>
    %c3_99 = arith.constant 3 : index
    %c0_100 = arith.constant 0 : index
    %c0_101 = arith.constant 0 : index
    %199 = vector.load %arg3[%c3_99, %c0_100, %c0_101] : memref<8x32x8xf32, #tpu.memory_space<vmem>>, vector<1x32x8xf32>
    %200 = vector.shape_cast %199 : vector<1x32x8xf32> to vector<32x8xf32>
    %cst_102 = arith.constant dense<0.000000e+00> : vector<16x8xf32>
    %201 = tpu.matmul %34, %200, %cst_102 {dimension_numbers = #tpu.dot_dimension_numbers<[1], [0], [0], [1], [0, 0, 1, 1], [], []>} : vector<16x32xf32>, vector<32x8xf32>, vector<16x8xf32> -> vector<16x8xf32>
    %c11 = arith.constant 11 : index
    %c0_103 = arith.constant 0 : index
    %202 = vector.load %arg4[%c11, %c0_103] : memref<24x8xf32, #tpu.memory_space<vmem>>, vector<1x8xf32>
    %203 = vector.shape_cast %202 : vector<1x8xf32> to vector<8xf32>
    %204 = vector.shape_cast %203 : vector<8xf32> to vector<1x8xf32>
    %205 = vector.broadcast %204 : vector<1x8xf32> to vector<16x8xf32>
    %206 = arith.addf %201, %205 : vector<16x8xf32>
    %207 = vector.shape_cast %190 : vector<16x8xf32> to vector<2x8x8xf32>
    %208 = vector.shape_cast %198 : vector<16x8xf32> to vector<2x8x8xf32>
    %209 = vector.shape_cast %206 : vector<16x8xf32> to vector<2x8x8xf32>
    "tpu.trace_start"() <{level = 10 : i32, message = "bqd,bkd->bqk"}> : () -> ()
    %cst_104 = arith.constant dense<0.000000e+00> : vector<2x8x8xf32>
    %210 = tpu.matmul %207, %208, %cst_104 {dimension_numbers = #tpu.dot_dimension_numbers<[2], [2], [1], [1], [0, 0, 0, 1, 1, 1], [0], [0]>} : vector<2x8x8xf32>, vector<2x8x8xf32>, vector<2x8x8xf32> -> vector<2x8x8xf32>
    "tpu.trace_stop"() : () -> ()
    %cst_105 = arith.constant 0.353553385 : f32
    %211 = vector.broadcast %cst_105 : f32 to vector<2x8x8xf32>
    %212 = arith.mulf %210, %211 : vector<2x8x8xf32>
    %cst_106 = arith.constant -1.000000e+30 : f32
    %213 = vector.broadcast %cst_106 : f32 to vector<2x8x8xf32>
    %214 = arith.select %4, %212, %213 : vector<2x8x8xi1>, vector<2x8x8xf32>
    %cst_107 = arith.constant dense<0xFF800000> : vector<2x8xf32>
    %215 = vector.multi_reduction <maximumf>, %214, %cst_107 [2] : vector<2x8x8xf32> to vector<2x8xf32>
    %cst_108 = arith.constant 0xFF800000 : f32
    %216 = vector.broadcast %cst_108 : f32 to vector<2x8xf32>
    %217 = arith.maximumf %216, %215 : vector<2x8xf32>
    %218 = vector.shape_cast %217 : vector<2x8xf32> to vector<2x8x1xf32>
    %219 = vector.broadcast %218 : vector<2x8x1xf32> to vector<2x8x8xf32>
    %220 = arith.subf %214, %219 : vector<2x8x8xf32>
    %221 = math.exp %220 : vector<2x8x8xf32>
    %cst_109 = arith.constant dense<0.000000e+00> : vector<2x8xf32>
    %222 = vector.multi_reduction <add>, %221, %cst_109 [2] : vector<2x8x8xf32> to vector<2x8xf32>
    %223 = vector.shape_cast %222 : vector<2x8xf32> to vector<2x8x1xf32>
    %224 = vector.broadcast %223 : vector<2x8x1xf32> to vector<2x8x8xf32>
    %225 = arith.divf %221, %224 : vector<2x8x8xf32>
    "tpu.trace_start"() <{level = 10 : i32, message = "bqk,bkd->bqd"}> : () -> ()
    %cst_110 = arith.constant dense<0.000000e+00> : vector<2x8x8xf32>
    %226 = tpu.matmul %225, %209, %cst_110 {dimension_numbers = #tpu.dot_dimension_numbers<[2], [1], [1], [2], [0, 0, 0, 1, 1, 2], [0], [0]>} : vector<2x8x8xf32>, vector<2x8x8xf32>, vector<2x8x8xf32> -> vector<2x8x8xf32>
    "tpu.trace_stop"() : () -> ()
    %227 = vector.shape_cast %226 : vector<2x8x8xf32> to vector<16x8xf32>
    %c3_111 = arith.constant 3 : index
    %c0_112 = arith.constant 0 : index
    %c0_113 = arith.constant 0 : index
    %228 = vector.load %arg5[%c3_111, %c0_112, %c0_113] : memref<8x8x32xf32, #tpu.memory_space<vmem>>, vector<1x8x32xf32>
    %229 = vector.shape_cast %228 : vector<1x8x32xf32> to vector<8x32xf32>
    %cst_114 = arith.constant dense<0.000000e+00> : vector<16x32xf32>
    %230 = tpu.matmul %227, %229, %cst_114 {dimension_numbers = #tpu.dot_dimension_numbers<[1], [0], [0], [1], [0, 0, 1, 1], [], []>} : vector<16x8xf32>, vector<8x32xf32>, vector<16x32xf32> -> vector<16x32xf32>
    %231 = arith.addf %182, %230 : vector<16x32xf32>
    %232 = arith.addf %1, %231 : vector<16x32xf32>
    %233 = vector.extract_strided_slice %6 {offsets = [2, 0], sizes = [1, 32], strides = [1, 1]} : vector<6x32xf32> to vector<1x32xf32>
    %234 = vector.shape_cast %233 : vector<1x32xf32> to vector<32xf32>
    %235 = vector.shape_cast %234 : vector<32xf32> to vector<1x32xf32>
    %236 = vector.broadcast %235 : vector<1x32xf32> to vector<16x32xf32>
    %237 = arith.addf %232, %236 : vector<16x32xf32>
    %238 = vector.extract_strided_slice %6 {offsets = [3, 0], sizes = [1, 32], strides = [1, 1]} : vector<6x32xf32> to vector<1x32xf32>
    %239 = vector.shape_cast %238 : vector<1x32xf32> to vector<32xf32>
    %240 = vector.extract_strided_slice %6 {offsets = [4, 0], sizes = [1, 32], strides = [1, 1]} : vector<6x32xf32> to vector<1x32xf32>
    %241 = vector.shape_cast %240 : vector<1x32xf32> to vector<32xf32>
    %cst_115 = arith.constant dense<0.000000e+00> : vector<16xf32>
    %242 = vector.multi_reduction <add>, %237, %cst_115 [1] : vector<16x32xf32> to vector<16xf32>
    %243 = vector.shape_cast %242 : vector<16xf32> to vector<16x1xf32>
    %cst_116 = arith.constant 3.200000e+01 : f32
    %244 = vector.broadcast %cst_116 : f32 to vector<16x1xf32>
    %245 = arith.divf %243, %244 : vector<16x1xf32>
    %246 = vector.broadcast %245 : vector<16x1xf32> to vector<16x32xf32>
    %247 = arith.subf %237, %246 : vector<16x32xf32>
    %248 = arith.mulf %247, %247 : vector<16x32xf32>
    %cst_117 = arith.constant dense<0.000000e+00> : vector<16xf32>
    %249 = vector.multi_reduction <add>, %248, %cst_117 [1] : vector<16x32xf32> to vector<16xf32>
    %250 = vector.shape_cast %249 : vector<16xf32> to vector<16x1xf32>
    %cst_118 = arith.constant 3.200000e+01 : f32
    %251 = vector.broadcast %cst_118 : f32 to vector<16x1xf32>
    %252 = arith.divf %250, %251 : vector<16x1xf32>
    %253 = vector.broadcast %245 : vector<16x1xf32> to vector<16x32xf32>
    %254 = arith.subf %237, %253 : vector<16x32xf32>
    %cst_119 = arith.constant 9.99999974E-6 : f32
    %255 = vector.broadcast %cst_119 : f32 to vector<16x1xf32>
    %256 = arith.addf %252, %255 : vector<16x1xf32>
    %257 = math.rsqrt %256 : vector<16x1xf32>
    %258 = vector.broadcast %257 : vector<16x1xf32> to vector<16x32xf32>
    %259 = arith.mulf %254, %258 : vector<16x32xf32>
    %260 = vector.shape_cast %239 : vector<32xf32> to vector<1x32xf32>
    %261 = vector.broadcast %260 : vector<1x32xf32> to vector<16x32xf32>
    %262 = arith.mulf %259, %261 : vector<16x32xf32>
    %263 = vector.shape_cast %241 : vector<32xf32> to vector<1x32xf32>
    %264 = vector.broadcast %263 : vector<1x32xf32> to vector<16x32xf32>
    %265 = arith.addf %262, %264 : vector<16x32xf32>
    %c0_120 = arith.constant 0 : index
    %c0_121 = arith.constant 0 : index
    %c0_122 = arith.constant 0 : index
    %266 = vector.load %arg6[%c0_120, %c0_121, %c0_122] : memref<2x32x128xf32, #tpu.memory_space<vmem>>, vector<1x32x128xf32>
    %267 = vector.shape_cast %266 : vector<1x32x128xf32> to vector<32x128xf32>
    %cst_123 = arith.constant dense<0.000000e+00> : vector<16x128xf32>
    %268 = tpu.matmul %265, %267, %cst_123 {dimension_numbers = #tpu.dot_dimension_numbers<[1], [0], [0], [1], [0, 0, 1, 1], [], []>} : vector<16x32xf32>, vector<32x128xf32>, vector<16x128xf32> -> vector<16x128xf32>
    %c0_124 = arith.constant 0 : index
    %c0_125 = arith.constant 0 : index
    %269 = vector.load %arg7[%c0_124, %c0_125] : memref<2x128xf32, #tpu.memory_space<vmem>>, vector<1x128xf32>
    %270 = vector.shape_cast %269 : vector<1x128xf32> to vector<128xf32>
    %271 = vector.shape_cast %270 : vector<128xf32> to vector<1x128xf32>
    %272 = vector.broadcast %271 : vector<1x128xf32> to vector<16x128xf32>
    %273 = arith.addf %268, %272 : vector<16x128xf32>
    %274 = arith.mulf %273, %273 : vector<16x128xf32>
    %275 = arith.mulf %273, %274 : vector<16x128xf32>
    %cst_126 = arith.constant 4.471500e-02 : f32
    %276 = vector.broadcast %cst_126 : f32 to vector<16x128xf32>
    %277 = arith.mulf %276, %275 : vector<16x128xf32>
    %278 = arith.addf %273, %277 : vector<16x128xf32>
    %cst_127 = arith.constant 0.797884583 : f32
    %279 = vector.broadcast %cst_127 : f32 to vector<16x128xf32>
    %280 = arith.mulf %279, %278 : vector<16x128xf32>
    %281 = math.tanh %280 : vector<16x128xf32>
    %cst_128 = arith.constant 1.000000e+00 : f32
    %282 = vector.broadcast %cst_128 : f32 to vector<16x128xf32>
    %283 = arith.addf %282, %281 : vector<16x128xf32>
    %cst_129 = arith.constant 5.000000e-01 : f32
    %284 = vector.broadcast %cst_129 : f32 to vector<16x128xf32>
    %285 = arith.mulf %284, %283 : vector<16x128xf32>
    %286 = arith.mulf %273, %285 : vector<16x128xf32>
    %c0_130 = arith.constant 0 : index
    %c0_131 = arith.constant 0 : index
    %c0_132 = arith.constant 0 : index
    %287 = vector.load %arg8[%c0_130, %c0_131, %c0_132] : memref<2x128x32xf32, #tpu.memory_space<vmem>>, vector<1x128x32xf32>
    %288 = vector.shape_cast %287 : vector<1x128x32xf32> to vector<128x32xf32>
    %cst_133 = arith.constant dense<0.000000e+00> : vector<16x32xf32>
    %289 = tpu.matmul %286, %288, %cst_133 {dimension_numbers = #tpu.dot_dimension_numbers<[1], [0], [0], [1], [0, 0, 1, 1], [], []>} : vector<16x128xf32>, vector<128x32xf32>, vector<16x32xf32> -> vector<16x32xf32>
    %290 = vector.extract_strided_slice %6 {offsets = [5, 0], sizes = [1, 32], strides = [1, 1]} : vector<6x32xf32> to vector<1x32xf32>
    %291 = vector.shape_cast %290 : vector<1x32xf32> to vector<32xf32>
    %292 = vector.shape_cast %291 : vector<32xf32> to vector<1x32xf32>
    %293 = vector.broadcast %292 : vector<1x32xf32> to vector<16x32xf32>
    %294 = arith.addf %289, %293 : vector<16x32xf32>
    %295 = arith.addf %237, %294 : vector<16x32xf32>
    %c1_134 = arith.constant 1 : index
    %c0_135 = arith.constant 0 : index
    %c0_136 = arith.constant 0 : index
    %296 = vector.load %arg9[%c1_134, %c0_135, %c0_136] : memref<2x6x32xf32, #tpu.memory_space<vmem>>, vector<1x6x32xf32>
    %297 = vector.shape_cast %296 : vector<1x6x32xf32> to vector<6x32xf32>
    %298 = vector.extract_strided_slice %297 {offsets = [0, 0], sizes = [1, 32], strides = [1, 1]} : vector<6x32xf32> to vector<1x32xf32>
    %299 = vector.shape_cast %298 : vector<1x32xf32> to vector<32xf32>
    %300 = vector.extract_strided_slice %297 {offsets = [1, 0], sizes = [1, 32], strides = [1, 1]} : vector<6x32xf32> to vector<1x32xf32>
    %301 = vector.shape_cast %300 : vector<1x32xf32> to vector<32xf32>
    %cst_137 = arith.constant dense<0.000000e+00> : vector<16xf32>
    %302 = vector.multi_reduction <add>, %295, %cst_137 [1] : vector<16x32xf32> to vector<16xf32>
    %303 = vector.shape_cast %302 : vector<16xf32> to vector<16x1xf32>
    %cst_138 = arith.constant 3.200000e+01 : f32
    %304 = vector.broadcast %cst_138 : f32 to vector<16x1xf32>
    %305 = arith.divf %303, %304 : vector<16x1xf32>
    %306 = vector.broadcast %305 : vector<16x1xf32> to vector<16x32xf32>
    %307 = arith.subf %295, %306 : vector<16x32xf32>
    %308 = arith.mulf %307, %307 : vector<16x32xf32>
    %cst_139 = arith.constant dense<0.000000e+00> : vector<16xf32>
    %309 = vector.multi_reduction <add>, %308, %cst_139 [1] : vector<16x32xf32> to vector<16xf32>
    %310 = vector.shape_cast %309 : vector<16xf32> to vector<16x1xf32>
    %cst_140 = arith.constant 3.200000e+01 : f32
    %311 = vector.broadcast %cst_140 : f32 to vector<16x1xf32>
    %312 = arith.divf %310, %311 : vector<16x1xf32>
    %313 = vector.broadcast %305 : vector<16x1xf32> to vector<16x32xf32>
    %314 = arith.subf %295, %313 : vector<16x32xf32>
    %cst_141 = arith.constant 9.99999974E-6 : f32
    %315 = vector.broadcast %cst_141 : f32 to vector<16x1xf32>
    %316 = arith.addf %312, %315 : vector<16x1xf32>
    %317 = math.rsqrt %316 : vector<16x1xf32>
    %318 = vector.broadcast %317 : vector<16x1xf32> to vector<16x32xf32>
    %319 = arith.mulf %314, %318 : vector<16x32xf32>
    %320 = vector.shape_cast %299 : vector<32xf32> to vector<1x32xf32>
    %321 = vector.broadcast %320 : vector<1x32xf32> to vector<16x32xf32>
    %322 = arith.mulf %319, %321 : vector<16x32xf32>
    %323 = vector.shape_cast %301 : vector<32xf32> to vector<1x32xf32>
    %324 = vector.broadcast %323 : vector<1x32xf32> to vector<16x32xf32>
    %325 = arith.addf %322, %324 : vector<16x32xf32>
    %cst_142 = arith.constant 0.000000e+00 : f32
    %326 = vector.broadcast %cst_142 : f32 to vector<16x32xf32>
    %c4_143 = arith.constant 4 : index
    %c0_144 = arith.constant 0 : index
    %c0_145 = arith.constant 0 : index
    %327 = vector.load %arg1[%c4_143, %c0_144, %c0_145] : memref<8x32x8xf32, #tpu.memory_space<vmem>>, vector<1x32x8xf32>
    %328 = vector.shape_cast %327 : vector<1x32x8xf32> to vector<32x8xf32>
    %cst_146 = arith.constant dense<0.000000e+00> : vector<16x8xf32>
    %329 = tpu.matmul %325, %328, %cst_146 {dimension_numbers = #tpu.dot_dimension_numbers<[1], [0], [0], [1], [0, 0, 1, 1], [], []>} : vector<16x32xf32>, vector<32x8xf32>, vector<16x8xf32> -> vector<16x8xf32>
    %c12 = arith.constant 12 : index
    %c0_147 = arith.constant 0 : index
    %330 = vector.load %arg4[%c12, %c0_147] : memref<24x8xf32, #tpu.memory_space<vmem>>, vector<1x8xf32>
    %331 = vector.shape_cast %330 : vector<1x8xf32> to vector<8xf32>
    %332 = vector.shape_cast %331 : vector<8xf32> to vector<1x8xf32>
    %333 = vector.broadcast %332 : vector<1x8xf32> to vector<16x8xf32>
    %334 = arith.addf %329, %333 : vector<16x8xf32>
    %c4_148 = arith.constant 4 : index
    %c0_149 = arith.constant 0 : index
    %c0_150 = arith.constant 0 : index
    %335 = vector.load %arg2[%c4_148, %c0_149, %c0_150] : memref<8x32x8xf32, #tpu.memory_space<vmem>>, vector<1x32x8xf32>
    %336 = vector.shape_cast %335 : vector<1x32x8xf32> to vector<32x8xf32>
    %cst_151 = arith.constant dense<0.000000e+00> : vector<16x8xf32>
    %337 = tpu.matmul %325, %336, %cst_151 {dimension_numbers = #tpu.dot_dimension_numbers<[1], [0], [0], [1], [0, 0, 1, 1], [], []>} : vector<16x32xf32>, vector<32x8xf32>, vector<16x8xf32> -> vector<16x8xf32>
    %c16 = arith.constant 16 : index
    %c0_152 = arith.constant 0 : index
    %338 = vector.load %arg4[%c16, %c0_152] : memref<24x8xf32, #tpu.memory_space<vmem>>, vector<1x8xf32>
    %339 = vector.shape_cast %338 : vector<1x8xf32> to vector<8xf32>
    %340 = vector.shape_cast %339 : vector<8xf32> to vector<1x8xf32>
    %341 = vector.broadcast %340 : vector<1x8xf32> to vector<16x8xf32>
    %342 = arith.addf %337, %341 : vector<16x8xf32>
    %c4_153 = arith.constant 4 : index
    %c0_154 = arith.constant 0 : index
    %c0_155 = arith.constant 0 : index
    %343 = vector.load %arg3[%c4_153, %c0_154, %c0_155] : memref<8x32x8xf32, #tpu.memory_space<vmem>>, vector<1x32x8xf32>
    %344 = vector.shape_cast %343 : vector<1x32x8xf32> to vector<32x8xf32>
    %cst_156 = arith.constant dense<0.000000e+00> : vector<16x8xf32>
    %345 = tpu.matmul %325, %344, %cst_156 {dimension_numbers = #tpu.dot_dimension_numbers<[1], [0], [0], [1], [0, 0, 1, 1], [], []>} : vector<16x32xf32>, vector<32x8xf32>, vector<16x8xf32> -> vector<16x8xf32>
    %c20 = arith.constant 20 : index
    %c0_157 = arith.constant 0 : index
    %346 = vector.load %arg4[%c20, %c0_157] : memref<24x8xf32, #tpu.memory_space<vmem>>, vector<1x8xf32>
    %347 = vector.shape_cast %346 : vector<1x8xf32> to vector<8xf32>
    %348 = vector.shape_cast %347 : vector<8xf32> to vector<1x8xf32>
    %349 = vector.broadcast %348 : vector<1x8xf32> to vector<16x8xf32>
    %350 = arith.addf %345, %349 : vector<16x8xf32>
    %351 = vector.shape_cast %334 : vector<16x8xf32> to vector<2x8x8xf32>
    %352 = vector.shape_cast %342 : vector<16x8xf32> to vector<2x8x8xf32>
    %353 = vector.shape_cast %350 : vector<16x8xf32> to vector<2x8x8xf32>
    "tpu.trace_start"() <{level = 10 : i32, message = "bqd,bkd->bqk"}> : () -> ()
    %cst_158 = arith.constant dense<0.000000e+00> : vector<2x8x8xf32>
    %354 = tpu.matmul %351, %352, %cst_158 {dimension_numbers = #tpu.dot_dimension_numbers<[2], [2], [1], [1], [0, 0, 0, 1, 1, 1], [0], [0]>} : vector<2x8x8xf32>, vector<2x8x8xf32>, vector<2x8x8xf32> -> vector<2x8x8xf32>
    "tpu.trace_stop"() : () -> ()
    %cst_159 = arith.constant 0.353553385 : f32
    %355 = vector.broadcast %cst_159 : f32 to vector<2x8x8xf32>
    %356 = arith.mulf %354, %355 : vector<2x8x8xf32>
    %cst_160 = arith.constant -1.000000e+30 : f32
    %357 = vector.broadcast %cst_160 : f32 to vector<2x8x8xf32>
    %358 = arith.select %4, %356, %357 : vector<2x8x8xi1>, vector<2x8x8xf32>
    %cst_161 = arith.constant dense<0xFF800000> : vector<2x8xf32>
    %359 = vector.multi_reduction <maximumf>, %358, %cst_161 [2] : vector<2x8x8xf32> to vector<2x8xf32>
    %cst_162 = arith.constant 0xFF800000 : f32
    %360 = vector.broadcast %cst_162 : f32 to vector<2x8xf32>
    %361 = arith.maximumf %360, %359 : vector<2x8xf32>
    %362 = vector.shape_cast %361 : vector<2x8xf32> to vector<2x8x1xf32>
    %363 = vector.broadcast %362 : vector<2x8x1xf32> to vector<2x8x8xf32>
    %364 = arith.subf %358, %363 : vector<2x8x8xf32>
    %365 = math.exp %364 : vector<2x8x8xf32>
    %cst_163 = arith.constant dense<0.000000e+00> : vector<2x8xf32>
    %366 = vector.multi_reduction <add>, %365, %cst_163 [2] : vector<2x8x8xf32> to vector<2x8xf32>
    %367 = vector.shape_cast %366 : vector<2x8xf32> to vector<2x8x1xf32>
    %368 = vector.broadcast %367 : vector<2x8x1xf32> to vector<2x8x8xf32>
    %369 = arith.divf %365, %368 : vector<2x8x8xf32>
    "tpu.trace_start"() <{level = 10 : i32, message = "bqk,bkd->bqd"}> : () -> ()
    %cst_164 = arith.constant dense<0.000000e+00> : vector<2x8x8xf32>
    %370 = tpu.matmul %369, %353, %cst_164 {dimension_numbers = #tpu.dot_dimension_numbers<[2], [1], [1], [2], [0, 0, 0, 1, 1, 2], [0], [0]>} : vector<2x8x8xf32>, vector<2x8x8xf32>, vector<2x8x8xf32> -> vector<2x8x8xf32>
    "tpu.trace_stop"() : () -> ()
    %371 = vector.shape_cast %370 : vector<2x8x8xf32> to vector<16x8xf32>
    %c4_165 = arith.constant 4 : index
    %c0_166 = arith.constant 0 : index
    %c0_167 = arith.constant 0 : index
    %372 = vector.load %arg5[%c4_165, %c0_166, %c0_167] : memref<8x8x32xf32, #tpu.memory_space<vmem>>, vector<1x8x32xf32>
    %373 = vector.shape_cast %372 : vector<1x8x32xf32> to vector<8x32xf32>
    %cst_168 = arith.constant dense<0.000000e+00> : vector<16x32xf32>
    %374 = tpu.matmul %371, %373, %cst_168 {dimension_numbers = #tpu.dot_dimension_numbers<[1], [0], [0], [1], [0, 0, 1, 1], [], []>} : vector<16x8xf32>, vector<8x32xf32>, vector<16x32xf32> -> vector<16x32xf32>
    %375 = arith.addf %326, %374 : vector<16x32xf32>
    %c5_169 = arith.constant 5 : index
    %c0_170 = arith.constant 0 : index
    %c0_171 = arith.constant 0 : index
    %376 = vector.load %arg1[%c5_169, %c0_170, %c0_171] : memref<8x32x8xf32, #tpu.memory_space<vmem>>, vector<1x32x8xf32>
    %377 = vector.shape_cast %376 : vector<1x32x8xf32> to vector<32x8xf32>
    %cst_172 = arith.constant dense<0.000000e+00> : vector<16x8xf32>
    %378 = tpu.matmul %325, %377, %cst_172 {dimension_numbers = #tpu.dot_dimension_numbers<[1], [0], [0], [1], [0, 0, 1, 1], [], []>} : vector<16x32xf32>, vector<32x8xf32>, vector<16x8xf32> -> vector<16x8xf32>
    %c13 = arith.constant 13 : index
    %c0_173 = arith.constant 0 : index
    %379 = vector.load %arg4[%c13, %c0_173] : memref<24x8xf32, #tpu.memory_space<vmem>>, vector<1x8xf32>
    %380 = vector.shape_cast %379 : vector<1x8xf32> to vector<8xf32>
    %381 = vector.shape_cast %380 : vector<8xf32> to vector<1x8xf32>
    %382 = vector.broadcast %381 : vector<1x8xf32> to vector<16x8xf32>
    %383 = arith.addf %378, %382 : vector<16x8xf32>
    %c5_174 = arith.constant 5 : index
    %c0_175 = arith.constant 0 : index
    %c0_176 = arith.constant 0 : index
    %384 = vector.load %arg2[%c5_174, %c0_175, %c0_176] : memref<8x32x8xf32, #tpu.memory_space<vmem>>, vector<1x32x8xf32>
    %385 = vector.shape_cast %384 : vector<1x32x8xf32> to vector<32x8xf32>
    %cst_177 = arith.constant dense<0.000000e+00> : vector<16x8xf32>
    %386 = tpu.matmul %325, %385, %cst_177 {dimension_numbers = #tpu.dot_dimension_numbers<[1], [0], [0], [1], [0, 0, 1, 1], [], []>} : vector<16x32xf32>, vector<32x8xf32>, vector<16x8xf32> -> vector<16x8xf32>
    %c17 = arith.constant 17 : index
    %c0_178 = arith.constant 0 : index
    %387 = vector.load %arg4[%c17, %c0_178] : memref<24x8xf32, #tpu.memory_space<vmem>>, vector<1x8xf32>
    %388 = vector.shape_cast %387 : vector<1x8xf32> to vector<8xf32>
    %389 = vector.shape_cast %388 : vector<8xf32> to vector<1x8xf32>
    %390 = vector.broadcast %389 : vector<1x8xf32> to vector<16x8xf32>
    %391 = arith.addf %386, %390 : vector<16x8xf32>
    %c5_179 = arith.constant 5 : index
    %c0_180 = arith.constant 0 : index
    %c0_181 = arith.constant 0 : index
    %392 = vector.load %arg3[%c5_179, %c0_180, %c0_181] : memref<8x32x8xf32, #tpu.memory_space<vmem>>, vector<1x32x8xf32>
    %393 = vector.shape_cast %392 : vector<1x32x8xf32> to vector<32x8xf32>
    %cst_182 = arith.constant dense<0.000000e+00> : vector<16x8xf32>
    %394 = tpu.matmul %325, %393, %cst_182 {dimension_numbers = #tpu.dot_dimension_numbers<[1], [0], [0], [1], [0, 0, 1, 1], [], []>} : vector<16x32xf32>, vector<32x8xf32>, vector<16x8xf32> -> vector<16x8xf32>
    %c21 = arith.constant 21 : index
    %c0_183 = arith.constant 0 : index
    %395 = vector.load %arg4[%c21, %c0_183] : memref<24x8xf32, #tpu.memory_space<vmem>>, vector<1x8xf32>
    %396 = vector.shape_cast %395 : vector<1x8xf32> to vector<8xf32>
    %397 = vector.shape_cast %396 : vector<8xf32> to vector<1x8xf32>
    %398 = vector.broadcast %397 : vector<1x8xf32> to vector<16x8xf32>
    %399 = arith.addf %394, %398 : vector<16x8xf32>
    %400 = vector.shape_cast %383 : vector<16x8xf32> to vector<2x8x8xf32>
    %401 = vector.shape_cast %391 : vector<16x8xf32> to vector<2x8x8xf32>
    %402 = vector.shape_cast %399 : vector<16x8xf32> to vector<2x8x8xf32>
    "tpu.trace_start"() <{level = 10 : i32, message = "bqd,bkd->bqk"}> : () -> ()
    %cst_184 = arith.constant dense<0.000000e+00> : vector<2x8x8xf32>
    %403 = tpu.matmul %400, %401, %cst_184 {dimension_numbers = #tpu.dot_dimension_numbers<[2], [2], [1], [1], [0, 0, 0, 1, 1, 1], [0], [0]>} : vector<2x8x8xf32>, vector<2x8x8xf32>, vector<2x8x8xf32> -> vector<2x8x8xf32>
    "tpu.trace_stop"() : () -> ()
    %cst_185 = arith.constant 0.353553385 : f32
    %404 = vector.broadcast %cst_185 : f32 to vector<2x8x8xf32>
    %405 = arith.mulf %403, %404 : vector<2x8x8xf32>
    %cst_186 = arith.constant -1.000000e+30 : f32
    %406 = vector.broadcast %cst_186 : f32 to vector<2x8x8xf32>
    %407 = arith.select %4, %405, %406 : vector<2x8x8xi1>, vector<2x8x8xf32>
    %cst_187 = arith.constant dense<0xFF800000> : vector<2x8xf32>
    %408 = vector.multi_reduction <maximumf>, %407, %cst_187 [2] : vector<2x8x8xf32> to vector<2x8xf32>
    %cst_188 = arith.constant 0xFF800000 : f32
    %409 = vector.broadcast %cst_188 : f32 to vector<2x8xf32>
    %410 = arith.maximumf %409, %408 : vector<2x8xf32>
    %411 = vector.shape_cast %410 : vector<2x8xf32> to vector<2x8x1xf32>
    %412 = vector.broadcast %411 : vector<2x8x1xf32> to vector<2x8x8xf32>
    %413 = arith.subf %407, %412 : vector<2x8x8xf32>
    %414 = math.exp %413 : vector<2x8x8xf32>
    %cst_189 = arith.constant dense<0.000000e+00> : vector<2x8xf32>
    %415 = vector.multi_reduction <add>, %414, %cst_189 [2] : vector<2x8x8xf32> to vector<2x8xf32>
    %416 = vector.shape_cast %415 : vector<2x8xf32> to vector<2x8x1xf32>
    %417 = vector.broadcast %416 : vector<2x8x1xf32> to vector<2x8x8xf32>
    %418 = arith.divf %414, %417 : vector<2x8x8xf32>
    "tpu.trace_start"() <{level = 10 : i32, message = "bqk,bkd->bqd"}> : () -> ()
    %cst_190 = arith.constant dense<0.000000e+00> : vector<2x8x8xf32>
    %419 = tpu.matmul %418, %402, %cst_190 {dimension_numbers = #tpu.dot_dimension_numbers<[2], [1], [1], [2], [0, 0, 0, 1, 1, 2], [0], [0]>} : vector<2x8x8xf32>, vector<2x8x8xf32>, vector<2x8x8xf32> -> vector<2x8x8xf32>
    "tpu.trace_stop"() : () -> ()
    %420 = vector.shape_cast %419 : vector<2x8x8xf32> to vector<16x8xf32>
    %c5_191 = arith.constant 5 : index
    %c0_192 = arith.constant 0 : index
    %c0_193 = arith.constant 0 : index
    %421 = vector.load %arg5[%c5_191, %c0_192, %c0_193] : memref<8x8x32xf32, #tpu.memory_space<vmem>>, vector<1x8x32xf32>
    %422 = vector.shape_cast %421 : vector<1x8x32xf32> to vector<8x32xf32>
    %cst_194 = arith.constant dense<0.000000e+00> : vector<16x32xf32>
    %423 = tpu.matmul %420, %422, %cst_194 {dimension_numbers = #tpu.dot_dimension_numbers<[1], [0], [0], [1], [0, 0, 1, 1], [], []>} : vector<16x8xf32>, vector<8x32xf32>, vector<16x32xf32> -> vector<16x32xf32>
    %424 = arith.addf %375, %423 : vector<16x32xf32>
    %c6_195 = arith.constant 6 : index
    %c0_196 = arith.constant 0 : index
    %c0_197 = arith.constant 0 : index
    %425 = vector.load %arg1[%c6_195, %c0_196, %c0_197] : memref<8x32x8xf32, #tpu.memory_space<vmem>>, vector<1x32x8xf32>
    %426 = vector.shape_cast %425 : vector<1x32x8xf32> to vector<32x8xf32>
    %cst_198 = arith.constant dense<0.000000e+00> : vector<16x8xf32>
    %427 = tpu.matmul %325, %426, %cst_198 {dimension_numbers = #tpu.dot_dimension_numbers<[1], [0], [0], [1], [0, 0, 1, 1], [], []>} : vector<16x32xf32>, vector<32x8xf32>, vector<16x8xf32> -> vector<16x8xf32>
    %c14 = arith.constant 14 : index
    %c0_199 = arith.constant 0 : index
    %428 = vector.load %arg4[%c14, %c0_199] : memref<24x8xf32, #tpu.memory_space<vmem>>, vector<1x8xf32>
    %429 = vector.shape_cast %428 : vector<1x8xf32> to vector<8xf32>
    %430 = vector.shape_cast %429 : vector<8xf32> to vector<1x8xf32>
    %431 = vector.broadcast %430 : vector<1x8xf32> to vector<16x8xf32>
    %432 = arith.addf %427, %431 : vector<16x8xf32>
    %c6_200 = arith.constant 6 : index
    %c0_201 = arith.constant 0 : index
    %c0_202 = arith.constant 0 : index
    %433 = vector.load %arg2[%c6_200, %c0_201, %c0_202] : memref<8x32x8xf32, #tpu.memory_space<vmem>>, vector<1x32x8xf32>
    %434 = vector.shape_cast %433 : vector<1x32x8xf32> to vector<32x8xf32>
    %cst_203 = arith.constant dense<0.000000e+00> : vector<16x8xf32>
    %435 = tpu.matmul %325, %434, %cst_203 {dimension_numbers = #tpu.dot_dimension_numbers<[1], [0], [0], [1], [0, 0, 1, 1], [], []>} : vector<16x32xf32>, vector<32x8xf32>, vector<16x8xf32> -> vector<16x8xf32>
    %c18 = arith.constant 18 : index
    %c0_204 = arith.constant 0 : index
    %436 = vector.load %arg4[%c18, %c0_204] : memref<24x8xf32, #tpu.memory_space<vmem>>, vector<1x8xf32>
    %437 = vector.shape_cast %436 : vector<1x8xf32> to vector<8xf32>
    %438 = vector.shape_cast %437 : vector<8xf32> to vector<1x8xf32>
    %439 = vector.broadcast %438 : vector<1x8xf32> to vector<16x8xf32>
    %440 = arith.addf %435, %439 : vector<16x8xf32>
    %c6_205 = arith.constant 6 : index
    %c0_206 = arith.constant 0 : index
    %c0_207 = arith.constant 0 : index
    %441 = vector.load %arg3[%c6_205, %c0_206, %c0_207] : memref<8x32x8xf32, #tpu.memory_space<vmem>>, vector<1x32x8xf32>
    %442 = vector.shape_cast %441 : vector<1x32x8xf32> to vector<32x8xf32>
    %cst_208 = arith.constant dense<0.000000e+00> : vector<16x8xf32>
    %443 = tpu.matmul %325, %442, %cst_208 {dimension_numbers = #tpu.dot_dimension_numbers<[1], [0], [0], [1], [0, 0, 1, 1], [], []>} : vector<16x32xf32>, vector<32x8xf32>, vector<16x8xf32> -> vector<16x8xf32>
    %c22 = arith.constant 22 : index
    %c0_209 = arith.constant 0 : index
    %444 = vector.load %arg4[%c22, %c0_209] : memref<24x8xf32, #tpu.memory_space<vmem>>, vector<1x8xf32>
    %445 = vector.shape_cast %444 : vector<1x8xf32> to vector<8xf32>
    %446 = vector.shape_cast %445 : vector<8xf32> to vector<1x8xf32>
    %447 = vector.broadcast %446 : vector<1x8xf32> to vector<16x8xf32>
    %448 = arith.addf %443, %447 : vector<16x8xf32>
    %449 = vector.shape_cast %432 : vector<16x8xf32> to vector<2x8x8xf32>
    %450 = vector.shape_cast %440 : vector<16x8xf32> to vector<2x8x8xf32>
    %451 = vector.shape_cast %448 : vector<16x8xf32> to vector<2x8x8xf32>
    "tpu.trace_start"() <{level = 10 : i32, message = "bqd,bkd->bqk"}> : () -> ()
    %cst_210 = arith.constant dense<0.000000e+00> : vector<2x8x8xf32>
    %452 = tpu.matmul %449, %450, %cst_210 {dimension_numbers = #tpu.dot_dimension_numbers<[2], [2], [1], [1], [0, 0, 0, 1, 1, 1], [0], [0]>} : vector<2x8x8xf32>, vector<2x8x8xf32>, vector<2x8x8xf32> -> vector<2x8x8xf32>
    "tpu.trace_stop"() : () -> ()
    %cst_211 = arith.constant 0.353553385 : f32
    %453 = vector.broadcast %cst_211 : f32 to vector<2x8x8xf32>
    %454 = arith.mulf %452, %453 : vector<2x8x8xf32>
    %cst_212 = arith.constant -1.000000e+30 : f32
    %455 = vector.broadcast %cst_212 : f32 to vector<2x8x8xf32>
    %456 = arith.select %4, %454, %455 : vector<2x8x8xi1>, vector<2x8x8xf32>
    %cst_213 = arith.constant dense<0xFF800000> : vector<2x8xf32>
    %457 = vector.multi_reduction <maximumf>, %456, %cst_213 [2] : vector<2x8x8xf32> to vector<2x8xf32>
    %cst_214 = arith.constant 0xFF800000 : f32
    %458 = vector.broadcast %cst_214 : f32 to vector<2x8xf32>
    %459 = arith.maximumf %458, %457 : vector<2x8xf32>
    %460 = vector.shape_cast %459 : vector<2x8xf32> to vector<2x8x1xf32>
    %461 = vector.broadcast %460 : vector<2x8x1xf32> to vector<2x8x8xf32>
    %462 = arith.subf %456, %461 : vector<2x8x8xf32>
    %463 = math.exp %462 : vector<2x8x8xf32>
    %cst_215 = arith.constant dense<0.000000e+00> : vector<2x8xf32>
    %464 = vector.multi_reduction <add>, %463, %cst_215 [2] : vector<2x8x8xf32> to vector<2x8xf32>
    %465 = vector.shape_cast %464 : vector<2x8xf32> to vector<2x8x1xf32>
    %466 = vector.broadcast %465 : vector<2x8x1xf32> to vector<2x8x8xf32>
    %467 = arith.divf %463, %466 : vector<2x8x8xf32>
    "tpu.trace_start"() <{level = 10 : i32, message = "bqk,bkd->bqd"}> : () -> ()
    %cst_216 = arith.constant dense<0.000000e+00> : vector<2x8x8xf32>
    %468 = tpu.matmul %467, %451, %cst_216 {dimension_numbers = #tpu.dot_dimension_numbers<[2], [1], [1], [2], [0, 0, 0, 1, 1, 2], [0], [0]>} : vector<2x8x8xf32>, vector<2x8x8xf32>, vector<2x8x8xf32> -> vector<2x8x8xf32>
    "tpu.trace_stop"() : () -> ()
    %469 = vector.shape_cast %468 : vector<2x8x8xf32> to vector<16x8xf32>
    %c6_217 = arith.constant 6 : index
    %c0_218 = arith.constant 0 : index
    %c0_219 = arith.constant 0 : index
    %470 = vector.load %arg5[%c6_217, %c0_218, %c0_219] : memref<8x8x32xf32, #tpu.memory_space<vmem>>, vector<1x8x32xf32>
    %471 = vector.shape_cast %470 : vector<1x8x32xf32> to vector<8x32xf32>
    %cst_220 = arith.constant dense<0.000000e+00> : vector<16x32xf32>
    %472 = tpu.matmul %469, %471, %cst_220 {dimension_numbers = #tpu.dot_dimension_numbers<[1], [0], [0], [1], [0, 0, 1, 1], [], []>} : vector<16x8xf32>, vector<8x32xf32>, vector<16x32xf32> -> vector<16x32xf32>
    %473 = arith.addf %424, %472 : vector<16x32xf32>
    %c7_221 = arith.constant 7 : index
    %c0_222 = arith.constant 0 : index
    %c0_223 = arith.constant 0 : index
    %474 = vector.load %arg1[%c7_221, %c0_222, %c0_223] : memref<8x32x8xf32, #tpu.memory_space<vmem>>, vector<1x32x8xf32>
    %475 = vector.shape_cast %474 : vector<1x32x8xf32> to vector<32x8xf32>
    %cst_224 = arith.constant dense<0.000000e+00> : vector<16x8xf32>
    %476 = tpu.matmul %325, %475, %cst_224 {dimension_numbers = #tpu.dot_dimension_numbers<[1], [0], [0], [1], [0, 0, 1, 1], [], []>} : vector<16x32xf32>, vector<32x8xf32>, vector<16x8xf32> -> vector<16x8xf32>
    %c15 = arith.constant 15 : index
    %c0_225 = arith.constant 0 : index
    %477 = vector.load %arg4[%c15, %c0_225] : memref<24x8xf32, #tpu.memory_space<vmem>>, vector<1x8xf32>
    %478 = vector.shape_cast %477 : vector<1x8xf32> to vector<8xf32>
    %479 = vector.shape_cast %478 : vector<8xf32> to vector<1x8xf32>
    %480 = vector.broadcast %479 : vector<1x8xf32> to vector<16x8xf32>
    %481 = arith.addf %476, %480 : vector<16x8xf32>
    %c7_226 = arith.constant 7 : index
    %c0_227 = arith.constant 0 : index
    %c0_228 = arith.constant 0 : index
    %482 = vector.load %arg2[%c7_226, %c0_227, %c0_228] : memref<8x32x8xf32, #tpu.memory_space<vmem>>, vector<1x32x8xf32>
    %483 = vector.shape_cast %482 : vector<1x32x8xf32> to vector<32x8xf32>
    %cst_229 = arith.constant dense<0.000000e+00> : vector<16x8xf32>
    %484 = tpu.matmul %325, %483, %cst_229 {dimension_numbers = #tpu.dot_dimension_numbers<[1], [0], [0], [1], [0, 0, 1, 1], [], []>} : vector<16x32xf32>, vector<32x8xf32>, vector<16x8xf32> -> vector<16x8xf32>
    %c19 = arith.constant 19 : index
    %c0_230 = arith.constant 0 : index
    %485 = vector.load %arg4[%c19, %c0_230] : memref<24x8xf32, #tpu.memory_space<vmem>>, vector<1x8xf32>
    %486 = vector.shape_cast %485 : vector<1x8xf32> to vector<8xf32>
    %487 = vector.shape_cast %486 : vector<8xf32> to vector<1x8xf32>
    %488 = vector.broadcast %487 : vector<1x8xf32> to vector<16x8xf32>
    %489 = arith.addf %484, %488 : vector<16x8xf32>
    %c7_231 = arith.constant 7 : index
    %c0_232 = arith.constant 0 : index
    %c0_233 = arith.constant 0 : index
    %490 = vector.load %arg3[%c7_231, %c0_232, %c0_233] : memref<8x32x8xf32, #tpu.memory_space<vmem>>, vector<1x32x8xf32>
    %491 = vector.shape_cast %490 : vector<1x32x8xf32> to vector<32x8xf32>
    %cst_234 = arith.constant dense<0.000000e+00> : vector<16x8xf32>
    %492 = tpu.matmul %325, %491, %cst_234 {dimension_numbers = #tpu.dot_dimension_numbers<[1], [0], [0], [1], [0, 0, 1, 1], [], []>} : vector<16x32xf32>, vector<32x8xf32>, vector<16x8xf32> -> vector<16x8xf32>
    %c23 = arith.constant 23 : index
    %c0_235 = arith.constant 0 : index
    %493 = vector.load %arg4[%c23, %c0_235] : memref<24x8xf32, #tpu.memory_space<vmem>>, vector<1x8xf32>
    %494 = vector.shape_cast %493 : vector<1x8xf32> to vector<8xf32>
    %495 = vector.shape_cast %494 : vector<8xf32> to vector<1x8xf32>
    %496 = vector.broadcast %495 : vector<1x8xf32> to vector<16x8xf32>
    %497 = arith.addf %492, %496 : vector<16x8xf32>
    %498 = vector.shape_cast %481 : vector<16x8xf32> to vector<2x8x8xf32>
    %499 = vector.shape_cast %489 : vector<16x8xf32> to vector<2x8x8xf32>
    %500 = vector.shape_cast %497 : vector<16x8xf32> to vector<2x8x8xf32>
    "tpu.trace_start"() <{level = 10 : i32, message = "bqd,bkd->bqk"}> : () -> ()
    %cst_236 = arith.constant dense<0.000000e+00> : vector<2x8x8xf32>
    %501 = tpu.matmul %498, %499, %cst_236 {dimension_numbers = #tpu.dot_dimension_numbers<[2], [2], [1], [1], [0, 0, 0, 1, 1, 1], [0], [0]>} : vector<2x8x8xf32>, vector<2x8x8xf32>, vector<2x8x8xf32> -> vector<2x8x8xf32>
    "tpu.trace_stop"() : () -> ()
    %cst_237 = arith.constant 0.353553385 : f32
    %502 = vector.broadcast %cst_237 : f32 to vector<2x8x8xf32>
    %503 = arith.mulf %501, %502 : vector<2x8x8xf32>
    %cst_238 = arith.constant -1.000000e+30 : f32
    %504 = vector.broadcast %cst_238 : f32 to vector<2x8x8xf32>
    %505 = arith.select %4, %503, %504 : vector<2x8x8xi1>, vector<2x8x8xf32>
    %cst_239 = arith.constant dense<0xFF800000> : vector<2x8xf32>
    %506 = vector.multi_reduction <maximumf>, %505, %cst_239 [2] : vector<2x8x8xf32> to vector<2x8xf32>
    %cst_240 = arith.constant 0xFF800000 : f32
    %507 = vector.broadcast %cst_240 : f32 to vector<2x8xf32>
    %508 = arith.maximumf %507, %506 : vector<2x8xf32>
    %509 = vector.shape_cast %508 : vector<2x8xf32> to vector<2x8x1xf32>
    %510 = vector.broadcast %509 : vector<2x8x1xf32> to vector<2x8x8xf32>
    %511 = arith.subf %505, %510 : vector<2x8x8xf32>
    %512 = math.exp %511 : vector<2x8x8xf32>
    %cst_241 = arith.constant dense<0.000000e+00> : vector<2x8xf32>
    %513 = vector.multi_reduction <add>, %512, %cst_241 [2] : vector<2x8x8xf32> to vector<2x8xf32>
    %514 = vector.shape_cast %513 : vector<2x8xf32> to vector<2x8x1xf32>
    %515 = vector.broadcast %514 : vector<2x8x1xf32> to vector<2x8x8xf32>
    %516 = arith.divf %512, %515 : vector<2x8x8xf32>
    "tpu.trace_start"() <{level = 10 : i32, message = "bqk,bkd->bqd"}> : () -> ()
    %cst_242 = arith.constant dense<0.000000e+00> : vector<2x8x8xf32>
    %517 = tpu.matmul %516, %500, %cst_242 {dimension_numbers = #tpu.dot_dimension_numbers<[2], [1], [1], [2], [0, 0, 0, 1, 1, 2], [0], [0]>} : vector<2x8x8xf32>, vector<2x8x8xf32>, vector<2x8x8xf32> -> vector<2x8x8xf32>
    "tpu.trace_stop"() : () -> ()
    %518 = vector.shape_cast %517 : vector<2x8x8xf32> to vector<16x8xf32>
    %c7_243 = arith.constant 7 : index
    %c0_244 = arith.constant 0 : index
    %c0_245 = arith.constant 0 : index
    %519 = vector.load %arg5[%c7_243, %c0_244, %c0_245] : memref<8x8x32xf32, #tpu.memory_space<vmem>>, vector<1x8x32xf32>
    %520 = vector.shape_cast %519 : vector<1x8x32xf32> to vector<8x32xf32>
    %cst_246 = arith.constant dense<0.000000e+00> : vector<16x32xf32>
    %521 = tpu.matmul %518, %520, %cst_246 {dimension_numbers = #tpu.dot_dimension_numbers<[1], [0], [0], [1], [0, 0, 1, 1], [], []>} : vector<16x8xf32>, vector<8x32xf32>, vector<16x32xf32> -> vector<16x32xf32>
    %522 = arith.addf %473, %521 : vector<16x32xf32>
    %523 = arith.addf %295, %522 : vector<16x32xf32>
    %524 = vector.extract_strided_slice %297 {offsets = [2, 0], sizes = [1, 32], strides = [1, 1]} : vector<6x32xf32> to vector<1x32xf32>
    %525 = vector.shape_cast %524 : vector<1x32xf32> to vector<32xf32>
    %526 = vector.shape_cast %525 : vector<32xf32> to vector<1x32xf32>
    %527 = vector.broadcast %526 : vector<1x32xf32> to vector<16x32xf32>
    %528 = arith.addf %523, %527 : vector<16x32xf32>
    %529 = vector.extract_strided_slice %297 {offsets = [3, 0], sizes = [1, 32], strides = [1, 1]} : vector<6x32xf32> to vector<1x32xf32>
    %530 = vector.shape_cast %529 : vector<1x32xf32> to vector<32xf32>
    %531 = vector.extract_strided_slice %297 {offsets = [4, 0], sizes = [1, 32], strides = [1, 1]} : vector<6x32xf32> to vector<1x32xf32>
    %532 = vector.shape_cast %531 : vector<1x32xf32> to vector<32xf32>
    %cst_247 = arith.constant dense<0.000000e+00> : vector<16xf32>
    %533 = vector.multi_reduction <add>, %528, %cst_247 [1] : vector<16x32xf32> to vector<16xf32>
    %534 = vector.shape_cast %533 : vector<16xf32> to vector<16x1xf32>
    %cst_248 = arith.constant 3.200000e+01 : f32
    %535 = vector.broadcast %cst_248 : f32 to vector<16x1xf32>
    %536 = arith.divf %534, %535 : vector<16x1xf32>
    %537 = vector.broadcast %536 : vector<16x1xf32> to vector<16x32xf32>
    %538 = arith.subf %528, %537 : vector<16x32xf32>
    %539 = arith.mulf %538, %538 : vector<16x32xf32>
    %cst_249 = arith.constant dense<0.000000e+00> : vector<16xf32>
    %540 = vector.multi_reduction <add>, %539, %cst_249 [1] : vector<16x32xf32> to vector<16xf32>
    %541 = vector.shape_cast %540 : vector<16xf32> to vector<16x1xf32>
    %cst_250 = arith.constant 3.200000e+01 : f32
    %542 = vector.broadcast %cst_250 : f32 to vector<16x1xf32>
    %543 = arith.divf %541, %542 : vector<16x1xf32>
    %544 = vector.broadcast %536 : vector<16x1xf32> to vector<16x32xf32>
    %545 = arith.subf %528, %544 : vector<16x32xf32>
    %cst_251 = arith.constant 9.99999974E-6 : f32
    %546 = vector.broadcast %cst_251 : f32 to vector<16x1xf32>
    %547 = arith.addf %543, %546 : vector<16x1xf32>
    %548 = math.rsqrt %547 : vector<16x1xf32>
    %549 = vector.broadcast %548 : vector<16x1xf32> to vector<16x32xf32>
    %550 = arith.mulf %545, %549 : vector<16x32xf32>
    %551 = vector.shape_cast %530 : vector<32xf32> to vector<1x32xf32>
    %552 = vector.broadcast %551 : vector<1x32xf32> to vector<16x32xf32>
    %553 = arith.mulf %550, %552 : vector<16x32xf32>
    %554 = vector.shape_cast %532 : vector<32xf32> to vector<1x32xf32>
    %555 = vector.broadcast %554 : vector<1x32xf32> to vector<16x32xf32>
    %556 = arith.addf %553, %555 : vector<16x32xf32>
    %c1_252 = arith.constant 1 : index
    %c0_253 = arith.constant 0 : index
    %c0_254 = arith.constant 0 : index
    %557 = vector.load %arg6[%c1_252, %c0_253, %c0_254] : memref<2x32x128xf32, #tpu.memory_space<vmem>>, vector<1x32x128xf32>
    %558 = vector.shape_cast %557 : vector<1x32x128xf32> to vector<32x128xf32>
    %cst_255 = arith.constant dense<0.000000e+00> : vector<16x128xf32>
    %559 = tpu.matmul %556, %558, %cst_255 {dimension_numbers = #tpu.dot_dimension_numbers<[1], [0], [0], [1], [0, 0, 1, 1], [], []>} : vector<16x32xf32>, vector<32x128xf32>, vector<16x128xf32> -> vector<16x128xf32>
    %c1_256 = arith.constant 1 : index
    %c0_257 = arith.constant 0 : index
    %560 = vector.load %arg7[%c1_256, %c0_257] : memref<2x128xf32, #tpu.memory_space<vmem>>, vector<1x128xf32>
    %561 = vector.shape_cast %560 : vector<1x128xf32> to vector<128xf32>
    %562 = vector.shape_cast %561 : vector<128xf32> to vector<1x128xf32>
    %563 = vector.broadcast %562 : vector<1x128xf32> to vector<16x128xf32>
    %564 = arith.addf %559, %563 : vector<16x128xf32>
    %565 = arith.mulf %564, %564 : vector<16x128xf32>
    %566 = arith.mulf %564, %565 : vector<16x128xf32>
    %cst_258 = arith.constant 4.471500e-02 : f32
    %567 = vector.broadcast %cst_258 : f32 to vector<16x128xf32>
    %568 = arith.mulf %567, %566 : vector<16x128xf32>
    %569 = arith.addf %564, %568 : vector<16x128xf32>
    %cst_259 = arith.constant 0.797884583 : f32
    %570 = vector.broadcast %cst_259 : f32 to vector<16x128xf32>
    %571 = arith.mulf %570, %569 : vector<16x128xf32>
    %572 = math.tanh %571 : vector<16x128xf32>
    %cst_260 = arith.constant 1.000000e+00 : f32
    %573 = vector.broadcast %cst_260 : f32 to vector<16x128xf32>
    %574 = arith.addf %573, %572 : vector<16x128xf32>
    %cst_261 = arith.constant 5.000000e-01 : f32
    %575 = vector.broadcast %cst_261 : f32 to vector<16x128xf32>
    %576 = arith.mulf %575, %574 : vector<16x128xf32>
    %577 = arith.mulf %564, %576 : vector<16x128xf32>
    %c1_262 = arith.constant 1 : index
    %c0_263 = arith.constant 0 : index
    %c0_264 = arith.constant 0 : index
    %578 = vector.load %arg8[%c1_262, %c0_263, %c0_264] : memref<2x128x32xf32, #tpu.memory_space<vmem>>, vector<1x128x32xf32>
    %579 = vector.shape_cast %578 : vector<1x128x32xf32> to vector<128x32xf32>
    %cst_265 = arith.constant dense<0.000000e+00> : vector<16x32xf32>
    %580 = tpu.matmul %577, %579, %cst_265 {dimension_numbers = #tpu.dot_dimension_numbers<[1], [0], [0], [1], [0, 0, 1, 1], [], []>} : vector<16x128xf32>, vector<128x32xf32>, vector<16x32xf32> -> vector<16x32xf32>
    %581 = vector.extract_strided_slice %297 {offsets = [5, 0], sizes = [1, 32], strides = [1, 1]} : vector<6x32xf32> to vector<1x32xf32>
    %582 = vector.shape_cast %581 : vector<1x32xf32> to vector<32xf32>
    %583 = vector.shape_cast %582 : vector<32xf32> to vector<1x32xf32>
    %584 = vector.broadcast %583 : vector<1x32xf32> to vector<16x32xf32>
    %585 = arith.addf %580, %584 : vector<16x32xf32>
    %586 = arith.addf %528, %585 : vector<16x32xf32>
    %c0_266 = arith.constant 0 : index
    %c0_267 = arith.constant 0 : index
    %587 = vector.load %arg10[%c0_266, %c0_267] : memref<2x32xf32, #tpu.memory_space<vmem>>, vector<1x32xf32>
    %588 = vector.shape_cast %587 : vector<1x32xf32> to vector<32xf32>
    %c1_268 = arith.constant 1 : index
    %c0_269 = arith.constant 0 : index
    %589 = vector.load %arg10[%c1_268, %c0_269] : memref<2x32xf32, #tpu.memory_space<vmem>>, vector<1x32xf32>
    %590 = vector.shape_cast %589 : vector<1x32xf32> to vector<32xf32>
    %cst_270 = arith.constant dense<0.000000e+00> : vector<16xf32>
    %591 = vector.multi_reduction <add>, %586, %cst_270 [1] : vector<16x32xf32> to vector<16xf32>
    %592 = vector.shape_cast %591 : vector<16xf32> to vector<16x1xf32>
    %cst_271 = arith.constant 3.200000e+01 : f32
    %593 = vector.broadcast %cst_271 : f32 to vector<16x1xf32>
    %594 = arith.divf %592, %593 : vector<16x1xf32>
    %595 = vector.broadcast %594 : vector<16x1xf32> to vector<16x32xf32>
    %596 = arith.subf %586, %595 : vector<16x32xf32>
    %597 = arith.mulf %596, %596 : vector<16x32xf32>
    %cst_272 = arith.constant dense<0.000000e+00> : vector<16xf32>
    %598 = vector.multi_reduction <add>, %597, %cst_272 [1] : vector<16x32xf32> to vector<16xf32>
    %599 = vector.shape_cast %598 : vector<16xf32> to vector<16x1xf32>
    %cst_273 = arith.constant 3.200000e+01 : f32
    %600 = vector.broadcast %cst_273 : f32 to vector<16x1xf32>
    %601 = arith.divf %599, %600 : vector<16x1xf32>
    %602 = vector.broadcast %594 : vector<16x1xf32> to vector<16x32xf32>
    %603 = arith.subf %586, %602 : vector<16x32xf32>
    %cst_274 = arith.constant 9.99999974E-6 : f32
    %604 = vector.broadcast %cst_274 : f32 to vector<16x1xf32>
    %605 = arith.addf %601, %604 : vector<16x1xf32>
    %606 = math.rsqrt %605 : vector<16x1xf32>
    %607 = vector.broadcast %606 : vector<16x1xf32> to vector<16x32xf32>
    %608 = arith.mulf %603, %607 : vector<16x32xf32>
    %609 = vector.shape_cast %588 : vector<32xf32> to vector<1x32xf32>
    %610 = vector.broadcast %609 : vector<1x32xf32> to vector<16x32xf32>
    %611 = arith.mulf %608, %610 : vector<16x32xf32>
    %612 = vector.shape_cast %590 : vector<32xf32> to vector<1x32xf32>
    %613 = vector.broadcast %612 : vector<1x32xf32> to vector<16x32xf32>
    %614 = arith.addf %611, %613 : vector<16x32xf32>
    %c0_275 = arith.constant 0 : index
    %c0_276 = arith.constant 0 : index
    %615 = vector.load %arg11[%c0_275, %c0_276] : memref<32x128xf32, #tpu.memory_space<vmem>>, vector<32x128xf32>
    %cst_277 = arith.constant dense<0.000000e+00> : vector<16x128xf32>
    %616 = tpu.matmul %614, %615, %cst_277 {dimension_numbers = #tpu.dot_dimension_numbers<[1], [0], [0], [1], [0, 0, 1, 1], [], []>} : vector<16x32xf32>, vector<32x128xf32>, vector<16x128xf32> -> vector<16x128xf32>
    %617 = vector.shape_cast %616 : vector<16x128xf32> to vector<2x8x128xf32>
    %c0_278 = arith.constant 0 : index
    %c0_279 = arith.constant 0 : index
    %c0_280 = arith.constant 0 : index
    %618 = vector.load %arg12[%c0_278, %c0_279, %c0_280] : memref<2x8x128xf32, #tpu.memory_space<vmem>>, vector<2x8x128xf32>
    tpu.vector_store %arg12[%c0_278, %c0_279, %c0_280], %617 {strides = array<i32>} : memref<2x8x128xf32, #tpu.memory_space<vmem>>, vector<2x8x128xf32>,
    return
  }
}

</mosaic_0001>

<bundles_post_ra>
// kernel: custom-call.2
= control target key start
LH: loop header
LB: loop body
LE: loop exit
PB: predicated region body
PF: predicated region fallthrough
CT: control target
= control target key end

     0   :  { %s6_s0 = inlined_call_operand.vmem [shape: pred[2], index: 0, kind: output, shape index: {}]  }

// kernel: closed_call.21
= control target key start
LH: loop header
LB: loop body
LE: loop exit
PB: predicated region body
PF: predicated region fallthrough
CT: control target
= control target key end

     0   :  { %vm49_vm0 = vcmask 261120   ;;  %v43_v34 = vlaneseq  ;;  %vm7577_vm1 = vmmov 0   ;;  %vm347_vm2 = vcmask 64512   ;;  %s8666_s0 = inlined_call_operand.vmem [shape: f32[2,8,32], index: 0, kind: input, shape index: {}]   ;;  %s8667_s1 = inlined_call_operand.vmem [shape: f32[8,32,8], index: 1, kind: input, shape index: {}]   ;;  %s8668_s3 = inlined_call_operand.vmem [shape: f32[8,32,8], index: 3, kind: input, shape index: {}]   ;;  %s8669_s2 = inlined_call_operand.vmem [shape: f32[8,32,8], index: 2, kind: input, shape index: {}]   ;;  %s8670_s9 = inlined_call_operand.vmem [shape: f32[2,6,32], index: 9, kind: input, shape index: {}]   ;;  %s8671_s4 = inlined_call_operand.vmem [shape: f32[24,8], index: 4, kind: input, shape index: {}]   ;;  %s8672_s5 = inlined_call_operand.vmem [shape: f32[8,8,32], index: 5, kind: input, shape index: {}]   ;;  %s8673_s6 = inlined_call_operand.vmem [shape: f32[2,32,128], index: 6, kind: input, shape index: {}]   ;;  %s8674_s8 = inlined_call_operand.vmem [shape: f32[2,128,32], index: 8, kind: input, shape index: {}]   ;;  %s8675_s7 = inlined_call_operand.vmem [shape: f32[2,128], index: 7, kind: input, shape index: {}]   ;;  %s8676_s11 = inlined_call_operand.vmem [shape: f32[32,128], index: 11, kind: input, shape index: {}]   ;;  %s8677_s10 = inlined_call_operand.vmem [shape: f32[2,32], index: 10, kind: input, shape index: {}]   ;;  %s8678_s12 = inlined_call_operand.vmem [shape: f32[2,8,128], index: 12, kind: output, shape index: {}]  }
   0x1   :  { %v7646_v0 = vld [vmem:[%s8666_s0] sm:$0xff]  ;;  %v7651_v1 = vld [vmem:[%s8666_s0 + $0x8] sm:$0xff]  ;;  %v91_v20 = vld [vmem:[%s8667_s1 + $0x10] sm:$0xff] }
   0x2   :  { %v50_v2 = vsel %vm49_vm0, %v7646_v0, 0.0  ;;  %v53_v3 = vsel %vm49_vm0, %v7651_v1, 0.0  ;;  %v89_v14 = vld [vmem:[%s8667_s1] sm:$0xff]  ;;  %v90_v15 = vld [vmem:[%s8667_s1 + $0x8] sm:$0xff]  ;;  %v92_v21 = vld [vmem:[%s8667_s1 + $0x18] sm:$0xff]  ;;  %v7698_v38 = vshrl.u32 %v43_v34, 7 }
   0x3   :  { %51 = vadd.xlane.f32.xlu0 %v50_v2  ;;  %v263_v16 = vld [vmem:[%s8668_s3] sm:$0xff]  ;;  %v7188_v17 = vpack.c.bf16 %v90_v15, %v89_v14  ;;  %v264_v18 = vld [vmem:[%s8668_s3 + $0x8] sm:$0xff]  ;;  %v265_v22 = vld [vmem:[%s8668_s3 + $0x10] sm:$0xff]  ;;  %v7192_v23 = vpack.c.bf16 %v92_v21, %v91_v20 }
   0x4   :  { %v7204_v19 = vpack.c.bf16 %v264_v18, %v263_v16  ;;  %v266_v24 = vld [vmem:[%s8668_s3 + $0x18] sm:$0xff]  ;;  %v179_v26 = vld [vmem:[%s8669_s2] sm:$0xff]  ;;  %v180_v27 = vld [vmem:[%s8669_s2 + $0x8] sm:$0xff]  ;;  %v79_v40 = vsub.s32 0, %v7698_v38  ;;  %v85_v42 = vsub.s32 1, %v7698_v38 }
   0x5   :  { %7189 = vmatprep.subr.bf16.mxu1 %v7188_v17  ;;  %v7208_v25 = vpack.c.bf16 %v266_v24, %v265_v22  ;;  %v6092_v28 = vld [vmem:[%s8667_s1 + $0x20] sm:$0xff]  ;;  %v7196_v29 = vpack.c.bf16 %v180_v27, %v179_v26  ;;  %v6093_v30 = vld [vmem:[%s8667_s1 + $0x28] sm:$0xff]  ;;  %v181_v51 = vld [vmem:[%s8669_s2 + $0x10] sm:$0xff]  ;;  %v46_v26 = vand.u32 127, %v43_v34 }
   0x6   :  { %7205 = vmatprep.subr.bf16.mxu0 %v7204_v19  ;;  %7191 = vmatpush3.bf16.msra.mxu1 %v7188_v17  ;;  %v7212_v31 = vpack.c.bf16 %v6093_v30, %v6092_v28  ;;  %v7704_v41 = vld [vmem:[%s8670_s9] sm:$0x3f]  ;;  %v182_v53 = vld [vmem:[%s8669_s2 + $0x18] sm:$0xff]  ;;  %v6094_v54 = vld [vmem:[%s8667_s1 + $0x30] sm:$0xff] }
   0x7   :  { %54 = vadd.xlane.f32.xlu0 %v53_v3  ;;  %7207 = vmatpush3.bf16.msra.mxu0 %v7204_v19  ;;  %v80_v43 = vrot.slane %v7704_v41, %v79_v40  ;;  %v86_v45 = vrot.slane %v7704_v41, %v85_v42  ;;  %v6095_v55 = vld [vmem:[%s8667_s1 + $0x38] sm:$0xff]  ;;  %v7200_v57 = vpack.c.bf16 %v182_v53, %v181_v51  ;;  %v6106_v59 = vld [vmem:[%s8668_s3 + $0x20] sm:$0xff]  ;;  %v6107_v60 = vld [vmem:[%s8668_s3 + $0x28] sm:$0xff]  ;;  %v7576_v3 = vmov 0.0  }
   0x8   :  { %7193 = vmatprep.subr.bf16.mxu1 %v7192_v23  ;;  %7209 = vmatprep.subr.bf16.mxu0 %v7208_v25  ;;  %v7216_v58 = vpack.c.bf16 %v6095_v55, %v6094_v54  ;;  %v7228_v61 = vpack.c.bf16 %v6107_v60, %v6106_v59  ;;  %v6108_v62 = vld [vmem:[%s8668_s3 + $0x30] sm:$0xff]  ;;  %v6109_v63 = vld [vmem:[%s8668_s3 + $0x38] sm:$0xff]  ;;  %v6077_v15 = vld [vmem:[%s8671_s4] ss:$0 sm:$0xff]  ;;  %vm7800_vm3 = vcmp.le.s32.totalorder %v46_v26, %v7698_v38 }
   0x9   :  { %v7232_v2 = vpack.c.bf16 %v6109_v63, %v6108_v62  ;;  %v6110_v19 = vld [vmem:[%s8671_s4 + $0x9] ss:$0 sm:$0xff]  ;;  %v6099_v55 = vld [vmem:[%s8669_s2 + $0x20] sm:$0xff]  ;;  %v6102_v62 = vld [vmem:[%s8669_s2 + $0x38] sm:$0xff] }
   0xa   :  { %7195 = vmatpush3.bf16.msra.mxu1 %v7192_v23 }
   0xb   :  { %7211 = vmatpush3.bf16.msra.mxu0 %v7208_v25  ;;  %7197 = vmatprep.subr.bf16.mxu1 %v7196_v29 }
   0xc   :  { %7213 = vmatprep.subr.bf16.mxu0 %v7212_v31 }
  0x90   :  { %v52_v4 = vpop.xlane.xlu0 %51 }
  0x91   :  { %v57_v5 = vmul.f32 0.03125, %v52_v4  ;;  %v6083_v4 = vld [vmem:[%s8671_s4 + $0x8] ss:$0 sm:$0xff] }
  0x93   :  { %v59_v6 = vsub.f32 %v7646_v0, %v57_v5 }
  0x94   :  { %v55_v7 = vpop.xlane.xlu0 %54 }
  0x95   :  { %v58_v8 = vmul.f32 0.03125, %v55_v7  ;;  %v61_v9 = vmul.f32 %v59_v6, %v59_v6 }
  0x97   :  { %v60_v10 = vsub.f32 %v7651_v1, %v58_v8  ;;  %v63_v11 = vsel %vm49_vm0, %v61_v9, 0.0 }
  0x98   :  { %64 = vadd.xlane.f32.xlu1 %v63_v11 }
  0x99   :  { %v62_v12 = vmul.f32 %v60_v10, %v60_v10 }
  0x9b   :  { %v66_v13 = vsel %vm49_vm0, %v62_v12, 0.0 }
  0x9c   :  { %67 = vadd.xlane.f32.xlu1 %v66_v13 }
 0x125   :  { %v65_v32 = vpop.xlane.xlu1 %64 }
 0x126   :  { %v69_v33 = vmul.f32 0.03125, %v65_v32 }
 0x128   :  { %v71_v35 = vadd.f32 1e-05, %v69_v33 }
 0x129   :  { %v68_v36 = vpop.xlane.xlu1 %67 }
 0x12a   :  { %7482 = vrsqrt.f32 %v71_v35  ;;  %v70_v37 = vmul.f32 0.03125, %v68_v36 }
 0x12c   :  { %v72_v39 = vadd.f32 1e-05, %v70_v37 }
 0x12e   :  { %7484 = vrsqrt.f32 %v72_v39 }
 0x134   :  { %v7483_v44 = vpop.eup %7482 }
 0x135   :  { %v75_v46 = vmul.f32 %v7483_v44, %v59_v6 }
 0x137   :  { %v81_v47 = vmul.f32 %v80_v43, %v75_v46 }
 0x138   :  { %v7485_v48 = vpop.eup %7484 }
 0x139   :  { %v7713_v49 = vadd.f32 %v86_v45, %v81_v47  ;;  %v76_v50 = vmul.f32 %v7485_v48, %v60_v10  ;;  %v6080_v10 = vld [vmem:[%s8671_s4 + $0x4] ss:$0 sm:$0xff] }
 0x13b   :  { %v82_v52 = vmul.f32 %v80_v43, %v76_v50  ;;  %6629 = vmatprep.mubr.msk.f32.mxu1 %vm49_vm0, %v7713_v49  ;;  %6651 = vmatprep.mubr.msk.f32.mxu0 %vm49_vm0, %v7713_v49 }
 0x13d   :  { %v7731_v56 = vadd.f32 %v86_v45, %v82_v52 }
 0x13f   :  { %6630 = vmatmul.mubr.msk.f32.vlgmr.msra.gmra.mrb[0].mxu1 %vm49_vm0, %v7731_v56  ;;  %6652 = vmatmul.mubr.msk.f32.vlgmr.msra.gmra.mrb[0].mxu0 %vm49_vm0, %v7731_v56 }
 0x140   :  { %7199 = vmatpush3.bf16.msra.mxu1 %v7196_v29  ;;  %7215 = vmatpush3.bf16.msra.mxu0 %v7212_v31 }
 0x141   :  { %6640 = vmatprep.mubr.msk.f32.mxu1 %vm49_vm0, %v7713_v49  ;;  %6682 = vmatprep.mubr.msk.f32.mxu0 %vm49_vm0, %v7713_v49 }
 0x142   :  { %7201 = vmatprep.subr.bf16.mxu1 %v7200_v57  ;;  %7217 = vmatprep.subr.bf16.mxu0 %v7216_v58 }
 0x144   :  { %7203 = vmatpush3.bf16.msra.mxu1 %v7200_v57  ;;  %7219 = vmatpush3.bf16.msra.mxu0 %v7216_v58  ;;  %v6100_v57 = vld [vmem:[%s8669_s2 + $0x28] sm:$0xff] }
 0x145   :  { %7229 = vmatprep.subr.bf16.mxu0 %v7228_v61  ;;  %6654 = vmatprep.subr.mxu1 %v7576_v3  ;;  %v7220_v60 = vpack.c.bf16 %v6100_v57, %v6099_v55  ;;  %v6138_v55 = vld [vmem:[%s8668_s3 + $0x40] sm:$0xff]  ;;  %v6139_v57 = vld [vmem:[%s8668_s3 + $0x48] sm:$0xff] }
 0x147   :  { %6641 = vmatmul.mubr.msk.f32.vlgmr.msra.gmra.mrb[2].mxu1 %vm49_vm0, %v7731_v56  ;;  %6683 = vmatmul.mubr.msk.f32.vlgmr.msra.gmra.mrb[2].mxu0 %vm49_vm0, %v7731_v56 }
 0x148   :  { %7231 = vmatpush3.bf16.msra.mxu0 %v7228_v61  ;;  %6704 = vmatprep.mubr.msk.f32.mxu0 %vm49_vm0, %v7713_v49  ;;  %v6101_v61 = vld [vmem:[%s8669_s2 + $0x30] sm:$0xff] }
 0x149   :  { %7233 = vmatprep.subr.bf16.mxu0 %v7232_v2  ;;  %6656 = vmatprep.mubr.msk.f32.mxu1 %vm7577_vm1, %v7576_v3 }
 0x14c   :  { %7235 = vmatpush3.bf16.msra.mxu0 %v7232_v2 }
 0x14d   :  { %6717 = vmatprep.subr.mxu0 %v7576_v3 }
 0x14f   :  { %6705 = vmatmul.mubr.msk.f32.vlgmr.msra.gmra.mrb[4].mxu0 %vm49_vm0, %v7731_v56 }
 0x150   :  { %6719 = vmatprep.mubr.msk.f32.mxu0 %vm7577_vm1, %v7576_v3 }
 0x212   :  { %v6631_v5 = vpop.f32.mrb[0].mxu1  ;;  %v6653_v6 = vpop.f32.mrb[0].mxu0 }
 0x213   :  { %v7770_v7 = vadd.f32 %v6653_v6, %v6083_v4  ;;  %v170_v8 = vpop.f32.mrb[1].mxu1  ;;  %v338_v9 = vpop.f32.mrb[1].mxu0  ;;  %v176_v21 = vadd.f32 %v6631_v5, %v6077_v15 }
 0x214   :  { %v171_v17 = vadd.f32 %v6077_v15, %v170_v8  ;;  %v339_v24 = vadd.f32 %v6083_v4, %v338_v9  ;;  %v7224_v4 = vpack.c.bf16 %v6102_v62, %v6101_v61  ;;  %v6103_v9 = vld [vmem:[%s8671_s4 + $0x5] ss:$0 sm:$0xff]  ;;  %v6119_v62 = vld [vmem:[%s8672_s5 + $0x8] sm:$0xff] }
 0x21a   :  { %v6642_v11 = vpop.f32.mrb[2].mxu1  ;;  %v7775_v12 = vpop.f32.mrb[2].mxu0 }
 0x21b   :  { %v254_v13 = vpop.f32.mrb[3].mxu1  ;;  %v7777_v14 = vpop.f32.mrb[3].mxu0  ;;  %v260_v18 = vadd.f32 %v6642_v11, %v6080_v10 }
 0x21c   :  { %v255_v16 = vadd.f32 %v6080_v10, %v254_v13  ;;  %v6096_v13 = vld [vmem:[%s8671_s4 + $0x1] ss:$0 sm:$0xff] }
 0x21e   :  { %6655 = vmatpush3.xpose.msk.msra.mxu1 %vm347_vm2, %v255_v16  ;;  %v750_v16 = vadd.f32 %v6096_v13, %v7777_v14 }
 0x21f   :  { %6659 = vmatprep.subr.mxu1 %v7576_v3 }
 0x221   :  { %6657 = vmatmul.mubr.msk.f32.vlgmr.msra.gmra.mrb[4].mxu1 %vm347_vm2, %v171_v17 }
 0x222   :  { %6660 = vmatpush3.xpose.msk.msra.mxu1 %vm347_vm2, %v260_v18  ;;  %v6706_v20 = vpop.f32.mrb[4].mxu0  ;;  %6661 = vmatprep.mubr.msk.f32.mxu1 %vm7577_vm1, %v7576_v3  ;;  %v755_v18 = vadd.f32 %v7775_v12, %v6096_v13  ;;  %v6133_v13 = vld [vmem:[%s8669_s2 + $0x50] sm:$0xff] }
 0x223   :  { %v7791_v22 = vadd.f32 %v6706_v20, %v6110_v19  ;;  %v919_v23 = vpop.f32.mrb[5].mxu0  ;;  %6664 = vmatprep.subr.mxu1 %v7576_v3 }
 0x224   :  { %v920_v25 = vadd.f32 %v6110_v19, %v919_v23 }
 0x225   :  { %6662 = vmatmul.mubr.msk.f32.vlgmr.msra.gmra.mrb[6].mxu1 %vm347_vm2, %v176_v21 }
 0x226   :  { %6665 = vmatpush3.msra.mxu1 %v339_v24  ;;  %6718 = vmatpush3.msra.mxu0 %v920_v25 }
 0x227   :  { %6666 = vmatprep.mubr.msk.f32.mxu1 %vm7577_vm1, %v7576_v3  ;;  %6669 = vmatprep.subr.mxu1 %v7576_v3 }
 0x228   :  { %6727 = vmatprep.subr.mxu0 %v6119_v62 }
 0x2f4   :  { %v420_v28 = vpop.f32.mrb[4].mxu1 }
 0x2f5   :  { %v500_v29 = vmul.f32 0.35355338, %v420_v28  ;;  %v6658_v30 = vpop.f32.mrb[5].mxu1 }
 0x2f7   :  { %v502_v31 = vsel %vm7800_vm3, %v500_v29, -1e+30 }
 0x2f8   :  { %v496_v32 = vpop.f32.mrb[6].mxu1  ;;  %v504_v33 = vsel %vm347_vm2, %v502_v31, -inf }
 0x2f9   :  { %v501_v35 = vmul.f32 0.35355338, %v496_v32  ;;  %505 = vmax.xlane.f32.xlu0 %v504_v33  ;;  %v6663_v36 = vpop.f32.mrb[7].mxu1 }
 0x2fb   :  { %v503_v34 = vsel %vm7800_vm3, %v501_v35, -1e+30 }
 0x2fc   :  { %v507_v37 = vsel %vm347_vm2, %v503_v34, -inf }
 0x2fd   :  { %508 = vmax.xlane.f32.xlu1 %v507_v37 }
 0x386   :  { %v506_v39 = vpop.xlane.xlu0 %505 }
 0x387   :  { %v510_v43 = vsub.f32 %v502_v31, %v506_v39  ;;  %v6124_v39 = vld [vmem:[%s8667_s1 + $0x40] sm:$0xff] }
 0x389   :  { %v512_v44 = vmul.f32 1.442695, %v510_v43  ;;  %v6125_v43 = vld [vmem:[%s8667_s1 + $0x48] sm:$0xff] }
 0x38a   :  { %v509_v45 = vpop.xlane.xlu1 %508 }
 0x38b   :  { %7486 = vpow2.f32 %v512_v44  ;;  %v511_v46 = vsub.f32 %v503_v34, %v509_v45  ;;  %v7236_v44 = vpack.c.bf16 %v6125_v43, %v6124_v39 }
 0x38d   :  { %v514_v47 = vmul.f32 1.442695, %v511_v46 }
 0x38f   :  { %7488 = vpow2.f32 %v514_v47 }
 0x395   :  { %v7487_v48 = vpop.eup %7486 }
 0x396   :  { %v516_v50 = vsel %vm347_vm2, %v7487_v48, 0.0 }
 0x397   :  { %517 = vadd.xlane.f32.xlu0 %v516_v50  ;;  %v6126_v50 = vld [vmem:[%s8667_s1 + $0x50] sm:$0xff] }
 0x399   :  { %v7489_v51 = vpop.eup %7488 }
 0x39a   :  { %v519_v52 = vsel %vm347_vm2, %v7489_v51, 0.0 }
 0x39b   :  { %520 = vadd.xlane.f32.xlu1 %v519_v52 }
 0x424   :  { %v518_v53 = vpop.xlane.xlu0 %517 }
 0x425   :  { %7490 = vrcp.f32 %v518_v53 }
 0x428   :  { %v521_v54 = vpop.xlane.xlu1 %520 }
 0x429   :  { %7492 = vrcp.f32 %v521_v54 }
 0x42f   :  { %v7491_v58 = vpop.eup %7490 }
 0x430   :  { %v523_v59 = vmul.f32 %v7491_v58, %v7487_v48  ;;  %v7252_v58 = vpack.c.bf16 %v6139_v57, %v6138_v55  ;;  %v6155_v55 = vld [vmem:[%s8667_s1 + $0x68] sm:$0xff] }
 0x432   :  { %6667 = vmatmul.mubr.msk.f32.vlgmr.msra.gmra.mrb[8].mxu1 %vm347_vm2, %v523_v59  ;;  %v6140_v59 = vld [vmem:[%s8668_s3 + $0x50] sm:$0xff] }
 0x433   :  { %v7493_v63 = vpop.eup %7492  ;;  %6670 = vmatpush3.msra.mxu1 %v7770_v7  ;;  %6671 = vmatprep.mubr.msk.f32.mxu1 %vm7577_vm1, %v7576_v3 }
 0x434   :  { %v525_v2 = vmul.f32 %v7493_v63, %v7489_v51  ;;  %7221 = vmatprep.subr.bf16.mxu1 %v7220_v60  ;;  %v6127_v51 = vld [vmem:[%s8667_s1 + $0x58] sm:$0xff]  ;;  %v672_v63 = vld [vmem:[%s8672_s5] sm:$0xff] }
 0x435   :  { %v7240_v54 = vpack.c.bf16 %v6127_v51, %v6126_v50 }
 0x436   :  { %6672 = vmatmul.mubr.msk.f32.vlgmr.msra.gmra.mrb[10].mxu1 %vm347_vm2, %v525_v2 }
 0x437   :  { %7223 = vmatpush3.bf16.msra.mxu1 %v7220_v60  ;;  %6693 = vmatprep.mubr.msk.f32.mxu1 %vm49_vm0, %v7713_v49  ;;  %v6141_v60 = vld [vmem:[%s8668_s3 + $0x58] sm:$0xff] }
 0x438   :  { %7225 = vmatprep.subr.bf16.mxu1 %v7224_v4  ;;  %v7256_v61 = vpack.c.bf16 %v6141_v60, %v6140_v59 }
 0x43b   :  { %7227 = vmatpush3.bf16.msra.mxu1 %v7224_v4  ;;  %v6131_v4 = vld [vmem:[%s8669_s2 + $0x40] sm:$0xff] }
 0x43c   :  { %6707 = vmatprep.subr.mxu1 %v7576_v3 }
 0x43e   :  { %6694 = vmatmul.mubr.msk.f32.vlgmr.msra.gmra.mrb[12].mxu1 %vm49_vm0, %v7731_v56 }
 0x43f   :  { %6709 = vmatprep.mubr.msk.f32.mxu1 %vm7577_vm1, %v7576_v3 }
 0x505   :  { %v7836_v5 = vpop.f32.mrb[8].mxu1 }
 0x506   :  { %v6668_v6 = vpop.f32.mrb[9].mxu1 }
 0x507   :  { %v6132_v6 = vld [vmem:[%s8669_s2 + $0x48] sm:$0xff] }
 0x509   :  { %v7838_v7 = vpop.f32.mrb[10].mxu1 }
 0x50a   :  { %v6673_v8 = vpop.f32.mrb[11].mxu1 }
 0x511   :  { %v6695_v10 = vpop.f32.mrb[12].mxu1 }
 0x512   :  { %v834_v11 = vpop.f32.mrb[13].mxu1  ;;  %v840_v17 = vadd.f32 %v6695_v10, %v6103_v9 }
 0x513   :  { %v835_v15 = vadd.f32 %v6103_v9, %v834_v11  ;;  %v7244_v9 = vpack.c.bf16 %v6132_v6, %v6131_v4 }
 0x515   :  { %6708 = vmatpush3.xpose.msk.msra.mxu1 %vm347_vm2, %v835_v15  ;;  %v6134_v15 = vld [vmem:[%s8669_s2 + $0x58] sm:$0xff] }
 0x516   :  { %6712 = vmatprep.subr.mxu1 %v7576_v3 }
 0x518   :  { %6710 = vmatmul.mubr.msk.f32.vlgmr.msra.gmra.mrb[14].mxu1 %vm347_vm2, %v750_v16  ;;  %v7248_v16 = vpack.c.bf16 %v6134_v15, %v6133_v13  ;;  %v6170_v13 = vld [vmem:[%s8668_s3 + $0x70] sm:$0xff]  ;;  %v6171_v15 = vld [vmem:[%s8668_s3 + $0x78] sm:$0xff] }
 0x519   :  { %6713 = vmatpush3.xpose.msk.msra.mxu1 %vm347_vm2, %v840_v17  ;;  %6714 = vmatprep.mubr.msk.f32.mxu1 %vm7577_vm1, %v7576_v3 }
 0x51a   :  { %6722 = vmatprep.subr.mxu1 %v7576_v3 }
 0x51c   :  { %6715 = vmatmul.mubr.msk.f32.vlgmr.msra.gmra.mrb[16].mxu1 %vm347_vm2, %v755_v18 }
 0x51d   :  { %6723 = vmatpush3.msra.mxu1 %v7791_v22  ;;  %6724 = vmatprep.mubr.msk.f32.mxu1 %vm7577_vm1, %v7576_v3 }
 0x51e   :  { %7237 = vmatprep.subr.bf16.mxu1 %v7236_v44 }
 0x5eb   :  { %v1000_v14 = vpop.f32.mrb[14].mxu1 }
 0x5ec   :  { %v1080_v19 = vmul.f32 0.35355338, %v1000_v14  ;;  %v6711_v20 = vpop.f32.mrb[15].mxu1 }
 0x5ed   :  { %v6128_v20 = vld [vmem:[%s8671_s4 + $0x2] ss:$0 sm:$0xff] }
 0x5ee   :  { %v1082_v21 = vsel %vm7800_vm3, %v1080_v19, -1e+30 }
 0x5ef   :  { %v1076_v23 = vpop.f32.mrb[16].mxu1  ;;  %v1084_v24 = vsel %vm347_vm2, %v1082_v21, -inf }
 0x5f0   :  { %v1081_v25 = vmul.f32 0.35355338, %v1076_v23  ;;  %1085 = vmax.xlane.f32.xlu0 %v1084_v24  ;;  %v6716_v12 = vpop.f32.mrb[17].mxu1  ;;  %v6142_v24 = vld [vmem:[%s8671_s4 + $0xa] ss:$0 sm:$0xff] }
 0x5f2   :  { %v1083_v26 = vsel %vm7800_vm3, %v1081_v25, -1e+30 }
 0x5f3   :  { %v1087_v22 = vsel %vm347_vm2, %v1083_v26, -inf }
 0x5f4   :  { %1088 = vmax.xlane.f32.xlu1 %v1087_v22 }
 0x67d   :  { %v1086_v28 = vpop.xlane.xlu0 %1085 }
 0x67e   :  { %v1090_v29 = vsub.f32 %v1082_v21, %v1086_v28 }
 0x680   :  { %v1092_v30 = vmul.f32 1.442695, %v1090_v29 }
 0x681   :  { %v1089_v31 = vpop.xlane.xlu1 %1088 }
 0x682   :  { %7494 = vpow2.f32 %v1092_v30  ;;  %v1091_v32 = vsub.f32 %v1083_v26, %v1089_v31 }
 0x684   :  { %v1094_v33 = vmul.f32 1.442695, %v1091_v32 }
 0x686   :  { %7496 = vpow2.f32 %v1094_v33 }
 0x68c   :  { %v7495_v35 = vpop.eup %7494 }
 0x68d   :  { %v1096_v36 = vsel %vm347_vm2, %v7495_v35, 0.0 }
 0x68e   :  { %1097 = vadd.xlane.f32.xlu0 %v1096_v36 }
 0x690   :  { %v7497_v34 = vpop.eup %7496 }
 0x691   :  { %v1099_v37 = vsel %vm347_vm2, %v7497_v34, 0.0 }
 0x692   :  { %1100 = vadd.xlane.f32.xlu1 %v1099_v37 }
 0x71b   :  { %v1098_v45 = vpop.xlane.xlu0 %1097 }
 0x71c   :  { %7498 = vrcp.f32 %v1098_v45 }
 0x71f   :  { %v1101_v46 = vpop.xlane.xlu1 %1100 }
 0x720   :  { %7500 = vrcp.f32 %v1101_v46 }
 0x726   :  { %v7499_v47 = vpop.eup %7498 }
 0x727   :  { %v1103_v48 = vmul.f32 %v7499_v47, %v7495_v35 }
 0x729   :  { %6720 = vmatmul.mubr.msk.f32.vlgmr.msra.gmra.mrb[6].mxu0 %vm347_vm2, %v1103_v48 }
 0x72a   :  { %v7501_v52 = vpop.eup %7500  ;;  %6728 = vmatpush3.msra.mxu0 %v6119_v62  ;;  %v6157_v62 = vld [vmem:[%s8667_s1 + $0x78] sm:$0xff] }
 0x72b   :  { %v1105_v53 = vmul.f32 %v7501_v52, %v7497_v34  ;;  %6732 = vmatprep.subr.mxu0 %v672_v63 }
 0x72d   :  { %6725 = vmatmul.mubr.msk.f32.vlgmr.msra.gmra.mrb[18].mxu1 %vm347_vm2, %v1105_v53 }
 0x72e   :  { %7239 = vmatpush3.bf16.msra.mxu1 %v7236_v44  ;;  %6745 = vmatprep.mubr.msk.f32.mxu1 %vm49_vm0, %v7713_v49 }
 0x72f   :  { %7241 = vmatprep.subr.bf16.mxu1 %v7240_v54 }
 0x732   :  { %7243 = vmatpush3.bf16.msra.mxu1 %v7240_v54  ;;  %v6154_v54 = vld [vmem:[%s8667_s1 + $0x60] sm:$0xff] }
 0x733   :  { %7253 = vmatprep.subr.bf16.mxu1 %v7252_v58  ;;  %v7260_v57 = vpack.c.bf16 %v6155_v55, %v6154_v54 }
 0x735   :  { %6746 = vmatmul.mubr.msk.f32.vlgmr.msra.gmra.mrb[20].mxu1 %vm49_vm0, %v7731_v56 }
 0x736   :  { %7255 = vmatpush3.bf16.msra.mxu1 %v7252_v58  ;;  %6767 = vmatprep.mubr.msk.f32.mxu1 %vm49_vm0, %v7713_v49  ;;  %v6151_v58 = vld [vmem:[%s8672_s5 + $0x10] sm:$0xff] }
 0x737   :  { %7257 = vmatprep.subr.bf16.mxu1 %v7256_v61 }
 0x73a   :  { %7259 = vmatpush3.bf16.msra.mxu1 %v7256_v61  ;;  %v6156_v61 = vld [vmem:[%s8667_s1 + $0x70] sm:$0xff] }
 0x73b   :  { %6775 = vmatprep.subr.mxu1 %v7576_v3  ;;  %v7264_v6 = vpack.c.bf16 %v6157_v62, %v6156_v61 }
 0x73d   :  { %6768 = vmatmul.mubr.msk.f32.vlgmr.msra.gmra.mrb[22].mxu1 %vm49_vm0, %v7731_v56 }
 0x73e   :  { %6777 = vmatprep.mubr.msk.f32.mxu1 %vm7577_vm1, %v7576_v3 }
 0x7fc   :  { %v1175_v2 = vpop.f32.mrb[6].mxu0 }
 0x7fd   :  { %v6721_v8 = vpop.f32.mrb[7].mxu0  ;;  %6729 = vmatprep.mubr.msk.f32.mxu0 %vm347_vm2, %v1175_v2 }
 0x800   :  { %v1248_v10 = vpop.f32.mrb[18].mxu1 }
 0x801   :  { %v6726_v11 = vpop.f32.mrb[19].mxu1  ;;  %6730 = vmatmul.mubr.msk.f32.vlgmr.msra.gmra.mrb[8].mxu0 %vm347_vm2, %v1248_v10  ;;  %v6169_v10 = vld [vmem:[%s8668_s3 + $0x68] sm:$0xff] }
 0x802   :  { %6733 = vmatpush3.msra.mxu0 %v672_v63  ;;  %6734 = vmatprep.mubr.msk.f32.mxu0 %vm347_vm2, %v7836_v5 }
 0x803   :  { %7245 = vmatprep.subr.bf16.mxu0 %v7244_v9 }
 0x808   :  { %v6747_v17 = vpop.f32.mrb[20].mxu1 }
 0x809   :  { %v1492_v18 = vpop.f32.mrb[21].mxu1  ;;  %6735 = vmatmul.mubr.msk.f32.vlgmr.msra.gmra.mrb[8].mxu0 %vm347_vm2, %v7838_v7  ;;  %v6135_v7 = vld [vmem:[%s8671_s4 + $0x6] ss:$0 sm:$0xff]  ;;  %v1498_v12 = vadd.f32 %v6747_v17, %v6128_v20 }
 0x80a   :  { %7247 = vmatpush3.bf16.msra.mxu0 %v7244_v9  ;;  %6756 = vmatprep.mubr.msk.f32.mxu0 %vm49_vm0, %v7713_v49  ;;  %v1493_v26 = vadd.f32 %v6128_v20, %v1492_v18  ;;  %v6168_v9 = vld [vmem:[%s8668_s3 + $0x60] sm:$0xff]  ;;  %v6162_v18 = vld [vmem:[%s8669_s2 + $0x68] sm:$0xff] }
 0x80b   :  { %7249 = vmatprep.subr.bf16.mxu0 %v7248_v16  ;;  %v7276_v11 = vpack.c.bf16 %v6169_v10, %v6168_v9  ;;  %v6161_v17 = vld [vmem:[%s8669_s2 + $0x60] sm:$0xff]  ;;  %v6181_v10 = vld [vmem:[%s8672_s5 + $0x18] sm:$0xff] }
 0x80e   :  { %7251 = vmatpush3.bf16.msra.mxu0 %v7248_v16  ;;  %v7280_v16 = vpack.c.bf16 %v6171_v15, %v6170_v13 }
 0x80f   :  { %6770 = vmatprep.subr.mxu0 %v7576_v3 }
 0x810   :  { %v6769_v5 = vpop.f32.mrb[22].mxu1 }
 0x811   :  { %6757 = vmatmul.mubr.msk.f32.vlgmr.msra.gmra.mrb[10].mxu0 %vm49_vm0, %v7731_v56  ;;  %v1662_v14 = vpop.f32.mrb[23].mxu1  ;;  %v1668_v22 = vadd.f32 %v6769_v5, %v6142_v24  ;;  %v7268_v5 = vpack.c.bf16 %v6162_v18, %v6161_v17  ;;  %v2748_v17 = vsub.s32 2, %v7698_v38 }
 0x812   :  { %6772 = vmatprep.mubr.msk.f32.mxu0 %vm7577_vm1, %v7576_v3  ;;  %v1663_v28 = vadd.f32 %v6142_v24, %v1662_v14  ;;  %v6163_v14 = vld [vmem:[%s8669_s2 + $0x70] sm:$0xff] }
 0x813   :  { %v2749_v18 = vrot.slane %v7704_v41, %v2748_v17 }
 0x8e4   :  { %v6758_v19 = vpop.f32.mrb[10].mxu0 }
 0x8e5   :  { %v1583_v21 = vadd.f32 %v6758_v19, %v6135_v7  ;;  %v1577_v23 = vpop.f32.mrb[11].mxu0 }
 0x8e6   :  { %v1578_v25 = vadd.f32 %v6135_v7, %v1577_v23  ;;  %v6164_v7 = vld [vmem:[%s8669_s2 + $0x78] sm:$0xff] }
 0x8e7   :  { %6776 = vmatpush3.xpose.msk.msra.mxu1 %vm347_vm2, %v1583_v21  ;;  %v7272_v23 = vpack.c.bf16 %v6164_v7, %v6163_v14 }
 0x8e8   :  { %6771 = vmatpush3.xpose.msk.msra.mxu0 %vm347_vm2, %v1578_v25  ;;  %6785 = vmatprep.subr.mxu1 %v7576_v3 }
 0x8e9   :  { %6780 = vmatprep.subr.mxu0 %v7576_v3 }
 0x8ea   :  { %6778 = vmatmul.mubr.msk.f32.vlgmr.msra.gmra.mrb[24].mxu1 %vm347_vm2, %v1498_v12 }
 0x8eb   :  { %6773 = vmatmul.mubr.msk.f32.vlgmr.msra.gmra.mrb[12].mxu0 %vm347_vm2, %v1493_v26  ;;  %6786 = vmatpush3.msra.mxu1 %v1668_v22  ;;  %v6172_v26 = vld [vmem:[%s8671_s4 + $0xb] ss:$0 sm:$0xff] }
 0x8ec   :  { %6781 = vmatpush3.msra.mxu0 %v1663_v28  ;;  %6787 = vmatprep.mubr.msk.f32.mxu1 %vm7577_vm1, %v7576_v3 }
 0x8ed   :  { %6782 = vmatprep.mubr.msk.f32.mxu0 %vm7577_vm1, %v7576_v3  ;;  %7261 = vmatprep.subr.bf16.mxu1 %v7260_v57 }
 0x8ee   :  { %6790 = vmatprep.subr.mxu0 %v6151_v58 }
 0x9bd   :  { %v1819_v29 = vpop.f32.mrb[24].mxu1 }
 0x9be   :  { %v1824_v30 = vmul.f32 0.35355338, %v1819_v29  ;;  %v1743_v31 = vpop.f32.mrb[12].mxu0  ;;  %v6779_v32 = vpop.f32.mrb[25].mxu1 }
 0x9bf   :  { %v1823_v33 = vmul.f32 0.35355338, %v1743_v31  ;;  %v6774_v35 = vpop.f32.mrb[13].mxu0 }
 0x9c0   :  { %v1826_v36 = vsel %vm7800_vm3, %v1824_v30, -1e+30  ;;  %v6165_v30 = vld [vmem:[%s8671_s4 + $0x7] ss:$0 sm:$0xff] }
 0x9c1   :  { %v1830_v34 = vsel %vm347_vm2, %v1826_v36, -inf  ;;  %v1825_v37 = vsel %vm7800_vm3, %v1823_v33, -1e+30 }
 0x9c2   :  { %1831 = vmax.xlane.f32.xlu1 %v1830_v34  ;;  %v1827_v39 = vsel %vm347_vm2, %v1825_v37, -inf }
 0x9c3   :  { %1828 = vmax.xlane.f32.xlu0 %v1827_v39 }
 0xa4f   :  { %v1832_v43 = vpop.xlane.xlu1 %1831 }
 0xa50   :  { %v1834_v44 = vsub.f32 %v1826_v36, %v1832_v43  ;;  %v1829_v45 = vpop.xlane.xlu0 %1828 }
 0xa51   :  { %v1833_v46 = vsub.f32 %v1825_v37, %v1829_v45 }
 0xa52   :  { %v1837_v47 = vmul.f32 1.442695, %v1834_v44 }
 0xa53   :  { %v1835_v48 = vmul.f32 1.442695, %v1833_v46 }
 0xa54   :  { %7502 = vpow2.f32 %v1837_v47 }
 0xa55   :  { %7504 = vpow2.f32 %v1835_v48 }
 0xa5e   :  { %v7503_v50 = vpop.eup %7502 }
 0xa5f   :  { %v7505_v51 = vpop.eup %7504  ;;  %v1842_v52 = vsel %vm347_vm2, %v7503_v50, 0.0 }
 0xa60   :  { %1843 = vadd.xlane.f32.xlu1 %v1842_v52  ;;  %v1839_v53 = vsel %vm347_vm2, %v7505_v51, 0.0 }
 0xa61   :  { %1840 = vadd.xlane.f32.xlu0 %v1839_v53 }
 0xaed   :  { %v1844_v59 = vpop.xlane.xlu1 %1843 }
 0xaee   :  { %7506 = vrcp.f32 %v1844_v59  ;;  %v1841_v60 = vpop.xlane.xlu0 %1840 }
 0xaef   :  { %7508 = vrcp.f32 %v1841_v60 }
 0xaf8   :  { %v7507_v63 = vpop.eup %7506 }
 0xaf9   :  { %v7509_v2 = vpop.eup %7508  ;;  %v1848_v4 = vmul.f32 %v7507_v63, %v7503_v50 }
 0xafa   :  { %v1846_v8 = vmul.f32 %v7509_v2, %v7505_v51 }
 0xafb   :  { %6788 = vmatmul.mubr.msk.f32.vlgmr.msra.gmra.mrb[26].mxu1 %vm347_vm2, %v1848_v4 }
 0xafc   :  { %7263 = vmatpush3.bf16.msra.mxu1 %v7260_v57  ;;  %6783 = vmatmul.mubr.msk.f32.vlgmr.msra.gmra.mrb[14].mxu0 %vm347_vm2, %v1846_v8 }
 0xafd   :  { %6803 = vmatprep.mubr.msk.f32.mxu1 %vm49_vm0, %v7713_v49  ;;  %7265 = vmatprep.subr.bf16.mxu1 %v7264_v6 }
 0xafe   :  { %6791 = vmatpush3.msra.mxu0 %v6151_v58 }
 0xaff   :  { %7269 = vmatprep.subr.bf16.mxu0 %v7268_v5 }
 0xb00   :  { %7267 = vmatpush3.bf16.msra.mxu1 %v7264_v6 }
 0xb01   :  { %7277 = vmatprep.subr.bf16.mxu1 %v7276_v11 }
 0xb03   :  { %6804 = vmatmul.mubr.msk.f32.vlgmr.msra.gmra.mrb[28].mxu1 %vm49_vm0, %v7731_v56 }
 0xb04   :  { %7279 = vmatpush3.bf16.msra.mxu1 %v7276_v11  ;;  %6825 = vmatprep.mubr.msk.f32.mxu1 %vm49_vm0, %v7713_v49 }
 0xb05   :  { %7281 = vmatprep.subr.bf16.mxu1 %v7280_v16 }
 0xb08   :  { %7283 = vmatpush3.bf16.msra.mxu1 %v7280_v16 }
 0xb09   :  { %6838 = vmatprep.subr.mxu1 %v7576_v3 }
 0xb0b   :  { %6826 = vmatmul.mubr.msk.f32.vlgmr.msra.gmra.mrb[30].mxu1 %vm49_vm0, %v7731_v56 }
 0xb0c   :  { %6840 = vmatprep.mubr.msk.f32.mxu1 %vm7577_vm1, %v7576_v3 }
 0xbce   :  { %v1991_v19 = vpop.f32.mrb[26].mxu1 }
 0xbcf   :  { %v1918_v20 = vpop.f32.mrb[14].mxu0  ;;  %v6789_v21 = vpop.f32.mrb[27].mxu1 }
 0xbd0   :  { %v6784_v24 = vpop.f32.mrb[15].mxu0  ;;  %6792 = vmatprep.mubr.msk.f32.mxu0 %vm347_vm2, %v1918_v20 }
 0xbd1   :  { %6793 = vmatmul.mubr.msk.f32.vlgmr.msra.gmra.mrb[8].mxu0 %vm347_vm2, %v1991_v19 }
 0xbd2   :  { %7271 = vmatpush3.bf16.msra.mxu0 %v7268_v5  ;;  %6814 = vmatprep.mubr.msk.f32.mxu0 %vm49_vm0, %v7713_v49 }
 0xbd3   :  { %7273 = vmatprep.subr.bf16.mxu0 %v7272_v23 }
 0xbd6   :  { %v6805_v25 = vpop.f32.mrb[28].mxu1  ;;  %7275 = vmatpush3.bf16.msra.mxu0 %v7272_v23 }
 0xbd7   :  { %v2156_v12 = vpop.f32.mrb[29].mxu1  ;;  %6828 = vmatprep.subr.mxu0 %v7576_v3 }
 0xbd9   :  { %6815 = vmatmul.mubr.msk.f32.vlgmr.msra.gmra.mrb[16].mxu0 %vm49_vm0, %v7731_v56  ;;  %v6158_v56 = vld [vmem:[%s8671_s4 + $0x3] ss:$0 sm:$0xff] }
 0xbda   :  { %6830 = vmatprep.mubr.msk.f32.mxu0 %vm7577_vm1, %v7576_v3  ;;  %v2157_v35 = vadd.f32 %v6158_v56, %v2156_v12  ;;  %v2162_v34 = vadd.f32 %v6805_v25, %v6158_v56 }
 0xbde   :  { %v6827_v22 = vpop.f32.mrb[30].mxu1 }
 0xbdf   :  { %v2332_v28 = vadd.f32 %v6827_v22, %v6172_v26  ;;  %v2326_v29 = vpop.f32.mrb[31].mxu1 }
 0xbe0   :  { %v2327_v49 = vadd.f32 %v6172_v26, %v2326_v29 }
 0xbe2   :  { %6839 = vmatpush3.msra.mxu1 %v2327_v49 }
 0xcac   :  { %v6816_v31 = vpop.f32.mrb[16].mxu0 }
 0xcad   :  { %v2241_v32 = vpop.f32.mrb[17].mxu0  ;;  %v2247_v36 = vadd.f32 %v6816_v31, %v6165_v30  ;;  %v2790_v31 = vld [vmem:[%s8673_s6] sm:$0xff] }
 0xcae   :  { %v2242_v33 = vadd.f32 %v6165_v30, %v2241_v32  ;;  %v2791_v32 = vld [vmem:[%s8673_s6 + $0x8] sm:$0xff] }
 0xcaf   :  { %v7284_v56 = vpack.c.bf16 %v2791_v32, %v2790_v31 }
 0xcb0   :  { %6829 = vmatpush3.xpose.msk.msra.mxu0 %vm347_vm2, %v2242_v33  ;;  %v2792_v33 = vld [vmem:[%s8673_s6 + $0x10] sm:$0xff] }
 0xcb1   :  { %6833 = vmatprep.subr.mxu0 %v7576_v3  ;;  %7285 = vmatprep.subr.bf16.mxu1 %v7284_v56 }
 0xcb3   :  { %6831 = vmatmul.mubr.msk.f32.vlgmr.msra.gmra.mrb[18].mxu0 %vm347_vm2, %v2157_v35  ;;  %v2793_v35 = vld [vmem:[%s8673_s6 + $0x18] sm:$0xff] }
 0xcb4   :  { %6834 = vmatpush3.xpose.msk.msra.mxu0 %vm347_vm2, %v2247_v36  ;;  %6835 = vmatprep.mubr.msk.f32.mxu0 %vm7577_vm1, %v7576_v3  ;;  %v7288_v36 = vpack.c.bf16 %v2793_v35, %v2792_v33 }
 0xcb5   :  { %6843 = vmatprep.subr.mxu0 %v7576_v3 }
 0xcb7   :  { %6836 = vmatmul.mubr.msk.f32.vlgmr.msra.gmra.mrb[20].mxu0 %vm347_vm2, %v2162_v34 }
 0xcb8   :  { %6844 = vmatpush3.msra.mxu0 %v2332_v28  ;;  %6845 = vmatprep.mubr.msk.f32.mxu0 %vm7577_vm1, %v7576_v3 }
 0xcb9   :  { %6848 = vmatprep.subr.mxu0 %v6181_v10 }
 0xd86   :  { %v2407_v37 = vpop.f32.mrb[18].mxu0 }
 0xd87   :  { %v2487_v39 = vmul.f32 0.35355338, %v2407_v37  ;;  %v6832_v43 = vpop.f32.mrb[19].mxu0 }
 0xd89   :  { %v2489_v44 = vsel %vm7800_vm3, %v2487_v39, -1e+30 }
 0xd8a   :  { %v2483_v45 = vpop.f32.mrb[20].mxu0  ;;  %v2491_v46 = vsel %vm347_vm2, %v2489_v44, -inf }
 0xd8b   :  { %v2488_v47 = vmul.f32 0.35355338, %v2483_v45  ;;  %2492 = vmax.xlane.f32.xlu0 %v2491_v46  ;;  %v6837_v48 = vpop.f32.mrb[21].mxu0  ;;  %v2780_v46 = vsub.s32 3, %v7698_v38 }
 0xd8d   :  { %v2490_v50 = vsel %vm7800_vm3, %v2488_v47, -1e+30  ;;  %v2786_v47 = vsub.s32 4, %v7698_v38  ;;  %v2781_v48 = vrot.slane %v7704_v41, %v2780_v46 }
 0xd8e   :  { %v2494_v51 = vsel %vm347_vm2, %v2490_v50, -inf }
 0xd8f   :  { %2495 = vmax.xlane.f32.xlu1 %v2494_v51 }
 0xe18   :  { %v2493_v52 = vpop.xlane.xlu0 %2492 }
 0xe19   :  { %v2497_v53 = vsub.f32 %v2489_v44, %v2493_v52 }
 0xe1b   :  { %v2499_v54 = vmul.f32 1.442695, %v2497_v53 }
 0xe1c   :  { %v2496_v55 = vpop.xlane.xlu1 %2495 }
 0xe1d   :  { %7510 = vpow2.f32 %v2499_v54  ;;  %v2498_v57 = vsub.f32 %v2490_v50, %v2496_v55  ;;  %v2787_v54 = vrot.slane %v7704_v41, %v2786_v47  ;;  %v2900_v41 = vld [vmem:[%s8674_s8 + $0x10] sm:$0xff] }
 0xe1f   :  { %v2501_v58 = vmul.f32 1.442695, %v2498_v57 }
 0xe21   :  { %7512 = vpow2.f32 %v2501_v58 }
 0xe27   :  { %v7511_v59 = vpop.eup %7510 }
 0xe28   :  { %v2503_v60 = vsel %vm347_vm2, %v7511_v59, 0.0 }
 0xe29   :  { %2504 = vadd.xlane.f32.xlu0 %v2503_v60  ;;  %v2898_v60 = vld [vmem:[%s8674_s8] sm:$0xff] }
 0xe2b   :  { %v7513_v61 = vpop.eup %7512 }
 0xe2c   :  { %v2506_v62 = vsel %vm347_vm2, %v7513_v61, 0.0 }
 0xe2d   :  { %2507 = vadd.xlane.f32.xlu1 %v2506_v62 }
 0xeb6   :  { %v2505_v63 = vpop.xlane.xlu0 %2504 }
 0xeb7   :  { %7514 = vrcp.f32 %v2505_v63  ;;  %v2901_v63 = vld [vmem:[%s8674_s8 + $0x18] sm:$0xff] }
 0xeba   :  { %v2508_v2 = vpop.xlane.xlu1 %2507 }
 0xebb   :  { %7516 = vrcp.f32 %v2508_v2  ;;  %v7296_v2 = vpack.c.bf16 %v2901_v63, %v2900_v41 }
 0xec1   :  { %v7515_v4 = vpop.eup %7514 }
 0xec2   :  { %v2510_v6 = vmul.f32 %v7515_v4, %v7511_v59  ;;  %v2902_v4 = vld [vmem:[%s8674_s8 + $0x20] sm:$0xff] }
 0xec4   :  { %6841 = vmatmul.mubr.msk.f32.vlgmr.msra.gmra.mrb[32].mxu1 %vm347_vm2, %v2510_v6  ;;  %v2903_v6 = vld [vmem:[%s8674_s8 + $0x28] sm:$0xff] }
 0xec5   :  { %v7517_v8 = vpop.eup %7516  ;;  %7287 = vmatpush3.bf16.msra.mxu1 %v7284_v56 }
 0xec6   :  { %v2512_v9 = vmul.f32 %v7517_v8, %v7513_v61  ;;  %7289 = vmatprep.subr.bf16.mxu1 %v7288_v36  ;;  %v2899_v61 = vld [vmem:[%s8674_s8 + $0x8] sm:$0xff]  ;;  %v7300_v8 = vpack.c.bf16 %v2903_v6, %v2902_v4 }
 0xec7   :  { %v7292_v62 = vpack.c.bf16 %v2899_v61, %v2898_v60 }
 0xec8   :  { %6846 = vmatmul.mubr.msk.f32.vlgmr.msra.gmra.mrb[22].mxu0 %vm347_vm2, %v2512_v9  ;;  %v2904_v9 = vld [vmem:[%s8674_s8 + $0x30] sm:$0xff] }
 0xec9   :  { %6849 = vmatpush3.msra.mxu0 %v6181_v10  ;;  %7291 = vmatpush3.bf16.msra.mxu1 %v7288_v36  ;;  %v2905_v10 = vld [vmem:[%s8674_s8 + $0x38] sm:$0xff] }
 0xeca   :  { %7293 = vmatprep.subr.bf16.mxu0 %v7292_v62 }
 0xf97   :  { %v2582_v11 = vpop.f32.mrb[32].mxu1 }
 0xf98   :  { %v6842_v13 = vpop.f32.mrb[33].mxu1  ;;  %6850 = vmatprep.mubr.msk.f32.mxu0 %vm347_vm2, %v2582_v11  ;;  %v7304_v11 = vpack.c.bf16 %v2905_v10, %v2904_v9 }
 0xf99   :  { %v2906_v13 = vld [vmem:[%s8674_s8 + $0x40] sm:$0xff] }
 0xf9b   :  { %v2655_v15 = vpop.f32.mrb[22].mxu0 }
 0xf9c   :  { %v6847_v16 = vpop.f32.mrb[23].mxu0  ;;  %6851 = vmatmul.mubr.msk.f32.vlgmr.msra.gmra.mrb[8].mxu0 %vm347_vm2, %v2655_v15  ;;  %v2907_v15 = vld [vmem:[%s8674_s8 + $0x48] sm:$0xff] }
 0xf9d   :  { %7295 = vmatpush3.bf16.msra.mxu0 %v7292_v62  ;;  %v2908_v16 = vld [vmem:[%s8674_s8 + $0x50] sm:$0xff] }
 0xf9e   :  { %7297 = vmatprep.subr.bf16.mxu0 %v7296_v2 }
 0xfa1   :  { %7299 = vmatpush3.bf16.msra.mxu0 %v7296_v2 }
 0xfa2   :  { %7301 = vmatprep.subr.bf16.mxu0 %v7300_v8 }
 0xfa5   :  { %7303 = vmatpush3.bf16.msra.mxu0 %v7300_v8 }
 0xfa6   :  { %7305 = vmatprep.subr.bf16.mxu0 %v7304_v11 }
 0xfa9   :  { %7307 = vmatpush3.bf16.msra.mxu0 %v7304_v11 }
0x106f   :  { %v6852_v5 = vpop.f32.mrb[8].mxu0 }
0x1070   :  { %v2745_v14 = vadd.f32 %v6852_v5, %v7651_v1  ;;  %v2733_v7 = vpop.f32.mrb[9].mxu0  ;;  %v2909_v5 = vld [vmem:[%s8674_s8 + $0x58] sm:$0xff] }
0x1071   :  { %v2744_v19 = vadd.f32 %v2733_v7, %v7646_v0  ;;  %v2910_v7 = vld [vmem:[%s8674_s8 + $0x60] sm:$0xff] }
0x1072   :  { %v8063_v20 = vadd.f32 %v2749_v18, %v2745_v14  ;;  %v7312_v14 = vpack.c.bf16 %v2909_v5, %v2908_v16  ;;  %v6191_v5 = vld [vmem:[%s8667_s1 + $0x98] sm:$0xff] }
0x1073   :  { %v8065_v21 = vadd.f32 %v2749_v18, %v2744_v19  ;;  %v7308_v18 = vpack.c.bf16 %v2907_v15, %v2906_v13  ;;  %v2911_v19 = vld [vmem:[%s8674_s8 + $0x68] sm:$0xff]  ;;  %v6188_v13 = vld [vmem:[%s8667_s1 + $0x80] sm:$0xff] }
0x1074   :  { %v2755_v23 = vsel %vm49_vm0, %v8063_v20, 0.0  ;;  %v6189_v15 = vld [vmem:[%s8667_s1 + $0x88] sm:$0xff] }
0x1075   :  { %2756 = vadd.xlane.f32.xlu1 %v2755_v23  ;;  %v2752_v24 = vsel %vm49_vm0, %v8065_v21, 0.0  ;;  %7309 = vmatprep.subr.bf16.mxu0 %v7308_v18  ;;  %v7316_v23 = vpack.c.bf16 %v2911_v19, %v2910_v7  ;;  %v7324_v16 = vpack.c.bf16 %v6189_v15, %v6188_v13  ;;  %v6195_v7 = vld [vmem:[%s8669_s2 + $0x80] sm:$0xff]  ;;  %v6196_v19 = vld [vmem:[%s8669_s2 + $0x88] sm:$0xff] }
0x1076   :  { %2753 = vadd.xlane.f32.xlu0 %v2752_v24  ;;  %7311 = vmatpush3.bf16.msra.mxu0 %v7308_v18  ;;  %v2912_v24 = vld [vmem:[%s8674_s8 + $0x70] sm:$0xff] }
0x1077   :  { %7313 = vmatprep.subr.bf16.mxu0 %v7312_v14  ;;  %7325 = vmatprep.subr.bf16.mxu1 %v7324_v16  ;;  %v6190_v18 = vld [vmem:[%s8667_s1 + $0x90] sm:$0xff] }
0x107a   :  { %7315 = vmatpush3.bf16.msra.mxu0 %v7312_v14  ;;  %v7328_v14 = vpack.c.bf16 %v6191_v5, %v6190_v18 }
0x107b   :  { %7317 = vmatprep.subr.bf16.mxu0 %v7316_v23 }
0x107e   :  { %7319 = vmatpush3.bf16.msra.mxu0 %v7316_v23  ;;  %v7332_v23 = vpack.c.bf16 %v6196_v19, %v6195_v7 }
0x1102   :  { %v2757_v25 = vpop.xlane.xlu1 %2756 }
0x1103   :  { %v2759_v12 = vmul.f32 0.03125, %v2757_v25  ;;  %v2754_v26 = vpop.xlane.xlu0 %2753  ;;  %v2913_v25 = vld [vmem:[%s8674_s8 + $0x78] sm:$0xff] }
0x1104   :  { %v2758_v22 = vmul.f32 0.03125, %v2754_v26  ;;  %v6184_v26 = vld [vmem:[%s8675_s7] ss:$0 sm:$0xff] }
0x1105   :  { %v2761_v1 = vsub.f32 %v8063_v20, %v2759_v12  ;;  %v7320_v12 = vpack.c.bf16 %v2913_v25, %v2912_v24 }
0x1106   :  { %v2760_v0 = vsub.f32 %v8065_v21, %v2758_v22 }
0x1107   :  { %v2763_v28 = vmul.f32 %v2761_v1, %v2761_v1  ;;  %7321 = vmatprep.subr.bf16.mxu0 %v7320_v12 }
0x1108   :  { %v2762_v29 = vmul.f32 %v2760_v0, %v2760_v0  ;;  %7323 = vmatpush3.bf16.msra.mxu0 %v7320_v12 }
0x1109   :  { %v2767_v49 = vsel %vm49_vm0, %v2763_v28, 0.0  ;;  %6942 = vmatprep.subr.mxu0 %v7576_v3 }
0x110a   :  { %2768 = vadd.xlane.f32.xlu1 %v2767_v49  ;;  %v2764_v30 = vsel %vm49_vm0, %v2762_v29, 0.0 }
0x110b   :  { %2765 = vadd.xlane.f32.xlu0 %v2764_v30 }
0x1197   :  { %v2769_v34 = vpop.xlane.xlu1 %2768 }
0x1198   :  { %v2771_v37 = vmul.f32 0.03125, %v2769_v34  ;;  %v2766_v39 = vpop.xlane.xlu0 %2765 }
0x1199   :  { %v2770_v43 = vmul.f32 0.03125, %v2766_v39 }
0x119a   :  { %v2773_v44 = vadd.f32 1e-05, %v2771_v37 }
0x119b   :  { %v2772_v45 = vadd.f32 1e-05, %v2770_v43 }
0x119c   :  { %7518 = vrsqrt.f32 %v2773_v44 }
0x119d   :  { %7520 = vrsqrt.f32 %v2772_v45 }
0x11a6   :  { %v7519_v50 = vpop.eup %7518 }
0x11a7   :  { %v7521_v51 = vpop.eup %7520  ;;  %v2777_v52 = vmul.f32 %v7519_v50, %v2761_v1 }
0x11a8   :  { %v2776_v53 = vmul.f32 %v7521_v51, %v2760_v0 }
0x11a9   :  { %v2783_v55 = vmul.f32 %v2781_v48, %v2777_v52  ;;  %v2916_v52 = vsub.s32 5, %v7698_v38 }
0x11aa   :  { %v2782_v57 = vmul.f32 %v2781_v48, %v2776_v53  ;;  %v7574_v53 = vld [vmem:[%s8670_s9] sm:$0x3f] }
0x11ab   :  { %v2789_v59 = vadd.f32 %v2787_v54, %v2783_v55 }
0x11ac   :  { %v2788_v58 = vadd.f32 %v2787_v54, %v2782_v57  ;;  %v2917_v54 = vrot.slane %v7574_v53, %v2916_v52  ;;  %v6199_v53 = vld [vmem:[%s8671_s4 + $0x10] ss:$0 sm:$0xff] }
0x11ae   :  { %6861 = vmatprep.mubr.msk.f32.mxu1 %vm49_vm0, %v2788_v58 }
0x11af   :  { %6862 = vmatmul.mubr.msk.f32.vlgmr.msra.gmra.mrb[34].mxu1 %vm49_vm0, %v2789_v59 }
0x11b0   :  { %7327 = vmatpush3.bf16.msra.mxu1 %v7324_v16 }
0x11b1   :  { %7329 = vmatprep.subr.bf16.mxu1 %v7328_v14 }
0x11b4   :  { %7331 = vmatpush3.bf16.msra.mxu1 %v7328_v14 }
0x11b5   :  { %7333 = vmatprep.subr.bf16.mxu1 %v7332_v23 }
0x1282   :  { %v6863_v22 = vpop.f32.mrb[34].mxu1 }
0x1283   :  { %v2877_v1 = vadd.f32 %v6863_v22, %v6184_v26  ;;  %v2871_v0 = vpop.f32.mrb[35].mxu1 }
0x1284   :  { %v2872_v28 = vadd.f32 %v6184_v26, %v2871_v0  ;;  %v8192_v0 = vld [vmem:[%s8670_s9 + $0x8] sm:$0x3f] }
0x1285   :  { %v2881_v29 = vmul.f32 %v2877_v1, %v2877_v1 }
0x1286   :  { %v2880_v49 = vmul.f32 %v2872_v28, %v2872_v28 }
0x1287   :  { %v2883_v30 = vmul.f32 %v2881_v29, %v2877_v1 }
0x1288   :  { %v2882_v31 = vmul.f32 %v2880_v49, %v2872_v28 }
0x1289   :  { %v2885_v32 = vmul.f32 0.044715, %v2883_v30 }
0x128a   :  { %v2884_v56 = vmul.f32 0.044715, %v2882_v31  ;;  %v3032_v31 = vrot.slane %v8192_v0, %v85_v42  ;;  %v6202_v42 = vld [vmem:[%s8668_s3 + $0x80] sm:$0xff] }
0x128b   :  { %v2887_v33 = vadd.f32 %v2885_v32, %v2877_v1 }
0x128c   :  { %v2886_v35 = vadd.f32 %v2884_v56, %v2872_v28 }
0x128d   :  { %v2889_v36 = vmul.f32 0.7978846, %v2887_v33 }
0x128e   :  { %v2888_v34 = vmul.f32 0.7978846, %v2886_v35  ;;  %v6197_v35 = vld [vmem:[%s8669_s2 + $0x90] sm:$0xff] }
0x128f   :  { %7522 = vtanh.f32 %v2889_v36  ;;  %v6198_v36 = vld [vmem:[%s8669_s2 + $0x98] sm:$0xff] }
0x1290   :  { %7524 = vtanh.f32 %v2888_v34 }
0x1299   :  { %v7523_v37 = vpop.eup %7522 }
0x129a   :  { %v7525_v39 = vpop.eup %7524  ;;  %v2893_v43 = vadd.f32 1.0, %v7523_v37  ;;  %v7336_v37 = vpack.c.bf16 %v6198_v36, %v6197_v35  ;;  %v6218_v35 = vld [vmem:[%s8667_s1 + $0xb0] sm:$0xff]  ;;  %v6219_v36 = vld [vmem:[%s8667_s1 + $0xb8] sm:$0xff] }
0x129b   :  { %v2892_v44 = vadd.f32 1.0, %v7525_v39  ;;  %v6203_v39 = vld [vmem:[%s8668_s3 + $0x88] sm:$0xff] }
0x129c   :  { %v2895_v45 = vmul.f32 0.5, %v2893_v43  ;;  %v7340_v43 = vpack.c.bf16 %v6203_v39, %v6202_v42  ;;  %v7352_v39 = vpack.c.bf16 %v6219_v36, %v6218_v35 }
0x129d   :  { %v2894_v48 = vmul.f32 0.5, %v2892_v44  ;;  %v6204_v44 = vld [vmem:[%s8668_s3 + $0x90] sm:$0xff] }
0x129e   :  { %v2897_v51 = vmul.f32 %v2895_v45, %v2877_v1  ;;  %v6205_v45 = vld [vmem:[%s8668_s3 + $0x98] sm:$0xff] }
0x129f   :  { %v2896_v50 = vmul.f32 %v2894_v48, %v2872_v28  ;;  %v3026_v28 = vrot.slane %v8192_v0, %v79_v40  ;;  %v7344_v48 = vpack.c.bf16 %v6205_v45, %v6204_v44  ;;  %v6226_v44 = vld [vmem:[%s8669_s2 + $0xb8] sm:$0xff]  ;;  %v6230_v45 = vld [vmem:[%s8668_s3 + $0xa0] sm:$0xff] }
0x12a1   :  { %6896 = vmatprep.mubr.f32.mxu0 %v2896_v50 }
0x12a2   :  { %6897 = vmatmul.mubr.f32.vlgmr.msra.gmra.mrb[24].mxu0 %v2897_v51 }
0x12a3   :  { %6944 = vmatprep.mubr.msk.f32.mxu0 %vm7577_vm1, %v7576_v3 }
0x1375   :  { %v6898_v55 = vpop.f32.mrb[24].mxu0 }
0x1376   :  { %v2990_v57 = vadd.f32 %v6898_v55, %v2917_v54  ;;  %v2984_v58 = vpop.f32.mrb[25].mxu0 }
0x1377   :  { %v2985_v59 = vadd.f32 %v2984_v58, %v2917_v54 }
0x1378   :  { %v8158_v60 = vadd.f32 %v2990_v57, %v8063_v20  ;;  %v6192_v57 = vld [vmem:[%s8671_s4 + $0xc] ss:$0 sm:$0xff] }
0x1379   :  { %v8161_v61 = vadd.f32 %v2985_v59, %v8065_v21 }
0x137a   :  { %v3000_v62 = vsel %vm49_vm0, %v8158_v60, 0.0 }
0x137b   :  { %3001 = vadd.xlane.f32.xlu1 %v3000_v62  ;;  %v2997_v41 = vsel %vm49_vm0, %v8161_v61, 0.0 }
0x137c   :  { %2998 = vadd.xlane.f32.xlu0 %v2997_v41  ;;  %v6206_v41 = vld [vmem:[%s8671_s4 + $0x14] ss:$0 sm:$0xff] }
0x1408   :  { %v3002_v63 = vpop.xlane.xlu1 %3001 }
0x1409   :  { %v3004_v2 = vmul.f32 0.03125, %v3002_v63  ;;  %v2999_v4 = vpop.xlane.xlu0 %2998 }
0x140a   :  { %v3003_v6 = vmul.f32 0.03125, %v2999_v4 }
0x140b   :  { %v3006_v8 = vsub.f32 %v8158_v60, %v3004_v2 }
0x140c   :  { %v3005_v20 = vsub.f32 %v8161_v61, %v3003_v6 }
0x140d   :  { %v3008_v9 = vmul.f32 %v3006_v8, %v3006_v8 }
0x140e   :  { %v3007_v10 = vmul.f32 %v3005_v20, %v3005_v20 }
0x140f   :  { %v3012_v21 = vsel %vm49_vm0, %v3008_v9, 0.0 }
0x1410   :  { %3013 = vadd.xlane.f32.xlu1 %v3012_v21  ;;  %v3009_v11 = vsel %vm49_vm0, %v3007_v10, 0.0 }
0x1411   :  { %3010 = vadd.xlane.f32.xlu0 %v3009_v11 }
0x149d   :  { %v3014_v24 = vpop.xlane.xlu1 %3013 }
0x149e   :  { %v3016_v25 = vmul.f32 0.03125, %v3014_v24  ;;  %v3011_v12 = vpop.xlane.xlu0 %3010 }
0x149f   :  { %v3015_v26 = vmul.f32 0.03125, %v3011_v12 }
0x14a0   :  { %v3018_v22 = vadd.f32 1e-05, %v3016_v25 }
0x14a1   :  { %v3017_v1 = vadd.f32 1e-05, %v3015_v26 }
0x14a2   :  { %7526 = vrsqrt.f32 %v3018_v22 }
0x14a3   :  { %7528 = vrsqrt.f32 %v3017_v1 }
0x14ac   :  { %v7527_v29 = vpop.eup %7526 }
0x14ad   :  { %v7529_v49 = vpop.eup %7528  ;;  %v3022_v30 = vmul.f32 %v7527_v29, %v3006_v8  ;;  %v6217_v29 = vld [vmem:[%s8667_s1 + $0xa8] sm:$0xff] }
0x14ae   :  { %v3021_v32 = vmul.f32 %v7529_v49, %v3005_v20 }
0x14af   :  { %v3028_v56 = vmul.f32 %v3026_v28, %v3022_v30  ;;  %v6223_v30 = vld [vmem:[%s8669_s2 + $0xa0] sm:$0xff] }
0x14b0   :  { %v3027_v33 = vmul.f32 %v3026_v28, %v3021_v32  ;;  %v6216_v28 = vld [vmem:[%s8667_s1 + $0xa0] sm:$0xff] }
0x14b1   :  { %v8208_v40 = vadd.f32 %v3032_v31, %v3028_v56  ;;  %v7348_v49 = vpack.c.bf16 %v6217_v29, %v6216_v28 }
0x14b2   :  { %v8206_v34 = vadd.f32 %v3032_v31, %v3027_v33  ;;  %v6224_v31 = vld [vmem:[%s8669_s2 + $0xa8] sm:$0xff] }
0x14b3   :  { %v7356_v32 = vpack.c.bf16 %v6224_v31, %v6223_v30 }
0x14b4   :  { %6907 = vmatprep.mubr.msk.f32.mxu1 %vm49_vm0, %v8206_v34 }
0x14b5   :  { %6908 = vmatmul.mubr.msk.f32.vlgmr.msra.gmra.mrb[36].mxu1 %vm49_vm0, %v8208_v40 }
0x14b6   :  { %7335 = vmatpush3.bf16.msra.mxu1 %v7332_v23  ;;  %6918 = vmatprep.mubr.msk.f32.mxu1 %vm49_vm0, %v8206_v34 }
0x14b7   :  { %7337 = vmatprep.subr.bf16.mxu1 %v7336_v37 }
0x14ba   :  { %7339 = vmatpush3.bf16.msra.mxu1 %v7336_v37 }
0x14bb   :  { %7341 = vmatprep.subr.bf16.mxu1 %v7340_v43 }
0x14bd   :  { %6919 = vmatmul.mubr.msk.f32.vlgmr.msra.gmra.mrb[38].mxu1 %vm49_vm0, %v8208_v40 }
0x14be   :  { %7343 = vmatpush3.bf16.msra.mxu1 %v7340_v43  ;;  %6929 = vmatprep.mubr.msk.f32.mxu1 %vm49_vm0, %v8206_v34  ;;  %v6225_v43 = vld [vmem:[%s8669_s2 + $0xb0] sm:$0xff] }
0x14bf   :  { %7345 = vmatprep.subr.bf16.mxu1 %v7344_v48 }
0x14c2   :  { %7347 = vmatpush3.bf16.msra.mxu1 %v7344_v48  ;;  %v6231_v48 = vld [vmem:[%s8668_s3 + $0xa8] sm:$0xff] }
0x14c3   :  { %6932 = vmatprep.subr.mxu1 %v7576_v3 }
0x14c5   :  { %6930 = vmatmul.mubr.msk.f32.vlgmr.msra.gmra.mrb[40].mxu1 %vm49_vm0, %v8208_v40 }
0x14c6   :  { %6934 = vmatprep.mubr.msk.f32.mxu1 %vm7577_vm1, %v7576_v3 }
0x1588   :  { %v6909_v50 = vpop.f32.mrb[36].mxu1 }
0x1589   :  { %v3117_v51 = vpop.f32.mrb[37].mxu1  ;;  %v3123_v2 = vadd.f32 %v6909_v50, %v6192_v57 }
0x158a   :  { %v3118_v59 = vadd.f32 %v6192_v57, %v3117_v51  ;;  %v6233_v57 = vld [vmem:[%s8668_s3 + $0xb8] sm:$0xff] }
0x1590   :  { %v6920_v54 = vpop.f32.mrb[38].mxu1 }
0x1591   :  { %v3202_v55 = vpop.f32.mrb[39].mxu1  ;;  %v3208_v62 = vadd.f32 %v6920_v54, %v6199_v53  ;;  %v7364_v54 = vpack.c.bf16 %v6231_v48, %v6230_v45 }
0x1592   :  { %v3203_v58 = vadd.f32 %v6199_v53, %v3202_v55  ;;  %v7360_v53 = vpack.c.bf16 %v6226_v44, %v6225_v43  ;;  %v6232_v55 = vld [vmem:[%s8668_s3 + $0xb0] sm:$0xff] }
0x1594   :  { %6933 = vmatpush3.xpose.msk.msra.mxu1 %vm347_vm2, %v3203_v58  ;;  %v7368_v58 = vpack.c.bf16 %v6233_v57, %v6232_v55 }
0x1595   :  { %6937 = vmatprep.subr.mxu1 %v7576_v3 }
0x1597   :  { %6935 = vmatmul.mubr.msk.f32.vlgmr.msra.gmra.mrb[42].mxu1 %vm347_vm2, %v3118_v59 }
0x1598   :  { %v6931_v63 = vpop.f32.mrb[40].mxu1  ;;  %6938 = vmatpush3.xpose.msk.msra.mxu1 %vm347_vm2, %v3208_v62  ;;  %6939 = vmatprep.mubr.msk.f32.mxu1 %vm7577_vm1, %v7576_v3 }
0x1599   :  { %v3293_v4 = vadd.f32 %v6931_v63, %v6206_v41  ;;  %v3287_v6 = vpop.f32.mrb[41].mxu1  ;;  %6947 = vmatprep.subr.mxu1 %v7576_v3 }
0x159a   :  { %v3288_v8 = vadd.f32 %v6206_v41, %v3287_v6  ;;  %v6227_v6 = vld [vmem:[%s8671_s4 + $0x11] ss:$0 sm:$0xff] }
0x159b   :  { %6940 = vmatmul.mubr.msk.f32.vlgmr.msra.gmra.mrb[44].mxu1 %vm347_vm2, %v3123_v2 }
0x159c   :  { %6943 = vmatpush3.msra.mxu0 %v3288_v8  ;;  %6948 = vmatpush3.msra.mxu1 %v3293_v4 }
0x159d   :  { %6949 = vmatprep.mubr.msk.f32.mxu1 %vm7577_vm1, %v7576_v3  ;;  %7349 = vmatprep.subr.bf16.mxu0 %v7348_v49 }
0x159e   :  { %7357 = vmatprep.subr.bf16.mxu1 %v7356_v32 }
0x166a   :  { %v3368_v20 = vpop.f32.mrb[42].mxu1 }
0x166b   :  { %v3448_v9 = vmul.f32 0.35355338, %v3368_v20  ;;  %v6936_v10 = vpop.f32.mrb[43].mxu1 }
0x166d   :  { %v3450_v21 = vsel %vm7800_vm3, %v3448_v9, -1e+30  ;;  %v6220_v9 = vld [vmem:[%s8671_s4 + $0xd] ss:$0 sm:$0xff] }
0x166e   :  { %v3444_v11 = vpop.f32.mrb[44].mxu1  ;;  %v3452_v13 = vsel %vm347_vm2, %v3450_v21, -inf }
0x166f   :  { %v3449_v15 = vmul.f32 0.35355338, %v3444_v11  ;;  %3453 = vmax.xlane.f32.xlu1 %v3452_v13  ;;  %v6941_v16 = vpop.f32.mrb[45].mxu1 }
0x1671   :  { %v3451_v18 = vsel %vm7800_vm3, %v3449_v15, -1e+30 }
0x1672   :  { %v3455_v5 = vsel %vm347_vm2, %v3451_v18, -inf }
0x1673   :  { %3456 = vmax.xlane.f32.xlu0 %v3455_v5 }
0x16fc   :  { %v3454_v14 = vpop.xlane.xlu1 %3453 }
0x16fd   :  { %v3458_v7 = vsub.f32 %v3450_v21, %v3454_v14  ;;  %v6234_v21 = vld [vmem:[%s8671_s4 + $0x15] ss:$0 sm:$0xff] }
0x16ff   :  { %v3460_v19 = vmul.f32 1.442695, %v3458_v7 }
0x1700   :  { %v3457_v23 = vpop.xlane.xlu0 %3456 }
0x1701   :  { %7530 = vpow2.f32 %v3460_v19  ;;  %v3459_v24 = vsub.f32 %v3451_v18, %v3457_v23 }
0x1703   :  { %v3462_v25 = vmul.f32 1.442695, %v3459_v24 }
0x1705   :  { %7532 = vpow2.f32 %v3462_v25 }
0x170b   :  { %v7531_v12 = vpop.eup %7530 }
0x170c   :  { %v3464_v26 = vsel %vm347_vm2, %v7531_v12, 0.0 }
0x170d   :  { %3465 = vadd.xlane.f32.xlu1 %v3464_v26 }
0x170f   :  { %v7533_v22 = vpop.eup %7532 }
0x1710   :  { %v3467_v1 = vsel %vm347_vm2, %v7533_v22, 0.0 }
0x1711   :  { %3468 = vadd.xlane.f32.xlu0 %v3467_v1 }
0x179a   :  { %v3466_v56 = vpop.xlane.xlu1 %3465 }
0x179b   :  { %7534 = vrcp.f32 %v3466_v56 }
0x179e   :  { %v3469_v33 = vpop.xlane.xlu0 %3468 }
0x179f   :  { %7536 = vrcp.f32 %v3469_v33 }
0x17a5   :  { %v7535_v37 = vpop.eup %7534 }
0x17a6   :  { %v3471_v42 = vmul.f32 %v7535_v37, %v7531_v12 }
0x17a8   :  { %6945 = vmatmul.mubr.msk.f32.vlgmr.msra.gmra.mrb[26].mxu0 %vm347_vm2, %v3471_v42  ;;  %v6248_v42 = vld [vmem:[%s8667_s1 + $0xc0] sm:$0xff] }
0x17a9   :  { %v7537_v50 = vpop.eup %7536  ;;  %7351 = vmatpush3.bf16.msra.mxu0 %v7348_v49  ;;  %6960 = vmatprep.mubr.msk.f32.mxu0 %vm49_vm0, %v8206_v34 }
0x17aa   :  { %v3473_v51 = vmul.f32 %v7537_v50, %v7533_v22  ;;  %7353 = vmatprep.subr.bf16.mxu0 %v7352_v39 }
0x17ac   :  { %6950 = vmatmul.mubr.msk.f32.vlgmr.msra.gmra.mrb[46].mxu1 %vm347_vm2, %v3473_v51  ;;  %v6250_v51 = vld [vmem:[%s8667_s1 + $0xd0] sm:$0xff] }
0x17ad   :  { %7355 = vmatpush3.bf16.msra.mxu0 %v7352_v39  ;;  %7359 = vmatpush3.bf16.msra.mxu1 %v7356_v32  ;;  %v6249_v39 = vld [vmem:[%s8667_s1 + $0xc8] sm:$0xff] }
0x17ae   :  { %6971 = vmatprep.mubr.msk.f32.mxu1 %vm49_vm0, %v8206_v34  ;;  %7361 = vmatprep.subr.bf16.mxu1 %v7360_v53  ;;  %v7372_v43 = vpack.c.bf16 %v6249_v39, %v6248_v42 }
0x17af   :  { %7365 = vmatprep.subr.bf16.mxu0 %v7364_v54 }
0x17b0   :  { %6961 = vmatmul.mubr.msk.f32.vlgmr.msra.gmra.mrb[28].mxu0 %vm49_vm0, %v8208_v40 }
0x17b1   :  { %7363 = vmatpush3.bf16.msra.mxu1 %v7360_v53  ;;  %7367 = vmatpush3.bf16.msra.mxu0 %v7364_v54  ;;  %v6251_v53 = vld [vmem:[%s8667_s1 + $0xd8] sm:$0xff] }
0x17b2   :  { %6982 = vmatprep.mubr.msk.f32.mxu0 %vm49_vm0, %v8206_v34  ;;  %7369 = vmatprep.subr.bf16.mxu0 %v7368_v58  ;;  %v7376_v57 = vpack.c.bf16 %v6251_v53, %v6250_v51 }
0x17b3   :  { %6985 = vmatprep.subr.mxu1 %v7576_v3 }
0x17b4   :  { %6972 = vmatmul.mubr.msk.f32.vlgmr.msra.gmra.mrb[48].mxu1 %vm49_vm0, %v8208_v40 }
0x17b5   :  { %7371 = vmatpush3.bf16.msra.mxu0 %v7368_v58  ;;  %6987 = vmatprep.mubr.msk.f32.mxu1 %vm7577_vm1, %v7576_v3  ;;  %v6262_v58 = vld [vmem:[%s8668_s3 + $0xc0] sm:$0xff] }
0x17b6   :  { %6995 = vmatprep.subr.mxu0 %v7576_v3 }
0x17b8   :  { %6983 = vmatmul.mubr.msk.f32.vlgmr.msra.gmra.mrb[30].mxu0 %vm49_vm0, %v8208_v40 }
0x17b9   :  { %6997 = vmatprep.mubr.msk.f32.mxu0 %vm7577_vm1, %v7576_v3 }
0x187b   :  { %v8320_v59 = vpop.f32.mrb[26].mxu0 }
0x187c   :  { %v6946_v62 = vpop.f32.mrb[27].mxu0 }
0x187d   :  { %v6263_v62 = vld [vmem:[%s8668_s3 + $0xc8] sm:$0xff] }
0x187f   :  { %v8322_v41 = vpop.f32.mrb[46].mxu1 }
0x1880   :  { %v6951_v63 = vpop.f32.mrb[47].mxu1 }
0x1881   :  { %v7388_v63 = vpack.c.bf16 %v6263_v62, %v6262_v58  ;;  %v6278_v62 = vld [vmem:[%s8667_s1 + $0xe0] sm:$0xff] }
0x1883   :  { %v6962_v2 = vpop.f32.mrb[28].mxu0 }
0x1884   :  { %v3698_v4 = vpop.f32.mrb[29].mxu0  ;;  %v3704_v5 = vadd.f32 %v6962_v2, %v6220_v9  ;;  %v6264_v2 = vld [vmem:[%s8668_s3 + $0xd0] sm:$0xff] }
0x1885   :  { %v3699_v13 = vadd.f32 %v6220_v9, %v3698_v4  ;;  %v6265_v4 = vld [vmem:[%s8668_s3 + $0xd8] sm:$0xff] }
0x1887   :  { %v6973_v8 = vpop.f32.mrb[48].mxu1 }
0x1888   :  { %v3783_v20 = vpop.f32.mrb[49].mxu1  ;;  %v3789_v16 = vadd.f32 %v6973_v8, %v6227_v6  ;;  %v6243_v8 = vld [vmem:[%s8672_s5 + $0x28] sm:$0xff] }
0x1889   :  { %v3784_v10 = vadd.f32 %v6227_v6, %v3783_v20  ;;  %v7392_v6 = vpack.c.bf16 %v6265_v4, %v6264_v2  ;;  %v6215_v20 = vld [vmem:[%s8672_s5 + $0x20] sm:$0xff]  ;;  %v6275_v4 = vld [vmem:[%s8672_s5 + $0x30] sm:$0xff] }
0x188b   :  { %v6984_v11 = vpop.f32.mrb[30].mxu0  ;;  %6986 = vmatpush3.xpose.msk.msra.mxu1 %vm347_vm2, %v3784_v10  ;;  %v6255_v10 = vld [vmem:[%s8669_s2 + $0xc0] sm:$0xff] }
0x188c   :  { %v3868_v15 = vpop.f32.mrb[31].mxu0  ;;  %6990 = vmatprep.subr.mxu1 %v7576_v3  ;;  %v3874_v14 = vadd.f32 %v6984_v11, %v6234_v21 }
0x188d   :  { %v3869_v18 = vadd.f32 %v6234_v21, %v3868_v15  ;;  %v6256_v21 = vld [vmem:[%s8669_s2 + $0xc8] sm:$0xff] }
0x188e   :  { %6988 = vmatmul.mubr.msk.f32.vlgmr.msra.gmra.mrb[50].mxu1 %vm347_vm2, %v3699_v13  ;;  %v7380_v13 = vpack.c.bf16 %v6256_v21, %v6255_v10 }
0x188f   :  { %6991 = vmatpush3.xpose.msk.msra.mxu1 %vm347_vm2, %v3789_v16  ;;  %6996 = vmatpush3.msra.mxu0 %v3869_v18  ;;  %v6257_v18 = vld [vmem:[%s8669_s2 + $0xd0] sm:$0xff] }
0x1890   :  { %6992 = vmatprep.mubr.msk.f32.mxu1 %vm7577_vm1, %v7576_v3  ;;  %7000 = vmatprep.subr.mxu1 %v7576_v3 }
0x1891   :  { %7005 = vmatprep.subr.mxu0 %v6243_v8 }
0x1892   :  { %6993 = vmatmul.mubr.msk.f32.vlgmr.msra.gmra.mrb[52].mxu1 %vm347_vm2, %v3704_v5  ;;  %v6258_v5 = vld [vmem:[%s8669_s2 + $0xd8] sm:$0xff] }
0x1893   :  { %7001 = vmatpush3.msra.mxu1 %v3874_v14  ;;  %7002 = vmatprep.mubr.msk.f32.mxu1 %vm7577_vm1, %v7576_v3  ;;  %v7384_v14 = vpack.c.bf16 %v6258_v5, %v6257_v18  ;;  %v6293_v18 = vld [vmem:[%s8668_s3 + $0xe8] sm:$0xff] }
0x1894   :  { %7373 = vmatprep.subr.bf16.mxu1 %v7372_v43 }
0x1961   :  { %v3949_v7 = vpop.f32.mrb[50].mxu1 }
0x1962   :  { %v4029_v19 = vmul.f32 0.35355338, %v3949_v7  ;;  %v6989_v23 = vpop.f32.mrb[51].mxu1 }
0x1964   :  { %v4031_v24 = vsel %vm7800_vm3, %v4029_v19, -1e+30 }
0x1965   :  { %v4025_v25 = vpop.f32.mrb[52].mxu1  ;;  %v4033_v12 = vsel %vm347_vm2, %v4031_v24, -inf }
0x1966   :  { %v4030_v26 = vmul.f32 0.35355338, %v4025_v25  ;;  %4034 = vmax.xlane.f32.xlu0 %v4033_v12  ;;  %v6994_v22 = vpop.f32.mrb[53].mxu1  ;;  %v6252_v25 = vld [vmem:[%s8671_s4 + $0xe] ss:$0 sm:$0xff] }
0x1967   :  { %v6266_v22 = vld [vmem:[%s8671_s4 + $0x16] ss:$0 sm:$0xff] }
0x1968   :  { %v4032_v1 = vsel %vm7800_vm3, %v4030_v26, -1e+30 }
0x1969   :  { %v4036_v28 = vsel %vm347_vm2, %v4032_v1, -inf }
0x196a   :  { %4037 = vmax.xlane.f32.xlu1 %v4036_v28 }
0x19f3   :  { %v4035_v29 = vpop.xlane.xlu0 %4034 }
0x19f4   :  { %v4039_v49 = vsub.f32 %v4031_v24, %v4035_v29 }
0x19f6   :  { %v4041_v30 = vmul.f32 1.442695, %v4039_v49 }
0x19f7   :  { %v4038_v31 = vpop.xlane.xlu1 %4037 }
0x19f8   :  { %7538 = vpow2.f32 %v4041_v30  ;;  %v4040_v32 = vsub.f32 %v4032_v1, %v4038_v31 }
0x19fa   :  { %v4043_v56 = vmul.f32 1.442695, %v4040_v32 }
0x19fc   :  { %7540 = vpow2.f32 %v4043_v56 }
0x1a02   :  { %v7539_v33 = vpop.eup %7538 }
0x1a03   :  { %v4045_v35 = vsel %vm347_vm2, %v7539_v33, 0.0 }
0x1a04   :  { %4046 = vadd.xlane.f32.xlu0 %v4045_v35 }
0x1a06   :  { %v7541_v36 = vpop.eup %7540 }
0x1a07   :  { %v4048_v37 = vsel %vm347_vm2, %v7541_v36, 0.0 }
0x1a08   :  { %4049 = vadd.xlane.f32.xlu1 %v4048_v37 }
0x1a91   :  { %v4047_v44 = vpop.xlane.xlu0 %4046 }
0x1a92   :  { %7542 = vrcp.f32 %v4047_v44 }
0x1a95   :  { %v4050_v45 = vpop.xlane.xlu1 %4049 }
0x1a96   :  { %7544 = vrcp.f32 %v4050_v45 }
0x1a9c   :  { %v7543_v48 = vpop.eup %7542 }
0x1a9d   :  { %v4052_v50 = vmul.f32 %v7543_v48, %v7539_v33 }
0x1a9f   :  { %6998 = vmatmul.mubr.msk.f32.vlgmr.msra.gmra.mrb[32].mxu0 %vm347_vm2, %v4052_v50 }
0x1aa0   :  { %v7545_v54 = vpop.eup %7544  ;;  %7006 = vmatpush3.msra.mxu0 %v6243_v8 }
0x1aa1   :  { %v4054_v55 = vmul.f32 %v7545_v54, %v7541_v36  ;;  %7010 = vmatprep.subr.mxu0 %v6215_v20 }
0x1aa3   :  { %7003 = vmatmul.mubr.msk.f32.vlgmr.msra.gmra.mrb[54].mxu1 %vm347_vm2, %v4054_v55 }
0x1aa4   :  { %7375 = vmatpush3.bf16.msra.mxu1 %v7372_v43  ;;  %7023 = vmatprep.mubr.msk.f32.mxu1 %vm49_vm0, %v8206_v34 }
0x1aa5   :  { %7377 = vmatprep.subr.bf16.mxu1 %v7376_v57 }
0x1aa8   :  { %7379 = vmatpush3.bf16.msra.mxu1 %v7376_v57 }
0x1aa9   :  { %7389 = vmatprep.subr.bf16.mxu1 %v7388_v63 }
0x1aab   :  { %7024 = vmatmul.mubr.msk.f32.vlgmr.msra.gmra.mrb[56].mxu1 %vm49_vm0, %v8208_v40 }
0x1aac   :  { %7391 = vmatpush3.bf16.msra.mxu1 %v7388_v63  ;;  %7045 = vmatprep.mubr.msk.f32.mxu1 %vm49_vm0, %v8206_v34  ;;  %v6279_v63 = vld [vmem:[%s8667_s1 + $0xe8] sm:$0xff] }
0x1aad   :  { %7393 = vmatprep.subr.bf16.mxu1 %v7392_v6  ;;  %v7396_v2 = vpack.c.bf16 %v6279_v63, %v6278_v62 }
0x1ab0   :  { %7395 = vmatpush3.bf16.msra.mxu1 %v7392_v6 }
0x1ab1   :  { %7053 = vmatprep.subr.mxu1 %v7576_v3 }
0x1ab3   :  { %7046 = vmatmul.mubr.msk.f32.vlgmr.msra.gmra.mrb[58].mxu1 %vm49_vm0, %v8208_v40 }
0x1ab4   :  { %7055 = vmatprep.mubr.msk.f32.mxu1 %vm7577_vm1, %v7576_v3 }
0x1b72   :  { %v4124_v9 = vpop.f32.mrb[32].mxu0 }
0x1b73   :  { %v6999_v11 = vpop.f32.mrb[33].mxu0  ;;  %7007 = vmatprep.mubr.msk.f32.mxu0 %vm347_vm2, %v4124_v9  ;;  %v6281_v9 = vld [vmem:[%s8667_s1 + $0xf8] sm:$0xff] }
0x1b76   :  { %v4197_v15 = vpop.f32.mrb[54].mxu1 }
0x1b77   :  { %v7004_v16 = vpop.f32.mrb[55].mxu1  ;;  %7008 = vmatmul.mubr.msk.f32.vlgmr.msra.gmra.mrb[34].mxu0 %vm347_vm2, %v4197_v15 }
0x1b78   :  { %7011 = vmatpush3.msra.mxu0 %v6215_v20  ;;  %7012 = vmatprep.mubr.msk.f32.mxu0 %vm347_vm2, %v8320_v59  ;;  %v6280_v20 = vld [vmem:[%s8667_s1 + $0xf0] sm:$0xff]  ;;  %v6292_v16 = vld [vmem:[%s8668_s3 + $0xe0] sm:$0xff] }
0x1b79   :  { %7381 = vmatprep.subr.bf16.mxu0 %v7380_v13  ;;  %v7412_v5 = vpack.c.bf16 %v6293_v18, %v6292_v16  ;;  %v6305_v18 = vld [vmem:[%s8672_s5 + $0x38] sm:$0xff] }
0x1b7e   :  { %v7025_v7 = vpop.f32.mrb[56].mxu1 }
0x1b7f   :  { %v4441_v19 = vpop.f32.mrb[57].mxu1  ;;  %7013 = vmatmul.mubr.msk.f32.vlgmr.msra.gmra.mrb[34].mxu0 %vm347_vm2, %v8322_v41  ;;  %v6259_v41 = vld [vmem:[%s8671_s4 + $0x12] ss:$0 sm:$0xff]  ;;  %v4447_v28 = vadd.f32 %v7025_v7, %v6252_v25  ;;  %v6295_v7 = vld [vmem:[%s8668_s3 + $0xf8] sm:$0xff] }
0x1b80   :  { %7383 = vmatpush3.bf16.msra.mxu0 %v7380_v13  ;;  %7034 = vmatprep.mubr.msk.f32.mxu0 %vm49_vm0, %v8206_v34  ;;  %v4442_v29 = vadd.f32 %v6252_v25, %v4441_v19  ;;  %v7400_v13 = vpack.c.bf16 %v6281_v9, %v6280_v20  ;;  %v6288_v25 = vld [vmem:[%s8669_s2 + $0xf8] sm:$0xff] }
0x1b81   :  { %7385 = vmatprep.subr.bf16.mxu0 %v7384_v14 }
0x1b84   :  { %7387 = vmatpush3.bf16.msra.mxu0 %v7384_v14  ;;  %v6294_v14 = vld [vmem:[%s8668_s3 + $0xf0] sm:$0xff] }
0x1b85   :  { %7048 = vmatprep.subr.mxu0 %v7576_v3  ;;  %v7416_v19 = vpack.c.bf16 %v6295_v7, %v6294_v14 }
0x1b86   :  { %v7047_v59 = vpop.f32.mrb[58].mxu1 }
0x1b87   :  { %7035 = vmatmul.mubr.msk.f32.vlgmr.msra.gmra.mrb[36].mxu0 %vm49_vm0, %v8208_v40  ;;  %v4611_v23 = vpop.f32.mrb[59].mxu1  ;;  %v4617_v49 = vadd.f32 %v7047_v59, %v6266_v22  ;;  %v6285_v59 = vld [vmem:[%s8669_s2 + $0xe0] sm:$0xff] }
0x1b88   :  { %7050 = vmatprep.mubr.msk.f32.mxu0 %vm7577_vm1, %v7576_v3  ;;  %v4612_v30 = vadd.f32 %v6266_v22, %v4611_v23  ;;  %v6286_v23 = vld [vmem:[%s8669_s2 + $0xe8] sm:$0xff] }
0x1c5a   :  { %v7036_v24 = vpop.f32.mrb[36].mxu0 }
0x1c5b   :  { %v4532_v12 = vadd.f32 %v7036_v24, %v6259_v41  ;;  %v4526_v26 = vpop.f32.mrb[37].mxu0  ;;  %v6287_v24 = vld [vmem:[%s8669_s2 + $0xf0] sm:$0xff] }
0x1c5c   :  { %v4527_v1 = vadd.f32 %v6259_v41, %v4526_v26  ;;  %v7404_v41 = vpack.c.bf16 %v6286_v23, %v6285_v59  ;;  %v5698_v59 = vrot.slane %v8192_v0, %v2748_v17 }
0x1c5d   :  { %7054 = vmatpush3.xpose.msk.msra.mxu1 %vm347_vm2, %v4532_v12 }
0x1c5e   :  { %7049 = vmatpush3.xpose.msk.msra.mxu0 %vm347_vm2, %v4527_v1  ;;  %7063 = vmatprep.subr.mxu1 %v7576_v3  ;;  %v7408_v1 = vpack.c.bf16 %v6288_v25, %v6287_v24 }
0x1c5f   :  { %7058 = vmatprep.subr.mxu0 %v7576_v3 }
0x1c60   :  { %7056 = vmatmul.mubr.msk.f32.vlgmr.msra.gmra.mrb[60].mxu1 %vm347_vm2, %v4447_v28 }
0x1c61   :  { %7051 = vmatmul.mubr.msk.f32.vlgmr.msra.gmra.mrb[38].mxu0 %vm347_vm2, %v4442_v29  ;;  %7064 = vmatpush3.msra.mxu1 %v4617_v49 }
0x1c62   :  { %7059 = vmatpush3.msra.mxu0 %v4612_v30  ;;  %7065 = vmatprep.mubr.msk.f32.mxu1 %vm7577_vm1, %v7576_v3  ;;  %v6296_v30 = vld [vmem:[%s8671_s4 + $0x17] ss:$0 sm:$0xff] }
0x1c63   :  { %7060 = vmatprep.mubr.msk.f32.mxu0 %vm7577_vm1, %v7576_v3  ;;  %7397 = vmatprep.subr.bf16.mxu1 %v7396_v2 }
0x1c64   :  { %7068 = vmatprep.subr.mxu0 %v6275_v4 }
0x1d33   :  { %v4768_v31 = vpop.f32.mrb[60].mxu1 }
0x1d34   :  { %v4773_v32 = vmul.f32 0.35355338, %v4768_v31  ;;  %v4692_v56 = vpop.f32.mrb[38].mxu0  ;;  %v7057_v33 = vpop.f32.mrb[61].mxu1 }
0x1d35   :  { %v4772_v35 = vmul.f32 0.35355338, %v4692_v56  ;;  %v7052_v36 = vpop.f32.mrb[39].mxu0  ;;  %v6289_v33 = vld [vmem:[%s8671_s4 + $0x13] ss:$0 sm:$0xff] }
0x1d36   :  { %v4775_v37 = vsel %vm7800_vm3, %v4773_v32, -1e+30 }
0x1d37   :  { %v4779_v42 = vsel %vm347_vm2, %v4775_v37, -inf  ;;  %v4774_v39 = vsel %vm7800_vm3, %v4772_v35, -1e+30 }
0x1d38   :  { %4780 = vmax.xlane.f32.xlu1 %v4779_v42  ;;  %v4776_v43 = vsel %vm347_vm2, %v4774_v39, -inf }
0x1d39   :  { %4777 = vmax.xlane.f32.xlu0 %v4776_v43 }
0x1dc5   :  { %v4781_v44 = vpop.xlane.xlu1 %4780 }
0x1dc6   :  { %v4783_v45 = vsub.f32 %v4775_v37, %v4781_v44  ;;  %v4778_v48 = vpop.xlane.xlu0 %4777 }
0x1dc7   :  { %v4782_v50 = vsub.f32 %v4774_v39, %v4778_v48 }
0x1dc8   :  { %v4786_v51 = vmul.f32 1.442695, %v4783_v45 }
0x1dc9   :  { %v4784_v53 = vmul.f32 1.442695, %v4782_v50 }
0x1dca   :  { %7546 = vpow2.f32 %v4786_v51 }
0x1dcb   :  { %7548 = vpow2.f32 %v4784_v53 }
0x1dd4   :  { %v7547_v54 = vpop.eup %7546 }
0x1dd5   :  { %v7549_v55 = vpop.eup %7548  ;;  %v4791_v57 = vsel %vm347_vm2, %v7547_v54, 0.0 }
0x1dd6   :  { %4792 = vadd.xlane.f32.xlu1 %v4791_v57  ;;  %v4788_v58 = vsel %vm347_vm2, %v7549_v55, 0.0 }
0x1dd7   :  { %4789 = vadd.xlane.f32.xlu0 %v4788_v58 }
0x1e63   :  { %v4793_v6 = vpop.xlane.xlu1 %4792 }
0x1e64   :  { %7550 = vrcp.f32 %v4793_v6  ;;  %v4790_v8 = vpop.xlane.xlu0 %4789 }
0x1e65   :  { %7552 = vrcp.f32 %v4790_v8 }
0x1e6e   :  { %v7551_v10 = vpop.eup %7550 }
0x1e6f   :  { %v7553_v21 = vpop.eup %7552  ;;  %v4797_v11 = vmul.f32 %v7551_v10, %v7547_v54 }
0x1e70   :  { %v4795_v15 = vmul.f32 %v7553_v21, %v7549_v55 }
0x1e71   :  { %7066 = vmatmul.mubr.msk.f32.vlgmr.msra.gmra.mrb[62].mxu1 %vm347_vm2, %v4797_v11 }
0x1e72   :  { %7399 = vmatpush3.bf16.msra.mxu1 %v7396_v2  ;;  %7061 = vmatmul.mubr.msk.f32.vlgmr.msra.gmra.mrb[40].mxu0 %vm347_vm2, %v4795_v15 }
0x1e73   :  { %7081 = vmatprep.mubr.msk.f32.mxu1 %vm49_vm0, %v8206_v34  ;;  %7401 = vmatprep.subr.bf16.mxu1 %v7400_v13 }
0x1e74   :  { %7069 = vmatpush3.msra.mxu0 %v6275_v4 }
0x1e75   :  { %7405 = vmatprep.subr.bf16.mxu0 %v7404_v41 }
0x1e76   :  { %7403 = vmatpush3.bf16.msra.mxu1 %v7400_v13 }
0x1e77   :  { %7413 = vmatprep.subr.bf16.mxu1 %v7412_v5 }
0x1e79   :  { %7082 = vmatmul.mubr.msk.f32.vlgmr.msra.gmra.mrb[64].mxu1 %vm49_vm0, %v8208_v40 }
0x1e7a   :  { %7415 = vmatpush3.bf16.msra.mxu1 %v7412_v5  ;;  %7103 = vmatprep.mubr.msk.f32.mxu1 %vm49_vm0, %v8206_v34 }
0x1e7b   :  { %7417 = vmatprep.subr.bf16.mxu1 %v7416_v19 }
0x1e7e   :  { %7419 = vmatpush3.bf16.msra.mxu1 %v7416_v19 }
0x1e7f   :  { %7116 = vmatprep.subr.mxu1 %v7576_v3 }
0x1e81   :  { %7104 = vmatmul.mubr.msk.f32.vlgmr.msra.gmra.mrb[66].mxu1 %vm49_vm0, %v8208_v40 }
0x1e82   :  { %7118 = vmatprep.mubr.msk.f32.mxu1 %vm7577_vm1, %v7576_v3 }
0x1f44   :  { %v4940_v12 = vpop.f32.mrb[62].mxu1 }
0x1f45   :  { %v4867_v26 = vpop.f32.mrb[40].mxu0  ;;  %v7067_v22 = vpop.f32.mrb[63].mxu1 }
0x1f46   :  { %v7062_v28 = vpop.f32.mrb[41].mxu0  ;;  %7070 = vmatprep.mubr.msk.f32.mxu0 %vm347_vm2, %v4867_v26 }
0x1f47   :  { %7071 = vmatmul.mubr.msk.f32.vlgmr.msra.gmra.mrb[34].mxu0 %vm347_vm2, %v4940_v12 }
0x1f48   :  { %7407 = vmatpush3.bf16.msra.mxu0 %v7404_v41  ;;  %7092 = vmatprep.mubr.msk.f32.mxu0 %vm49_vm0, %v8206_v34 }
0x1f49   :  { %7409 = vmatprep.subr.bf16.mxu0 %v7408_v1 }
0x1f4c   :  { %v7083_v29 = vpop.f32.mrb[64].mxu1  ;;  %7411 = vmatpush3.bf16.msra.mxu0 %v7408_v1 }
0x1f4d   :  { %v5105_v49 = vpop.f32.mrb[65].mxu1  ;;  %7106 = vmatprep.subr.mxu0 %v7576_v3 }
0x1f4f   :  { %7093 = vmatmul.mubr.msk.f32.vlgmr.msra.gmra.mrb[42].mxu0 %vm49_vm0, %v8208_v40  ;;  %v6282_v40 = vld [vmem:[%s8671_s4 + $0xf] ss:$0 sm:$0xff] }
0x1f50   :  { %7108 = vmatprep.mubr.msk.f32.mxu0 %vm7577_vm1, %v7576_v3  ;;  %v5106_v42 = vadd.f32 %v6282_v40, %v5105_v49  ;;  %v5111_v43 = vadd.f32 %v7083_v29, %v6282_v40  ;;  %v6311_v40 = vld [vmem:[%s8673_s6 + $0x38] sm:$0xff] }
0x1f54   :  { %v7105_v31 = vpop.f32.mrb[66].mxu1 }
0x1f55   :  { %v5281_v32 = vadd.f32 %v7105_v31, %v6296_v30  ;;  %v5275_v56 = vpop.f32.mrb[67].mxu1 }
0x1f56   :  { %v5276_v34 = vadd.f32 %v6296_v30, %v5275_v56 }
0x1f58   :  { %7117 = vmatpush3.msra.mxu1 %v5276_v34  ;;  %v6308_v34 = vld [vmem:[%s8673_s6 + $0x20] sm:$0xff] }
0x2022   :  { %v7094_v35 = vpop.f32.mrb[42].mxu0 }
0x2023   :  { %v5190_v36 = vpop.f32.mrb[43].mxu0  ;;  %v5196_v39 = vadd.f32 %v7094_v35, %v6289_v33 }
0x2024   :  { %v5191_v37 = vadd.f32 %v6289_v33, %v5190_v36  ;;  %v6309_v33 = vld [vmem:[%s8673_s6 + $0x28] sm:$0xff]  ;;  %v6310_v36 = vld [vmem:[%s8673_s6 + $0x30] sm:$0xff] }
0x2025   :  { %v7420_v35 = vpack.c.bf16 %v6309_v33, %v6308_v34 }
0x2026   :  { %7107 = vmatpush3.xpose.msk.msra.mxu0 %vm347_vm2, %v5191_v37  ;;  %v7424_v37 = vpack.c.bf16 %v6311_v40, %v6310_v36 }
0x2027   :  { %7111 = vmatprep.subr.mxu0 %v7576_v3  ;;  %7421 = vmatprep.subr.bf16.mxu1 %v7420_v35 }
0x2029   :  { %7109 = vmatmul.mubr.msk.f32.vlgmr.msra.gmra.mrb[44].mxu0 %vm347_vm2, %v5106_v42 }
0x202a   :  { %7112 = vmatpush3.xpose.msk.msra.mxu0 %vm347_vm2, %v5196_v39  ;;  %7113 = vmatprep.mubr.msk.f32.mxu0 %vm7577_vm1, %v7576_v3 }
0x202b   :  { %7121 = vmatprep.subr.mxu0 %v7576_v3 }
0x202d   :  { %7114 = vmatmul.mubr.msk.f32.vlgmr.msra.gmra.mrb[46].mxu0 %vm347_vm2, %v5111_v43 }
0x202e   :  { %7122 = vmatpush3.msra.mxu0 %v5281_v32  ;;  %7123 = vmatprep.mubr.msk.f32.mxu0 %vm7577_vm1, %v7576_v3 }
0x202f   :  { %7126 = vmatprep.subr.mxu0 %v6305_v18 }
0x20fc   :  { %v5356_v44 = vpop.f32.mrb[44].mxu0 }
0x20fd   :  { %v5436_v45 = vmul.f32 0.35355338, %v5356_v44  ;;  %v7110_v48 = vpop.f32.mrb[45].mxu0 }
0x20ff   :  { %v5438_v50 = vsel %vm7800_vm3, %v5436_v45, -1e+30 }
0x2100   :  { %v5432_v51 = vpop.f32.mrb[46].mxu0  ;;  %v5440_v53 = vsel %vm347_vm2, %v5438_v50, -inf }
0x2101   :  { %v5437_v54 = vmul.f32 0.35355338, %v5432_v51  ;;  %5441 = vmax.xlane.f32.xlu0 %v5440_v53  ;;  %v7115_v55 = vpop.f32.mrb[47].mxu0 }
0x2103   :  { %v5439_v57 = vsel %vm7800_vm3, %v5437_v54, -1e+30 }
0x2104   :  { %v5443_v58 = vsel %vm347_vm2, %v5439_v57, -inf }
0x2105   :  { %5444 = vmax.xlane.f32.xlu1 %v5443_v58 }
0x218e   :  { %v5442_v62 = vpop.xlane.xlu0 %5441 }
0x218f   :  { %v5446_v3 = vsub.f32 %v5438_v50, %v5442_v62  ;;  %v5730_v50 = vrot.slane %v8192_v0, %v2780_v46  ;;  %v6315_v46 = vld [vmem:[%s8674_s8 + $0x80] sm:$0xff] }
0x2191   :  { %v5448_v63 = vmul.f32 1.442695, %v5446_v3 }
0x2192   :  { %v5445_v2 = vpop.xlane.xlu1 %5444 }
0x2193   :  { %7554 = vpow2.f32 %v5448_v63  ;;  %v5447_v4 = vsub.f32 %v5439_v57, %v5445_v2  ;;  %v5736_v57 = vrot.slane %v8192_v0, %v2786_v47  ;;  %v6316_v2 = vld [vmem:[%s8674_s8 + $0x88] sm:$0xff]  ;;  %v6317_v47 = vld [vmem:[%s8674_s8 + $0x90] sm:$0xff]  ;;  %v6318_v0 = vld [vmem:[%s8674_s8 + $0x98] sm:$0xff] }
0x2195   :  { %v5450_v6 = vmul.f32 1.442695, %v5447_v4  ;;  %v7428_v4 = vpack.c.bf16 %v6316_v2, %v6315_v46 }
0x2197   :  { %7556 = vpow2.f32 %v5450_v6  ;;  %v7432_v6 = vpack.c.bf16 %v6318_v0, %v6317_v47  ;;  %v5987_v0 = vld [vmem:[%s8676_s11 + $0x8] sm:$0xff] }
0x219d   :  { %v7555_v8 = vpop.eup %7554 }
0x219e   :  { %v5452_v20 = vsel %vm347_vm2, %v7555_v8, 0.0 }
0x219f   :  { %5453 = vadd.xlane.f32.xlu0 %v5452_v20  ;;  %v6320_v20 = vld [vmem:[%s8674_s8 + $0xa8] sm:$0xff] }
0x21a1   :  { %v7557_v9 = vpop.eup %7556 }
0x21a2   :  { %v5455_v10 = vsel %vm347_vm2, %v7557_v9, 0.0 }
0x21a3   :  { %5456 = vadd.xlane.f32.xlu1 %v5455_v10  ;;  %v6321_v10 = vld [vmem:[%s8674_s8 + $0xb0] sm:$0xff] }
0x222c   :  { %v5454_v27 = vpop.xlane.xlu0 %5453 }
0x222d   :  { %7558 = vrcp.f32 %v5454_v27  ;;  %v6322_v27 = vld [vmem:[%s8674_s8 + $0xb8] sm:$0xff] }
0x2230   :  { %v5457_v21 = vpop.xlane.xlu1 %5456 }
0x2231   :  { %7560 = vrcp.f32 %v5457_v21  ;;  %v7440_v21 = vpack.c.bf16 %v6322_v27, %v6321_v10 }
0x2237   :  { %v7559_v11 = vpop.eup %7558 }
0x2238   :  { %v5459_v13 = vmul.f32 %v7559_v11, %v7555_v8  ;;  %v6319_v8 = vld [vmem:[%s8674_s8 + $0xa0] sm:$0xff] }
0x2239   :  { %v6323_v11 = vld [vmem:[%s8674_s8 + $0xc0] sm:$0xff] }
0x223a   :  { %7119 = vmatmul.mubr.msk.f32.vlgmr.msra.gmra.mrb[68].mxu1 %vm347_vm2, %v5459_v13  ;;  %v6324_v13 = vld [vmem:[%s8674_s8 + $0xc8] sm:$0xff] }
0x223b   :  { %v7561_v15 = vpop.eup %7560  ;;  %7423 = vmatpush3.bf16.msra.mxu1 %v7420_v35 }
0x223c   :  { %v5461_v16 = vmul.f32 %v7561_v15, %v7557_v9  ;;  %7425 = vmatprep.subr.bf16.mxu1 %v7424_v37  ;;  %v7436_v9 = vpack.c.bf16 %v6320_v20, %v6319_v8  ;;  %v6325_v15 = vld [vmem:[%s8674_s8 + $0xd0] sm:$0xff]  ;;  %v5989_v20 = vld [vmem:[%s8676_s11 + $0x18] sm:$0xff] }
0x223d   :  { %v5988_v8 = vld [vmem:[%s8676_s11 + $0x10] sm:$0xff] }
0x223e   :  { %7124 = vmatmul.mubr.msk.f32.vlgmr.msra.gmra.mrb[48].mxu0 %vm347_vm2, %v5461_v16  ;;  %v7444_v16 = vpack.c.bf16 %v6324_v13, %v6323_v11 }
0x223f   :  { %7127 = vmatpush3.msra.mxu0 %v6305_v18  ;;  %7427 = vmatpush3.bf16.msra.mxu1 %v7424_v37  ;;  %v6326_v18 = vld [vmem:[%s8674_s8 + $0xd8] sm:$0xff] }
0x2240   :  { %7429 = vmatprep.subr.bf16.mxu0 %v7428_v4 }
0x230d   :  { %v5531_v5 = vpop.f32.mrb[68].mxu1 }
0x230e   :  { %v7120_v14 = vpop.f32.mrb[69].mxu1  ;;  %7128 = vmatprep.mubr.msk.f32.mxu0 %vm347_vm2, %v5531_v5  ;;  %v7448_v5 = vpack.c.bf16 %v6326_v18, %v6325_v15  ;;  %v6331_v18 = vld [vmem:[%s8677_s10] ss:$0 sm:$0xff] }
0x230f   :  { %v6327_v14 = vld [vmem:[%s8674_s8 + $0xe0] sm:$0xff] }
0x2311   :  { %v5604_v7 = vpop.f32.mrb[48].mxu0 }
0x2312   :  { %v7125_v19 = vpop.f32.mrb[49].mxu0  ;;  %7129 = vmatmul.mubr.msk.f32.vlgmr.msra.gmra.mrb[34].mxu0 %vm347_vm2, %v5604_v7  ;;  %v6328_v7 = vld [vmem:[%s8674_s8 + $0xe8] sm:$0xff] }
0x2313   :  { %7431 = vmatpush3.bf16.msra.mxu0 %v7428_v4  ;;  %v7452_v19 = vpack.c.bf16 %v6328_v7, %v6327_v14 }
0x2314   :  { %7433 = vmatprep.subr.bf16.mxu0 %v7432_v6 }
0x2317   :  { %7435 = vmatpush3.bf16.msra.mxu0 %v7432_v6 }
0x2318   :  { %7437 = vmatprep.subr.bf16.mxu0 %v7436_v9 }
0x231b   :  { %7439 = vmatpush3.bf16.msra.mxu0 %v7436_v9  ;;  %v7464_v9 = vpack.c.bf16 %v5989_v20, %v5988_v8 }
0x231c   :  { %7441 = vmatprep.subr.bf16.mxu0 %v7440_v21 }
0x231f   :  { %7443 = vmatpush3.bf16.msra.mxu0 %v7440_v21 }
0x2320   :  { %7445 = vmatprep.subr.bf16.mxu0 %v7444_v16 }
0x2323   :  { %7447 = vmatpush3.bf16.msra.mxu0 %v7444_v16 }
0x2324   :  { %7449 = vmatprep.subr.bf16.mxu0 %v7448_v5 }
0x2327   :  { %7451 = vmatpush3.bf16.msra.mxu0 %v7448_v5 }
0x2328   :  { %7453 = vmatprep.subr.bf16.mxu0 %v7452_v19 }
0x232b   :  { %7455 = vmatpush3.bf16.msra.mxu0 %v7452_v19  ;;  %v6332_v19 = vld [vmem:[%s8677_s10 + $0x1] ss:$0 sm:$0xff] }
0x23e5   :  { %v7130_v23 = vpop.f32.mrb[34].mxu0 }
0x23e6   :  { %v5694_v41 = vadd.f32 %v7130_v23, %v8158_v60  ;;  %v5682_v24 = vpop.f32.mrb[35].mxu0  ;;  %v6330_v23 = vld [vmem:[%s8674_s8 + $0xf8] sm:$0xff] }
0x23e7   :  { %v5693_v25 = vadd.f32 %v5682_v24, %v8161_v61  ;;  %v6312_v24 = vld [vmem:[%s8675_s7 + $0x1] ss:$0 sm:$0xff] }
0x23e8   :  { %v8546_v12 = vadd.f32 %v5698_v59, %v5694_v41 }
0x23e9   :  { %v8548_v26 = vadd.f32 %v5698_v59, %v5693_v25  ;;  %v6329_v59 = vld [vmem:[%s8674_s8 + $0xf0] sm:$0xff] }
0x23ea   :  { %v5704_v22 = vsel %vm49_vm0, %v8546_v12, 0.0  ;;  %v7456_v41 = vpack.c.bf16 %v6330_v23, %v6329_v59 }
0x23eb   :  { %5705 = vadd.xlane.f32.xlu1 %v5704_v22  ;;  %v5701_v1 = vsel %vm49_vm0, %v8548_v26, 0.0 }
0x23ec   :  { %5702 = vadd.xlane.f32.xlu0 %v5701_v1  ;;  %7457 = vmatprep.subr.bf16.mxu0 %v7456_v41 }
0x23ed   :  { %7459 = vmatpush3.bf16.msra.mxu0 %v7456_v41 }
0x2478   :  { %v5706_v28 = vpop.xlane.xlu1 %5705 }
0x2479   :  { %v5708_v17 = vmul.f32 0.03125, %v5706_v28  ;;  %v5703_v29 = vpop.xlane.xlu0 %5702 }
0x247a   :  { %v5707_v49 = vmul.f32 0.03125, %v5703_v29 }
0x247b   :  { %v5710_v60 = vsub.f32 %v8546_v12, %v5708_v17 }
0x247c   :  { %v5709_v61 = vsub.f32 %v8548_v26, %v5707_v49 }
0x247d   :  { %v5712_v30 = vmul.f32 %v5710_v60, %v5710_v60 }
0x247e   :  { %v5711_v31 = vmul.f32 %v5709_v61, %v5709_v61 }
0x247f   :  { %v5716_v32 = vsel %vm49_vm0, %v5712_v30, 0.0 }
0x2480   :  { %5717 = vadd.xlane.f32.xlu1 %v5716_v32  ;;  %v5713_v56 = vsel %vm49_vm0, %v5711_v31, 0.0 }
0x2481   :  { %5714 = vadd.xlane.f32.xlu0 %v5713_v56 }
0x250d   :  { %v5718_v42 = vpop.xlane.xlu1 %5717 }
0x250e   :  { %v5720_v39 = vmul.f32 0.03125, %v5718_v42  ;;  %v5715_v43 = vpop.xlane.xlu0 %5714 }
0x250f   :  { %v5719_v44 = vmul.f32 0.03125, %v5715_v43 }
0x2510   :  { %v5722_v45 = vadd.f32 1e-05, %v5720_v39 }
0x2511   :  { %v5721_v48 = vadd.f32 1e-05, %v5719_v44  ;;  %v7575_v44 = vld [vmem:[%s8670_s9 + $0x8] sm:$0x3f] }
0x2512   :  { %7562 = vrsqrt.f32 %v5722_v45  ;;  %v5868_v45 = vrot.slane %v7575_v44, %v2916_v52 }
0x2513   :  { %7564 = vrsqrt.f32 %v5721_v48 }
0x251c   :  { %v7563_v51 = vpop.eup %7562 }
0x251d   :  { %v7565_v53 = vpop.eup %7564  ;;  %v5726_v54 = vmul.f32 %v7563_v51, %v5710_v60 }
0x251e   :  { %v5725_v55 = vmul.f32 %v7565_v53, %v5709_v61 }
0x251f   :  { %v5732_v58 = vmul.f32 %v5730_v50, %v5726_v54 }
0x2520   :  { %v5731_v62 = vmul.f32 %v5730_v50, %v5725_v55 }
0x2521   :  { %v5738_v63 = vadd.f32 %v5736_v57, %v5732_v58 }
0x2522   :  { %v5737_v3 = vadd.f32 %v5736_v57, %v5731_v62 }
0x2524   :  { %7139 = vmatprep.mubr.msk.f32.mxu1 %vm49_vm0, %v5737_v3 }
0x2525   :  { %7140 = vmatmul.mubr.msk.f32.vlgmr.msra.gmra.mrb[70].mxu1 %vm49_vm0, %v5738_v63 }
0x25f8   :  { %v7141_v25 = vpop.f32.mrb[70].mxu1 }
0x25f9   :  { %v5827_v22 = vadd.f32 %v7141_v25, %v6312_v24  ;;  %v5821_v1 = vpop.f32.mrb[71].mxu1 }
0x25fa   :  { %v5822_v28 = vadd.f32 %v6312_v24, %v5821_v1 }
0x25fb   :  { %v5831_v17 = vmul.f32 %v5827_v22, %v5827_v22 }
0x25fc   :  { %v5830_v29 = vmul.f32 %v5822_v28, %v5822_v28 }
0x25fd   :  { %v5833_v49 = vmul.f32 %v5831_v17, %v5827_v22 }
0x25fe   :  { %v5832_v60 = vmul.f32 %v5830_v29, %v5822_v28 }
0x25ff   :  { %v5835_v61 = vmul.f32 0.044715, %v5833_v49 }
0x2600   :  { %v5834_v30 = vmul.f32 0.044715, %v5832_v60 }
0x2601   :  { %v5837_v31 = vadd.f32 %v5835_v61, %v5827_v22 }
0x2602   :  { %v5836_v32 = vadd.f32 %v5834_v30, %v5822_v28 }
0x2603   :  { %v5839_v56 = vmul.f32 0.7978846, %v5837_v31 }
0x2604   :  { %v5838_v34 = vmul.f32 0.7978846, %v5836_v32 }
0x2605   :  { %7566 = vtanh.f32 %v5839_v56 }
0x2606   :  { %7568 = vtanh.f32 %v5838_v34 }
0x260f   :  { %v7567_v33 = vpop.eup %7566 }
0x2610   :  { %v7569_v35 = vpop.eup %7568  ;;  %v5843_v36 = vadd.f32 1.0, %v7567_v33 }
0x2611   :  { %v5842_v40 = vadd.f32 1.0, %v7569_v35 }
0x2612   :  { %v5845_v37 = vmul.f32 0.5, %v5843_v36 }
0x2613   :  { %v5844_v42 = vmul.f32 0.5, %v5842_v40 }
0x2614   :  { %v5847_v43 = vmul.f32 %v5845_v37, %v5827_v22 }
0x2615   :  { %v5846_v39 = vmul.f32 %v5844_v42, %v5822_v28 }
0x2617   :  { %7174 = vmatprep.mubr.f32.mxu0 %v5846_v39 }
0x2618   :  { %7175 = vmatmul.mubr.f32.vlgmr.msra.gmra.mrb[50].mxu0 %v5847_v43 }
0x26eb   :  { %v7176_v48 = vpop.f32.mrb[50].mxu0 }
0x26ec   :  { %v5941_v50 = vadd.f32 %v7176_v48, %v5868_v45  ;;  %v5935_v51 = vpop.f32.mrb[51].mxu0 }
0x26ed   :  { %v5936_v53 = vadd.f32 %v5935_v51, %v5868_v45 }
0x26ee   :  { %v5945_v54 = vadd.f32 %v5941_v50, %v8546_v12 }
0x26ef   :  { %v5944_v55 = vadd.f32 %v5936_v53, %v8548_v26  ;;  %v5986_v26 = vld [vmem:[%s8676_s11] sm:$0xff] }
0x26f0   :  { %v5951_v57 = vsel %vm49_vm0, %v5945_v54, 0.0  ;;  %v7460_v6 = vpack.c.bf16 %v5987_v0, %v5986_v26 }
0x26f1   :  { %5952 = vadd.xlane.f32.xlu1 %v5951_v57  ;;  %v5948_v58 = vsel %vm49_vm0, %v5944_v55, 0.0 }
0x26f2   :  { %5949 = vadd.xlane.f32.xlu0 %v5948_v58  ;;  %7461 = vmatprep.subr.bf16.mxu1 %v7460_v6 }
0x26f3   :  { %7463 = vmatpush3.bf16.msra.mxu1 %v7460_v6 }
0x26f4   :  { %7465 = vmatprep.subr.bf16.mxu1 %v7464_v9 }
0x26f7   :  { %7467 = vmatpush3.bf16.msra.mxu1 %v7464_v9 }
0x277e   :  { %v5953_v62 = vpop.xlane.xlu1 %5952 }
0x277f   :  { %v5955_v3 = vmul.f32 0.03125, %v5953_v62  ;;  %v5950_v63 = vpop.xlane.xlu0 %5949 }
0x2780   :  { %v5954_v46 = vmul.f32 0.03125, %v5950_v63 }
0x2781   :  { %v5957_v38 = vsub.f32 %v5945_v54, %v5955_v3 }
0x2782   :  { %v5956_v52 = vsub.f32 %v5944_v55, %v5954_v46 }
0x2783   :  { %v5959_v2 = vmul.f32 %v5957_v38, %v5957_v38 }
0x2784   :  { %v5958_v4 = vmul.f32 %v5956_v52, %v5956_v52 }
0x2785   :  { %v5963_v47 = vsel %vm49_vm0, %v5959_v2, 0.0 }
0x2786   :  { %5964 = vadd.xlane.f32.xlu1 %v5963_v47  ;;  %v5960_v12 = vsel %vm49_vm0, %v5958_v4, 0.0 }
0x2787   :  { %5961 = vadd.xlane.f32.xlu0 %v5960_v12 }
0x2813   :  { %v5965_v10 = vpop.xlane.xlu1 %5964 }
0x2814   :  { %v5967_v27 = vmul.f32 0.03125, %v5965_v10  ;;  %v5962_v21 = vpop.xlane.xlu0 %5961 }
0x2815   :  { %v5966_v11 = vmul.f32 0.03125, %v5962_v21 }
0x2816   :  { %v5969_v13 = vadd.f32 1e-05, %v5967_v27 }
0x2817   :  { %v5968_v15 = vadd.f32 1e-05, %v5966_v11 }
0x2818   :  { %7570 = vrsqrt.f32 %v5969_v13 }
0x2819   :  { %7572 = vrsqrt.f32 %v5968_v15 }
0x2822   :  { %v7571_v16 = vpop.eup %7570 }
0x2823   :  { %v7573_v5 = vpop.eup %7572  ;;  %v5973_v14 = vmul.f32 %v7571_v16, %v5957_v38 }
0x2824   :  { %v5972_v7 = vmul.f32 %v7573_v5, %v5956_v52 }
0x2825   :  { %v5979_v59 = vmul.f32 %v6331_v18, %v5973_v14 }
0x2826   :  { %v5978_v23 = vmul.f32 %v6331_v18, %v5972_v7 }
0x2827   :  { %v5985_v24 = vadd.f32 %v6332_v19, %v5979_v59 }
0x2828   :  { %v5984_v41 = vadd.f32 %v6332_v19, %v5978_v23 }
0x282a   :  { %7185 = vmatprep.mubr.msk.f32.mxu1 %vm49_vm0, %v5984_v41 }
0x282b   :  { %7186 = vmatmul.mubr.msk.f32.vlgmr.msra.gmra.mrb[72].mxu1 %vm49_vm0, %v5985_v24 }
0x28fe   :  { %v7187_v25 = vpop.f32.mrb[72].mxu1 }
0x28ff   :  { %6072 = vst [vmem:[%s8678_s12 + $0x8] sm:$0xff] %v7187_v25  ;;  %v6062_v22 = vpop.f32.mrb[73].mxu1 }
0x2900   :  { %6071 = vst [vmem:[%s8678_s12] sm:$0xff] %v6062_v22 }

</bundles_post_ra>
